<compile_context>
chip_gen: v6e
topology: v6e:2x2x1
jax: 0.10.0
libtpu: 0.0.40
codegen_flags: <defaults>
</compile_context>

<pallas_src>
import functools

import jax
import jax.numpy as jnp
from jax.experimental import pallas as pl
from jax.experimental.pallas import tpu as pltpu


# ---------------------------------------------------------------------------
# Fused 2-layer GCN kernel
# ---------------------------------------------------------------------------
def _fused_gcn_kernel(adj_ref, z0_ref, w2t_ref, b1_ref, b2_ref, dinv_ref,
                      out_ref, acc_ref, z1_ref, *, tm, tk, out_c, adj_resident):
    l = pl.program_id(0)            # 0 = first GCN layer, 1 = second GCN layer
    r = pl.program_id(1)            # output row tile
    k = pl.program_id(2)            # reduction (adjacency column) tile
    nk = pl.num_programs(2)
    row0 = pl.multiple_of(r * tm, tm)
    col0 = pl.multiple_of(k * tk, tk)

    @pl.when(k == 0)
    def _init():
        acc_ref[...] = jnp.zeros_like(acc_ref)

    # Adjacency tile: int8 counts widened to bf16 just before the MXU dot.
    if adj_resident:
        a_i8 = adj_ref[pl.ds(row0, tm), pl.ds(col0, tk)]      # (tm, tk) int8
    else:
        a_i8 = adj_ref[...]                                   # (tm, tk) int8
    a_blk = a_i8.astype(jnp.float32).astype(jnp.bfloat16)

    # Aggregation: acc += A_tile @ Z_tile   (bf16 MXU, f32 accumulate)
    @pl.when(l == 0)
    def _acc_layer1():
        acc_ref[...] += jnp.dot(a_blk, z0_ref[...],
                                preferred_element_type=jnp.float32)

    @pl.when(l == 1)
    def _acc_layer2():
        acc_ref[...] += jnp.dot(a_blk, z1_ref[pl.ds(col0, tk), :],
                                preferred_element_type=jnp.float32)

    # ---- layer-1 epilogue: H = relu(dinv⊙acc + b1); Z1 = dinv ⊙ (H @ W2^T) ----
    @pl.when(jnp.logical_and(l == 0, k == nk - 1))
    def _epilogue_layer1():
        dr = dinv_ref[...]                                    # (tm, 1) f32
        h = jnp.maximum(dr * acc_ref[...] + b1_ref[...], 0.0)
        z1 = dr * jnp.dot(h, w2t_ref[...], preferred_element_type=jnp.float32)
        z1_ref[pl.ds(row0, tm), :] = z1.astype(z1_ref.dtype)
        # NOTE: no out_ref store here; every output block is fully written by
        # the layer-2 epilogue and the out index_map pins layer-1 iterations
        # to block (0,0), so no spurious HBM writeback happens during layer 1.

    # ---- layer-2 epilogue: masked softmax over the real class columns ----
    @pl.when(jnp.logical_and(l == 1, k == nk - 1))
    def _epilogue_layer2():
        dr = dinv_ref[...]
        logits = dr * acc_ref[...] + b2_ref[...]
        col = jax.lax.broadcasted_iota(jnp.int32, logits.shape, 1)
        logits = jnp.where(col < out_c, logits, -1e30)        # mask padded classes
        m = jnp.max(logits, axis=-1, keepdims=True)
        e = jnp.exp(logits - m)
        s = jnp.sum(e, axis=-1, keepdims=True)
        out_ref[...] = e * pl.reciprocal(s, approx=True)      # EUP divide


# ---------------------------------------------------------------------------
# Wrapper
# ---------------------------------------------------------------------------
def _round_up(v, m):
    return (v + m - 1) // m * m


def _pick_tile(n_pad, prefs):
    for t in prefs:
        if n_pad >= t and n_pad % t == 0:
            return t
    return n_pad


def _vmem_limit_bytes():
    # Generation-aware VMEM budget with headroom (~96 MiB on 128-MiB v5e/v6e,
    # ~48 MiB on 64-MiB v7x). Portable fallback: 48 MiB.
    try:
        cap = pltpu.get_tpu_info().vmem_capacity_bytes
        return int(min(cap * 3 // 4, 100 << 20))
    except Exception:
        return 48 << 20


def my_gcn_forward(x, edge_index, params):
    """Eval-mode forward of MyGCN (num_layers=2); dropout is identity."""
    n, c_in = x.shape
    w1, b1 = params["w1"], params["b1"]          # [hid, c_in], [hid]
    w2, b2 = params["w2"], params["b2"]          # [out, hid],  [out]
    hid, out_c = w1.shape[0], w2.shape[0]

    src, dst = edge_index[0], edge_index[1]      # j (source), i (target)

    # deg[i] = (# non-self-loop edges with target i) + 1 (the added self loop).
    nonloop = (src != dst).astype(jnp.float32)
    deg = jnp.zeros((n,), jnp.float32).at[dst].add(nonloop) + 1.0
    dinv = jax.lax.rsqrt(deg)                    # deg >= 1, never inf

    # --- padding / tiling: lane-dense 128-wide channels, 512-aligned rows ---
    cw = max(_round_up(hid, 128), _round_up(out_c, 128))   # common channel width
    n_pad = _round_up(n, 512)
    tm = _pick_tile(n_pad, (256, 512, 128))      # output-row tile (MXU M dim)
    tk = _pick_tile(n_pad, (1024, 512))          # reduction tile

    # Padded int8 count adjacency built directly at the padded shape:
    # off-diagonal = edge multiplicities, diagonal = exactly 1 (self-loop edges
    # dropped, one self-loop per node added -> add_remaining_self_loops).
    # TODO(synk): int8 counts are exact only up to 127 parallel edges per pair.
    idx = jnp.arange(n)
    adj_i = jnp.zeros((n_pad, n_pad), jnp.int32).at[dst, src].add(1)
    adj_i = adj_i.at[idx, idx].set(1)
    adj_p = adj_i.astype(jnp.int8)

    # Z0 = dinv ⊙ (X @ W1^T) precomputed in XLA (tiny matmul), streamed bf16.
    z0 = dinv[:, None] * (x.astype(jnp.float32) @ w1.T.astype(jnp.float32))
    z0_p = jnp.zeros((n_pad, cw), jnp.bfloat16).at[:n, :hid].set(
        z0.astype(jnp.bfloat16))

    dinv_p = jnp.zeros((n_pad, 1), jnp.float32).at[:n, 0].set(dinv)
    b1_p = jnp.zeros((1, cw), jnp.float32).at[0, :hid].set(b1.astype(jnp.float32))
    w2t_p = jnp.zeros((cw, cw), jnp.float32).at[:hid, :out_c].set(
        w2.T.astype(jnp.float32))
    b2_p = jnp.zeros((1, cw), jnp.float32).at[0, :out_c].set(b2.astype(jnp.float32))

    vmem_budget = _vmem_limit_bytes()
    # VMEM-resident adjacency (int8, incl. pipeline double-buffer) if it fits
    # in ~half the budget -> one HBM pass total instead of one per layer.
    adj_resident = (2 * n_pad * n_pad) <= (vmem_budget // 2)

    if adj_resident:
        adj_spec = pl.BlockSpec((n_pad, n_pad), lambda l, r, k: (0, 0))
    else:
        adj_spec = pl.BlockSpec((tm, tk), lambda l, r, k: (r, k))

    grid = (2, n_pad // tm, n_pad // tk)         # (layer, row tile, reduction tile)

    out_p = pl.pallas_call(
        functools.partial(_fused_gcn_kernel, tm=tm, tk=tk, out_c=out_c,
                          adj_resident=adj_resident),
        out_shape=jax.ShapeDtypeStruct((n_pad, cw), jnp.float32),
        grid_spec=pltpu.PrefetchScalarGridSpec(
            num_scalar_prefetch=0,
            grid=grid,
            in_specs=[
                adj_spec,                                              # adj (int8)
                # Z0 streamed per k-tile in layer 1; pinned to block 0 in layer 2
                pl.BlockSpec((tk, cw), lambda l, r, k: ((1 - l) * k, 0)),
                pl.BlockSpec((cw, cw), lambda l, r, k: (0, 0)),        # W2^T
                pl.BlockSpec((1, cw), lambda l, r, k: (0, 0)),         # b1
                pl.BlockSpec((1, cw), lambda l, r, k: (0, 0)),         # b2
                pl.BlockSpec((tm, 1), lambda l, r, k: (r, 0)),         # deg^{-1/2} rows
            ],
            # Layer-1 iterations collapse onto block (0,0) (never written there);
            # layer 2 writes every block exactly once.
            out_specs=pl.BlockSpec((tm, cw), lambda l, r, k: (l * r, 0)),
            scratch_shapes=[
                pltpu.VMEM((tm, cw), jnp.float32),       # f32 accumulator
                pltpu.VMEM((n_pad, cw), jnp.bfloat16),   # Z1 = dinv ⊙ H @ W2^T
            ],
        ),
        compiler_params=pltpu.CompilerParams(
            # Layer fusion makes layer-2 row tiles depend on ALL layer-1 row
            # tiles through the Z1 scratch -> every axis stays sequential.
            dimension_semantics=("arbitrary", "arbitrary", "arbitrary"),
            vmem_limit_bytes=vmem_budget,
        ),
    )(adj_p, z0_p, w2t_p, b1_p, b2_p, dinv_p)

    return out_p[:n, :out_c]


# ---------------------------------------------------------------------------
# Pure-JAX reference (same eval-mode math) + Glorot init
# ---------------------------------------------------------------------------
def reference_forward(x, edge_index, params):
    n = x.shape[0]
    src, dst = edge_index[0], edge_index[1]
    adj = jnp.zeros((n, n), jnp.float32).at[dst, src].add(1.0)
    idx = jnp.arange(n)
    adj = adj.at[idx, idx].set(1.0)              # add_remaining_self_loops
    deg = jnp.sum(adj, axis=1)
    dinv = 1.0 / jnp.sqrt(deg)
    a_hat = dinv[:, None] * adj * dinv[None, :]
    h = jnp.maximum(a_hat @ (x @ params["w1"].T) + params["b1"], 0.0)
    logits = a_hat @ (h @ params["w2"].T) + params["b2"]
    return jax.nn.softmax(logits, axis=-1)


def glorot(key, fan_out, fan_in):
    # torch_geometric glorot: U(-a, a), a = sqrt(6 / (fan_in + fan_out))
    a = jnp.sqrt(6.0 / (fan_in + fan_out))
    return jax.random.uniform(key, (fan_out, fan_in), jnp.float32, -a, a)


# ---------------------------------------------------------------------------
# main
# ---------------------------------------------------------------------------
if __name__ == "__main__":
    N, IN_C, HID_C, OUT_C, E = 32, 16, 64, 7, 64   # hidden_channels=64, num_layers=2

    key = jax.random.PRNGKey(0)
    k_x, k_src, k_dst, k_w1, k_w2 = jax.random.split(key, 5)

    x = jax.random.normal(k_x, (N, IN_C), jnp.float32)
    src = jax.random.randint(k_src, (E,), 0, N)
    dst = jax.random.randint(k_dst, (E,), 0, N)
    edge_index = jnp.stack([src, dst], axis=0)     # row 0 = source j, row 1 = target i

    params = {
        "w1": glorot(k_w1, HID_C, IN_C),           # Linear(in, hidden).weight  [hid, in]
        "b1": jnp.zeros((HID_C,), jnp.float32),
        "w2": glorot(k_w2, OUT_C, HID_C),          # Linear(hidden, out).weight [out, hid]
        "b2": jnp.zeros((OUT_C,), jnp.float32),
    }

    out = jax.block_until_ready(jax.jit(my_gcn_forward)(x, edge_index, params))
    ref = jax.block_until_ready(reference_forward(x, edge_index, params))

    assert out.shape == (N, OUT_C)
    # softmax rows sum to 1 (approx reciprocal + bf16 message tolerance)
    assert jnp.allclose(jnp.sum(out, axis=-1), 1.0, atol=2e-2)
    assert jnp.max(jnp.abs(out - ref)) < 2e-2
    print("KERNEL_OK")
</pallas_src>

<mosaic_0001>
module attributes {stable_mosaic.version = 11 : i64} {
  func.func private @main(%arg0: i32) attributes {dimension_semantics = [#tpu.dimension_semantics<core_parallel>], iteration_bounds = array<i64: 2>, tpu.core_type = #tpu.core_type<sc_scalar_subcore>, window_params = []} {
    return
  }
}

module attributes {stable_mosaic.version = 11 : i64} {
  func.func private @main(%arg0: i32) attributes {dimension_semantics = [#tpu.dimension_semantics<core_parallel>], iteration_bounds = array<i64: 2>, tpu.core_type = #tpu.core_type<sc_scalar_subcore>, window_params = []} {
    return
  }
}

module attributes {stable_mosaic.version = 11 : i64} {
  func.func @_fused_gcn_kernel(%arg0: i32, %arg1: i32, %arg2: i32, %arg3: memref<512x512xi8, #tpu.memory_space<vmem>>, %arg4: memref<512x128xbf16, #tpu.memory_space<vmem>>, %arg5: memref<128x128xf32, #tpu.memory_space<vmem>>, %arg6: memref<1x128xf32, #tpu.memory_space<vmem>>, %arg7: memref<1x128xf32, #tpu.memory_space<vmem>>, %arg8: memref<256x1xf32, #tpu.memory_space<vmem>>, %arg9: memref<256x128xf32, #tpu.memory_space<vmem>>, %arg10: memref<256x128xf32, #tpu.memory_space<vmem>>, %arg11: memref<512x128xbf16, #tpu.memory_space<vmem>>) attributes {dimension_semantics = [#tpu.dimension_semantics<arbitrary>, #tpu.dimension_semantics<arbitrary>, #tpu.dimension_semantics<arbitrary>], iteration_bounds = array<i64: 2, 2, 1>, scalar_prefetch = 0 : i64, scratch_operands = 2 : i64, tpu.core_type = #tpu.core_type<tc>, window_params = [{pipeline_mode = #tpu.pipeline_mode<synchronous>, transform_indices = @transform_0, window_bounds = array<i64: 512, 512>}, {transform_indices = @transform_1, window_bounds = array<i64: 512, 128>}, {pipeline_mode = #tpu.pipeline_mode<synchronous>, transform_indices = @transform_2, window_bounds = array<i64: 128, 128>}, {pipeline_mode = #tpu.pipeline_mode<synchronous>, transform_indices = @transform_3, window_bounds = array<i64: 1, 128>}, {pipeline_mode = #tpu.pipeline_mode<synchronous>, transform_indices = @transform_4, window_bounds = array<i64: 1, 128>}, {transform_indices = @transform_5, window_bounds = array<i64: 256, 1>}, {transform_indices = @transform_6, window_bounds = array<i64: 256, 128>}]} {
    %c256_i32 = arith.constant 256 : i32
    %0 = arith.muli %arg1, %c256_i32 : i32
    %1 = tpu.assume_multiple %0, 256 : i32
    %c512_i32 = arith.constant 512 : i32
    %2 = arith.muli %arg2, %c512_i32 : i32
    %3 = tpu.assume_multiple %2, 512 : i32
    %c0_i32 = arith.constant 0 : i32
    %4 = arith.cmpi eq, %arg2, %c0_i32 : i32
    %5 = arith.extui %4 : i1 to i32
    %c0_i32_0 = arith.constant 0 : i32
    %6 = arith.cmpi ne, %5, %c0_i32_0 : i32
    scf.if %6 {
      %cst = arith.constant 0.000000e+00 : f32
      %28 = vector.broadcast %cst : f32 to vector<256x128xf32>
      %c0 = arith.constant 0 : index
      %c0_10 = arith.constant 0 : index
      %29 = vector.load %arg10[%c0, %c0_10] : memref<256x128xf32, #tpu.memory_space<vmem>>, vector<256x128xf32>
      tpu.vector_store %arg10[%c0, %c0_10], %28 {strides = array<i32>} : memref<256x128xf32, #tpu.memory_space<vmem>>, vector<256x128xf32>,
    } else {
    }
    %7 = arith.index_cast %1 : i32 to index
    %8 = arith.index_cast %3 : i32 to index
    %9 = vector.load %arg3[%7, %8] : memref<512x512xi8, #tpu.memory_space<vmem>>, vector<256x512xi8>
    %10 = arith.sitofp %9 : vector<256x512xi8> to vector<256x512xf32>
    %11 = arith.truncf %10 : vector<256x512xf32> to vector<256x512xbf16>
    %c0_i32_1 = arith.constant 0 : i32
    %12 = arith.cmpi eq, %arg0, %c0_i32_1 : i32
    %13 = arith.extui %12 : i1 to i32
    %c0_i32_2 = arith.constant 0 : i32
    %14 = arith.cmpi ne, %13, %c0_i32_2 : i32
    scf.if %14 {
      %c0 = arith.constant 0 : index
      %c0_10 = arith.constant 0 : index
      %28 = vector.load %arg10[%c0, %c0_10] : memref<256x128xf32, #tpu.memory_space<vmem>>, vector<256x128xf32>
      %c0_11 = arith.constant 0 : index
      %c0_12 = arith.constant 0 : index
      %29 = vector.load %arg4[%c0_11, %c0_12] : memref<512x128xbf16, #tpu.memory_space<vmem>>, vector<512x128xbf16>
      %cst = arith.constant dense<0.000000e+00> : vector<256x128xf32>
      %30 = tpu.matmul %11, %29, %cst {dimension_numbers = #tpu.dot_dimension_numbers<[1], [0], [0], [1], [0, 0, 1, 1], [], []>} : vector<256x512xbf16>, vector<512x128xbf16>, vector<256x128xf32> -> vector<256x128xf32>
      %31 = arith.addf %28, %30 : vector<256x128xf32>
      %c0_13 = arith.constant 0 : index
      %c0_14 = arith.constant 0 : index
      %32 = vector.load %arg10[%c0_13, %c0_14] : memref<256x128xf32, #tpu.memory_space<vmem>>, vector<256x128xf32>
      tpu.vector_store %arg10[%c0_13, %c0_14], %31 {strides = array<i32>} : memref<256x128xf32, #tpu.memory_space<vmem>>, vector<256x128xf32>,
    } else {
    }
    %c1_i32 = arith.constant 1 : i32
    %15 = arith.cmpi eq, %arg0, %c1_i32 : i32
    %16 = arith.extui %15 : i1 to i32
    %c0_i32_3 = arith.constant 0 : i32
    %17 = arith.cmpi ne, %16, %c0_i32_3 : i32
    scf.if %17 {
      %c0 = arith.constant 0 : index
      %c0_10 = arith.constant 0 : index
      %28 = vector.load %arg10[%c0, %c0_10] : memref<256x128xf32, #tpu.memory_space<vmem>>, vector<256x128xf32>
      %29 = arith.index_cast %3 : i32 to index
      %c0_11 = arith.constant 0 : index
      %30 = vector.load %arg11[%29, %c0_11] : memref<512x128xbf16, #tpu.memory_space<vmem>>, vector<512x128xbf16>
      %cst = arith.constant dense<0.000000e+00> : vector<256x128xf32>
      %31 = tpu.matmul %11, %30, %cst {dimension_numbers = #tpu.dot_dimension_numbers<[1], [0], [0], [1], [0, 0, 1, 1], [], []>} : vector<256x512xbf16>, vector<512x128xbf16>, vector<256x128xf32> -> vector<256x128xf32>
      %32 = arith.addf %28, %31 : vector<256x128xf32>
      %c0_12 = arith.constant 0 : index
      %c0_13 = arith.constant 0 : index
      %33 = vector.load %arg10[%c0_12, %c0_13] : memref<256x128xf32, #tpu.memory_space<vmem>>, vector<256x128xf32>
      tpu.vector_store %arg10[%c0_12, %c0_13], %32 {strides = array<i32>} : memref<256x128xf32, #tpu.memory_space<vmem>>, vector<256x128xf32>,
    } else {
    }
    %c0_i32_4 = arith.constant 0 : i32
    %18 = arith.cmpi eq, %arg0, %c0_i32_4 : i32
    %c0_i32_5 = arith.constant 0 : i32
    %19 = arith.cmpi eq, %arg2, %c0_i32_5 : i32
    %20 = arith.andi %18, %19 : i1
    %21 = arith.extui %20 : i1 to i32
    %c0_i32_6 = arith.constant 0 : i32
    %22 = arith.cmpi ne, %21, %c0_i32_6 : i32
    scf.if %22 {
      %c0 = arith.constant 0 : index
      %c0_10 = arith.constant 0 : index
      %28 = vector.load %arg8[%c0, %c0_10] : memref<256x1xf32, #tpu.memory_space<vmem>>, vector<256x1xf32>
      %c0_11 = arith.constant 0 : index
      %c0_12 = arith.constant 0 : index
      %29 = vector.load %arg10[%c0_11, %c0_12] : memref<256x128xf32, #tpu.memory_space<vmem>>, vector<256x128xf32>
      %30 = vector.broadcast %28 : vector<256x1xf32> to vector<256x128xf32>
      %31 = arith.mulf %30, %29 : vector<256x128xf32>
      %c0_13 = arith.constant 0 : index
      %c0_14 = arith.constant 0 : index
      %32 = vector.load %arg6[%c0_13, %c0_14] : memref<1x128xf32, #tpu.memory_space<vmem>>, vector<1x128xf32>
      %33 = vector.broadcast %32 : vector<1x128xf32> to vector<256x128xf32>
      %34 = arith.addf %31, %33 : vector<256x128xf32>
      %cst = arith.constant 0.000000e+00 : f32
      %35 = vector.broadcast %cst : f32 to vector<256x128xf32>
      %36 = arith.maximumf %34, %35 : vector<256x128xf32>
      %c0_15 = arith.constant 0 : index
      %c0_16 = arith.constant 0 : index
      %37 = vector.load %arg5[%c0_15, %c0_16] : memref<128x128xf32, #tpu.memory_space<vmem>>, vector<128x128xf32>
      %cst_17 = arith.constant dense<0.000000e+00> : vector<256x128xf32>
      %38 = tpu.matmul %36, %37, %cst_17 {dimension_numbers = #tpu.dot_dimension_numbers<[1], [0], [0], [1], [0, 0, 1, 1], [], []>} : vector<256x128xf32>, vector<128x128xf32>, vector<256x128xf32> -> vector<256x128xf32>
      %39 = vector.broadcast %28 : vector<256x1xf32> to vector<256x128xf32>
      %40 = arith.mulf %39, %38 : vector<256x128xf32>
      %41 = arith.truncf %40 : vector<256x128xf32> to vector<256x128xbf16>
      %42 = arith.index_cast %1 : i32 to index
      %c0_18 = arith.constant 0 : index
      %43 = vector.load %arg11[%42, %c0_18] : memref<512x128xbf16, #tpu.memory_space<vmem>>, vector<256x128xbf16>
      tpu.vector_store %arg11[%42, %c0_18], %41 {strides = array<i32>} : memref<512x128xbf16, #tpu.memory_space<vmem>>, vector<256x128xbf16>,
    } else {
    }
    %c1_i32_7 = arith.constant 1 : i32
    %23 = arith.cmpi eq, %arg0, %c1_i32_7 : i32
    %c0_i32_8 = arith.constant 0 : i32
    %24 = arith.cmpi eq, %arg2, %c0_i32_8 : i32
    %25 = arith.andi %23, %24 : i1
    %26 = arith.extui %25 : i1 to i32
    %c0_i32_9 = arith.constant 0 : i32
    %27 = arith.cmpi ne, %26, %c0_i32_9 : i32
    scf.if %27 {
      %c0 = arith.constant 0 : index
      %c0_10 = arith.constant 0 : index
      %28 = vector.load %arg8[%c0, %c0_10] : memref<256x1xf32, #tpu.memory_space<vmem>>, vector<256x1xf32>
      %c0_11 = arith.constant 0 : index
      %c0_12 = arith.constant 0 : index
      %29 = vector.load %arg10[%c0_11, %c0_12] : memref<256x128xf32, #tpu.memory_space<vmem>>, vector<256x128xf32>
      %30 = vector.broadcast %28 : vector<256x1xf32> to vector<256x128xf32>
      %31 = arith.mulf %30, %29 : vector<256x128xf32>
      %c0_13 = arith.constant 0 : index
      %c0_14 = arith.constant 0 : index
      %32 = vector.load %arg7[%c0_13, %c0_14] : memref<1x128xf32, #tpu.memory_space<vmem>>, vector<1x128xf32>
      %33 = vector.broadcast %32 : vector<1x128xf32> to vector<256x128xf32>
      %34 = arith.addf %31, %33 : vector<256x128xf32>
      %35 = tpu.iota {dimensions = array<i32: 1>} : vector<256x128xi32>
      %c7_i32 = arith.constant 7 : i32
      %36 = vector.broadcast %c7_i32 : i32 to vector<256x128xi32>
      %37 = arith.cmpi slt, %35, %36 : vector<256x128xi32>
      %cst = arith.constant -1.000000e+30 : f32
      %38 = vector.broadcast %cst : f32 to vector<256x128xf32>
      %39 = arith.select %37, %34, %38 : vector<256x128xi1>, vector<256x128xf32>
      %cst_15 = arith.constant dense<0xFF800000> : vector<256xf32>
      %40 = vector.multi_reduction <maximumf>, %39, %cst_15 [1] : vector<256x128xf32> to vector<256xf32>
      %41 = vector.shape_cast %40 : vector<256xf32> to vector<256x1xf32>
      %42 = vector.broadcast %41 : vector<256x1xf32> to vector<256x128xf32>
      %43 = arith.subf %39, %42 : vector<256x128xf32>
      %44 = math.exp %43 : vector<256x128xf32>
      %cst_16 = arith.constant dense<0.000000e+00> : vector<256xf32>
      %45 = vector.multi_reduction <add>, %44, %cst_16 [1] : vector<256x128xf32> to vector<256xf32>
      %46 = vector.shape_cast %45 : vector<256xf32> to vector<256x1xf32>
      %47 = tpu.reciprocal %46 {approx = true} : vector<256x1xf32> -> vector<256x1xf32>
      %48 = vector.broadcast %47 : vector<256x1xf32> to vector<256x128xf32>
      %49 = arith.mulf %44, %48 : vector<256x128xf32>
      %c0_17 = arith.constant 0 : index
      %c0_18 = arith.constant 0 : index
      %50 = vector.load %arg9[%c0_17, %c0_18] : memref<256x128xf32, #tpu.memory_space<vmem>>, vector<256x128xf32>
      tpu.vector_store %arg9[%c0_17, %c0_18], %49 {strides = array<i32>} : memref<256x128xf32, #tpu.memory_space<vmem>>, vector<256x128xf32>,
    } else {
    }
    return
  }
  func.func @transform_0(%arg0: i32, %arg1: i32, %arg2: i32) -> (i32, i32) {
    %c0_i32 = arith.constant 0 : i32
    %c0_i32_0 = arith.constant 0 : i32
    %c0_i32_1 = arith.constant 0 : i32
    return %c0_i32, %c0_i32_0 : i32, i32
  }
  func.func @transform_1(%arg0: i32, %arg1: i32, %arg2: i32) -> (i32, i32) {
    %c1_i32 = arith.constant 1 : i32
    %0 = arith.subi %c1_i32, %arg0 : i32
    %1 = arith.muli %0, %arg2 : i32
    %c0_i32 = arith.constant 0 : i32
    %c0_i32_0 = arith.constant 0 : i32
    return %1, %c0_i32 : i32, i32
  }
  func.func @transform_2(%arg0: i32, %arg1: i32, %arg2: i32) -> (i32, i32) {
    %c0_i32 = arith.constant 0 : i32
    %c0_i32_0 = arith.constant 0 : i32
    %c0_i32_1 = arith.constant 0 : i32
    return %c0_i32, %c0_i32_0 : i32, i32
  }
  func.func @transform_3(%arg0: i32, %arg1: i32, %arg2: i32) -> (i32, i32) {
    %c0_i32 = arith.constant 0 : i32
    %c0_i32_0 = arith.constant 0 : i32
    %c0_i32_1 = arith.constant 0 : i32
    return %c0_i32, %c0_i32_0 : i32, i32
  }
  func.func @transform_4(%arg0: i32, %arg1: i32, %arg2: i32) -> (i32, i32) {
    %c0_i32 = arith.constant 0 : i32
    %c0_i32_0 = arith.constant 0 : i32
    %c0_i32_1 = arith.constant 0 : i32
    return %c0_i32, %c0_i32_0 : i32, i32
  }
  func.func @transform_5(%arg0: i32, %arg1: i32, %arg2: i32) -> (i32, i32) {
    %c0_i32 = arith.constant 0 : i32
    %c0_i32_0 = arith.constant 0 : i32
    return %arg1, %c0_i32 : i32, i32
  }
  func.func @transform_6(%arg0: i32, %arg1: i32, %arg2: i32) -> (i32, i32) {
    %0 = arith.muli %arg0, %arg1 : i32
    %c0_i32 = arith.constant 0 : i32
    %c0_i32_0 = arith.constant 0 : i32
    return %0, %c0_i32 : i32, i32
  }
}

</mosaic_0001>

<bundles_post_ra>
// kernel: my_gcn_forward.1
= control target key start
LH: loop header
LB: loop body
LE: loop exit
PB: predicated region body
PF: predicated region fallthrough
CT: control target
= control target key end

     0   :  { %s4507_s21 = smov 0   ;;  %s4509_s22 = smov 0   ;;  %s5805_s0 = inlined_call_operand.vmem [shape: s8[512,512], index: 0, kind: input, shape index: {}]   ;;  %s5806_s1 = inlined_call_operand.vmem [shape: bf16[512,128], index: 1, kind: input, shape index: {}]   ;;  %s5807_s2 = inlined_call_operand.vmem [shape: f32[128,128], index: 2, kind: input, shape index: {}]   ;;  %s5808_s3 = inlined_call_operand.vmem [shape: f32[1,128], index: 3, kind: input, shape index: {}]   ;;  %s5809_s4 = inlined_call_operand.vmem [shape: f32[1,128], index: 4, kind: input, shape index: {}]   ;;  %s5810_s5 = inlined_call_operand.vmem [shape: f32[512,1], index: 5, kind: input, shape index: {}]   ;;  %s5811_s6 = inlined_call_operand.vmem [shape: f32[512,128], index: 6, kind: output, shape index: {}]  }
   0x1   :  { %s4511_s23 = smov 0   ;;  %s4513_s24 = smov 0  }
   0x2   :  { %s4515_s25 = smov 0  }
   0x3 LB: > { %s31_s26 = sadd.s32 1, %s4459_s23  ;;  %s35_s27 = sadd.s32 1, %s4463_s24  ;;  %s4467_s25 = sphi %s4515_s25, %s16_s25   ;;  %s4463_s24 = sphi %s4513_s24, %s5928_s24   ;;  %s4459_s23 = sphi %s4511_s23, %s5927_s23   ;;  %s4455_s22 = sphi %s4509_s22, %s5926_s22   ;;  %s4451_s21 = sphi %s4507_s21, %s5925_s21  }
   0x4   : > { %p33_p0 = scmp.ge.s32.totalorder %s31_s26, 2  ;;  %p3339_p1 = scmp.ge.s32.totalorder %s4467_s25, 1 }
   0x5   : > { %p253_p2 = scmp.lt.s32.totalorder %s4467_s25, 5 }
   0x6   : > { %s5930_s26 = smov (%p33_p0, %s31_s26), 0  ;;  %s5932_s27 = smov (!%p33_p0, %s35_s27), %s4463_s24 }
   0x7   : > { %p254_p3 = pnand %p3339_p1, %p253_p2  ;;  %p37_p4 = scmp.ge.s32.totalorder %s5932_s27, 2 }
   0x8   : > { %s3340_s28 = sshll.u32 (!%p254_p3), %s4451_s21, 5  ;;  %s307_s29 = smul.u32 (!%p254_p3), %s4451_s21, %s4455_s22 }
   0x9   : > { %s5934_s27 = smov (%p37_p4, %s5932_s27), 0  ;;  %257 = sbr.rel (%p254_p3) target bundleno = 1660 (0x67c), region = 44 }
   0xa   : > { %p4546_p5 = scmp.lt.s32.totalorder (!%p254_p3), %s3340_s28, 63  ;;  %s3344_s7 = sshll.u32 (!%p254_p3), %s4451_s21, 8 }
   0xb   : > { %s4554_s8 = sshll.u32 (!%p254_p3), %s307_s29, 5  ;;  %s4561_s11 = scalar_lea.vmem (!%p254_p3), %s5805_s0, %s3344_s7 }
   0xc   : > { %p309_p6 = scmp.lt.s32.totalorder (!%p254_p3), %s4554_s8, 63  ;;  %p458_p7 = scmp.eq.s32.totalorder (!%p254_p3), %s4455_s22, 0 }
   0xd   : > { %p3347_p8 = scmp.ne.s32.totalorder (!%p254_p3), %s4455_s22, 0 }
   0xe   : > { %v4469_v0 = vmov 0.0   ;;  %s5936_s28 = smov (!%p4546_p5, %s3340_s28), 63  ;;  %v4568_v1 = vld [vmem:[%s4561_s11] sm:$0xff]  ;;  %v4571_v2 = vld [vmem:[%s4561_s11 + $0x8] sm:$0xff]  ;;  %v4574_v3 = vld [vmem:[%s4561_s11 + $0x10] sm:$0xff]  ;;  %s5938_s8 = smov (!%p309_p6, %s4554_s8), 63 }
   0xf   : > { %322 = vst [vmem:[#allocation2 + $0xb0] sm:$0xff] %v4469_v0  ;;  %323 = vst [vmem:[#allocation2] sm:$0xff] %v4469_v0  ;;  %v4578_v4 = vld [vmem:[%s4561_s11 + $0x18] sm:$0xff]  ;;  %v4581_v5 = vld [vmem:[%s4561_s11 + $0x20] sm:$0xff]  ;;  %v394_v7 = vunpack.c.l.s8.bf16 %v4568_v1  ;;  %v5812_v8 = vunpack.c.l.s8.bf16 %v4571_v2  ;;  %v396_v9 = vunpack.c.l.s8.bf16 %v4574_v3  ;;  %v398_v10 = vunpack.c.h.s8.bf16 %v4568_v1  ;;  %s3341_s12 = sshll.u32 %s5936_s28, 3  ;;  %s3343_s16 = sshll.u32 %s5938_s8, 3 }
  0x10   : > { %324 = vst [vmem:[#allocation2 + $0xd8] sm:$0xff] %v4469_v0  ;;  %325 = vst [vmem:[#allocation2 + $0x18] sm:$0xff] %v4469_v0  ;;  %v4584_v6 = vld [vmem:[%s4561_s11 + $0x28] sm:$0xff]  ;;  %v4592_v11 = vld [vmem:[%s4561_s11 + $0x30] sm:$0xff]  ;;  %v5813_v14 = vunpack.c.l.s8.bf16 %v4578_v4  ;;  %v399_v15 = vunpack.c.h.s8.bf16 %v4571_v2  ;;  %v400_v16 = vunpack.c.h.s8.bf16 %v4574_v3  ;;  %v401_v17 = vunpack.c.h.s8.bf16 %v4578_v4  ;;  %s4607_s15 = scalar_lea.vmem %s5810_s5, %s3341_s12  ;;  %s4664_s19 = scalar_lea.vmem %s5811_s6, %s3343_s16 }
  0x11   : > { %326 = vst [vmem:[#allocation2 + $0x50] sm:$0xff] %v4469_v0  ;;  %327 = vst [vmem:[#allocation2 + $0x68] sm:$0xff] %v4469_v0  ;;  %v4595_v12 = vld [vmem:[%s4561_s11 + $0x38] sm:$0xff]  ;;  %v4598_v13 = vld [vmem:[%s4561_s11 + $0x40] sm:$0xff]  ;;  %v5831_v21 = vunpack.c.l.s8.bf16 %v4581_v5  ;;  %v403_v22 = vunpack.c.l.s8.bf16 %v4584_v6  ;;  %v5830_v23 = vunpack.c.l.s8.bf16 %v4592_v11  ;;  %v5827_v28 = vunpack.c.h.s8.bf16 %v4581_v5 }
  0x12   : > { %328 = vst [vmem:[#allocation2 + $0x30] sm:$0xff] %v4469_v0  ;;  %329 = vst [vmem:[#allocation2 + $0x48] sm:$0xff] %v4469_v0  ;;  %v4610_v18 = vld [vmem:[%s4561_s11 + $0x48] sm:$0xff]  ;;  %v4613_v19 = vld [vmem:[%s4561_s11 + $0x50] sm:$0xff]  ;;  %v405_v24 = vunpack.c.l.s8.bf16 %v4595_v12  ;;  %v5829_v29 = vunpack.c.h.s8.bf16 %v4584_v6  ;;  %v5826_v30 = vunpack.c.h.s8.bf16 %v4592_v11  ;;  %v5828_v31 = vunpack.c.h.s8.bf16 %v4595_v12 }
  0x13   : > { %330 = vst [vmem:[#allocation2 + $0x80] sm:$0xff] %v4469_v0  ;;  %331 = vst [vmem:[#allocation2 + $0x88] sm:$0xff] %v4469_v0  ;;  %v4616_v20 = vld [vmem:[%s4561_s11 + $0x58] sm:$0xff]  ;;  %v4626_v25 = vld [vmem:[%s4561_s11 + $0x60] sm:$0xff]  ;;  %v5823_v34 = vunpack.c.l.s8.bf16 %v4598_v13  ;;  %v5825_v35 = vunpack.c.l.s8.bf16 %v4610_v18  ;;  %v5822_v36 = vunpack.c.l.s8.bf16 %v4613_v19  ;;  %v5820_v42 = vunpack.c.h.s8.bf16 %v4610_v18 }
  0x14   : > { %332 = vst [vmem:[#allocation2 + $0xe8] sm:$0xff] %v4469_v0  ;;  %333 = vst [vmem:[#allocation2 + $0xb8] sm:$0xff] %v4469_v0  ;;  %v4629_v26 = vld [vmem:[%s4561_s11 + $0x68] sm:$0xff]  ;;  %v4632_v27 = vld [vmem:[%s4561_s11 + $0x70] sm:$0xff]  ;;  %v5824_v37 = vunpack.c.l.s8.bf16 %v4616_v20  ;;  %v5814_v44 = vunpack.c.h.s8.bf16 %v4616_v20 }
  0x15   : > { %334 = vst [vmem:[#allocation2 + $0x60] sm:$0xff] %v4469_v0  ;;  %335 = vst [vmem:[#allocation2 + $0xf0] sm:$0xff] %v4469_v0  ;;  %v4639_v32 = vld [vmem:[%s4561_s11 + $0x78] sm:$0xff]  ;;  %v4642_v33 = vld [vmem:[%s4561_s11 + $0x80] sm:$0xff] }
  0x16   : > { %336 = vst [vmem:[#allocation2 + $0x8] sm:$0xff] %v4469_v0  ;;  %337 = vst [vmem:[#allocation2 + $0x78] sm:$0xff] %v4469_v0  ;;  %v4649_v38 = vld [vmem:[%s4561_s11 + $0x88] sm:$0xff]  ;;  %v4652_v39 = vld [vmem:[%s4561_s11 + $0x90] sm:$0xff] }
  0x17   : > { %338 = vst [vmem:[#allocation2 + $0x38] sm:$0xff] %v4469_v0  ;;  %339 = vst [vmem:[#allocation2 + $0x58] sm:$0xff] %v4469_v0  ;;  %v4655_v40 = vld [vmem:[%s4561_s11 + $0x98] sm:$0xff]  ;;  %v4667_v45 = vld [vmem:[%s4561_s11 + $0xa0] sm:$0xff] }
  0x18   : > { %340 = vst [vmem:[#allocation2 + $0x40] sm:$0xff] %v4469_v0  ;;  %341 = vst [vmem:[#allocation2 + $0xc8] sm:$0xff] %v4469_v0  ;;  %v4674_v50 = vld [vmem:[%s4561_s11 + $0xa8] sm:$0xff]  ;;  %v4677_v51 = vld [vmem:[%s4561_s11 + $0xb0] sm:$0xff] }
  0x19   : > { %342 = vst [vmem:[#allocation2 + $0xe0] sm:$0xff] %v4469_v0  ;;  %343 = vst [vmem:[#allocation2 + $0x90] sm:$0xff] %v4469_v0  ;;  %v4680_v52 = vld [vmem:[%s4561_s11 + $0xb8] sm:$0xff]  ;;  %v4687_v57 = vld [vmem:[%s4561_s11 + $0xc0] sm:$0xff] }
  0x1a   : > { %344 = vst [vmem:[#allocation2 + $0x70] sm:$0xff] %v4469_v0  ;;  %345 = vst [vmem:[#allocation2 + $0xc0] sm:$0xff] %v4469_v0  ;;  %v4694_v62 = vld [vmem:[%s4561_s11 + $0xc8] sm:$0xff]  ;;  %v4697_v63 = vld [vmem:[%s4561_s11 + $0xd0] sm:$0xff] }
  0x1b   : > { %346 = vst [vmem:[#allocation2 + $0xa8] sm:$0xff] %v4469_v0  ;;  %347 = vst [vmem:[#allocation2 + $0xd0] sm:$0xff] %v4469_v0  ;;  %v4707_v56 = vld [vmem:[%s4561_s11 + $0xe0] sm:$0xff]  ;;  %v4714_v46 = vld [vmem:[%s4561_s11 + $0xe8] sm:$0xff]  ;;  %v5817_v58 = vunpack.c.h.s8.bf16 %v4697_v63  ;;  %461 = sbr.rel (%p3347_p8) target bundleno = 393 (0x189), region = 52 }
  0x1c   : > { %348 = vst [vmem:[#allocation2 + $0x10] sm:$0xff] %v4469_v0  ;;  %349 = vst [vmem:[#allocation2 + $0x28] sm:$0xff] %v4469_v0  ;;  %v4717_v49 = vld [vmem:[%s4561_s11 + $0xf0] sm:$0xff]  ;;  %v4720_v55 = vld [vmem:[%s4561_s11 + $0xf8] sm:$0xff]  ;;  %v5816_v60 = vunpack.c.l.s8.bf16 %v4714_v46  ;;  %v5821_v47 = vunpack.c.h.s8.bf16 %v4714_v46 }
  0x1d   : > { %350 = vst [vmem:[#allocation2 + $0xa0] sm:$0xff] %v4469_v0  ;;  %351 = vst [vmem:[#allocation2 + $0xf8] sm:$0xff] %v4469_v0  ;;  %v5818_v61 = vunpack.c.l.s8.bf16 %v4717_v49  ;;  %v5815_v54 = vunpack.c.l.s8.bf16 %v4720_v55 }
  0x1e   : > { %352 = vst [vmem:[#allocation2 + $0x20] sm:$0xff] %v4469_v0  ;;  %353 = vst [vmem:[#allocation2 + $0x98] sm:$0xff] %v4469_v0  ;;  %v4700_v0 = vld [vmem:[%s4561_s11 + $0xd8] sm:$0xff] }
  0x1f   : > { %v5819_v59 = vunpack.c.h.s8.bf16 %v4700_v0 }
  0x20   : > { %v4233_v53 = vld [vmem:[%s5806_s1 + $0x78] sm:$0xff]   ;;  %782 = vmatprep.mubr.bf16.mxu0 %v5812_v8  ;;  %943 = vmatprep.mubr.bf16.mxu1 %v5813_v14  ;;  %v4237_v8 = vld [vmem:[%s5806_s1 + $0x70] sm:$0xff]  }
  0x21   : > { %v4234_v48 = vld [vmem:[%s5806_s1 + $0xf8] sm:$0xff]   ;;  %3582 = vmatprep.subr.bf16.mxu0 %v4233_v53  ;;  %v4238_v14 = vld [vmem:[%s5806_s1 + $0xf0] sm:$0xff]  }
  0x22   : > { %v4235_v43 = vld [vmem:[%s5806_s1 + $0x38] sm:$0xff]   ;;  %3694 = vmatprep.subr.bf16.mxu1 %v4234_v48  ;;  %v4239_v53 = vld [vmem:[%s5806_s1 + $0x30] sm:$0xff]  }
  0x23   : > { %v4236_v41 = vld [vmem:[%s5806_s1 + $0xb8] sm:$0xff]   ;;  %3583 = vmatpush3.bf16.msra.mxu0 %v4235_v43  ;;  %v4240_v48 = vld [vmem:[%s5806_s1 + $0xb0] sm:$0xff]   ;;  %v4241_v43 = vld [vmem:[%s5806_s1 + $0x68] sm:$0xff]  }
  0x24   : > { %3695 = vmatpush3.bf16.msra.mxu1 %v4236_v41  ;;  %3584 = vmatprep.subr.bf16.mxu0 %v4237_v8  ;;  %v4242_v41 = vld [vmem:[%s5806_s1 + $0xe8] sm:$0xff]  }
  0x25   : > { %3696 = vmatprep.subr.bf16.mxu1 %v4238_v14  ;;  %v4243_v8 = vld [vmem:[%s5806_s1 + $0x28] sm:$0xff]  }
  0x26   : > { %v4244_v14 = vld [vmem:[%s5806_s1 + $0xa8] sm:$0xff]  }
  0x27   : > { %3585 = vmatpush3.bf16.msra.mxu0 %v4239_v53  ;;  %v4245_v53 = vld [vmem:[%s5806_s1 + $0x60] sm:$0xff]  }
  0x28   : > { %3697 = vmatpush3.bf16.msra.mxu1 %v4240_v48  ;;  %3586 = vmatprep.subr.bf16.mxu0 %v4241_v43  ;;  %v4246_v48 = vld [vmem:[%s5806_s1 + $0xe0] sm:$0xff]  }
  0x29   : > { %3698 = vmatprep.subr.bf16.mxu1 %v4242_v41  ;;  %v4247_v43 = vld [vmem:[%s5806_s1 + $0x20] sm:$0xff]  }
  0x2a   : > { %v4248_v41 = vld [vmem:[%s5806_s1 + $0xa0] sm:$0xff]  }
  0x2b   : > { %3587 = vmatpush3.bf16.msra.mxu0 %v4243_v8  ;;  %v4249_v8 = vld [vmem:[%s5806_s1 + $0x58] sm:$0xff]  }
  0x2c   : > { %3699 = vmatpush3.bf16.msra.mxu1 %v4244_v14  ;;  %3588 = vmatprep.subr.bf16.mxu0 %v4245_v53  ;;  %v4250_v14 = vld [vmem:[%s5806_s1 + $0xd8] sm:$0xff]  }
  0x2d   : > { %3700 = vmatprep.subr.bf16.mxu1 %v4246_v48  ;;  %v4251_v53 = vld [vmem:[%s5806_s1 + $0x18] sm:$0xff]  }
  0x2e   : > { %v4252_v48 = vld [vmem:[%s5806_s1 + $0x98] sm:$0xff]  }
  0x2f   : > { %3589 = vmatpush3.bf16.msra.mxu0 %v4247_v43  ;;  %v4253_v43 = vld [vmem:[%s5806_s1 + $0x50] sm:$0xff]  }
  0x30   : > { %3701 = vmatpush3.bf16.msra.mxu1 %v4248_v41  ;;  %3590 = vmatprep.subr.bf16.mxu0 %v4249_v8  ;;  %v4254_v41 = vld [vmem:[%s5806_s1 + $0xd0] sm:$0xff]  }
  0x31   : > { %3702 = vmatprep.subr.bf16.mxu1 %v4250_v14  ;;  %v4255_v8 = vld [vmem:[%s5806_s1 + $0x10] sm:$0xff]  }
  0x32   : > { %v4256_v14 = vld [vmem:[%s5806_s1 + $0x90] sm:$0xff]  }
  0x33   : > { %3591 = vmatpush3.bf16.msra.mxu0 %v4251_v53  ;;  %v4257_v53 = vld [vmem:[%s5806_s1 + $0x48] sm:$0xff]  }
  0x34   : > { %3703 = vmatpush3.bf16.msra.mxu1 %v4252_v48  ;;  %3592 = vmatprep.subr.bf16.mxu0 %v4253_v43  ;;  %v4258_v48 = vld [vmem:[%s5806_s1 + $0xc8] sm:$0xff]  }
  0x35   : > { %3704 = vmatprep.subr.bf16.mxu1 %v4254_v41  ;;  %v4259_v43 = vld [vmem:[%s5806_s1 + $0x8] sm:$0xff]  }
  0x36   : > { %v4260_v41 = vld [vmem:[%s5806_s1 + $0x88] sm:$0xff]  }
  0x37   : > { %3593 = vmatpush3.bf16.msra.mxu0 %v4255_v8  ;;  %v4261_v8 = vld [vmem:[%s5806_s1 + $0x40] sm:$0xff]  }
  0x38   : > { %3705 = vmatpush3.bf16.msra.mxu1 %v4256_v14  ;;  %3594 = vmatprep.subr.bf16.mxu0 %v4257_v53  ;;  %v4262_v14 = vld [vmem:[%s5806_s1 + $0xc0] sm:$0xff]  }
  0x39   : > { %3706 = vmatprep.subr.bf16.mxu1 %v4258_v48  ;;  %v4263_v53 = vld [vmem:[%s5806_s1] sm:$0xff]  }
  0x3a   : > { %v4264_v48 = vld [vmem:[%s5806_s1 + $0x80] sm:$0xff]  }
  0x3b   : > { %3595 = vmatpush3.bf16.msra.mxu0 %v4259_v43  ;;  %v5833_v43 = vunpack.c.h.s8.bf16 %v4598_v13 }
  0x3c   : > { %3707 = vmatpush3.bf16.msra.mxu1 %v4260_v41  ;;  %3596 = vmatprep.subr.bf16.mxu0 %v4261_v8  ;;  %v5834_v41 = vunpack.c.h.s8.bf16 %v4613_v19  ;;  %v5835_v8 = vunpack.c.l.s8.bf16 %v4629_v26 }
  0x3d   : > { %3708 = vmatprep.subr.bf16.mxu1 %v4262_v14  ;;  %v5836_v14 = vunpack.c.l.s8.bf16 %v4639_v32 }
  0x3f   : > { %3597 = vmatpush3.bf16.msra.mxu0 %v4263_v53  ;;  %v5837_v53 = vunpack.c.l.s8.bf16 %v4626_v25 }
  0x40   : > { %3709 = vmatpush3.bf16.msra.mxu1 %v4264_v48  ;;  %v5838_v48 = vunpack.c.l.s8.bf16 %v4632_v27 }
  0x42   : > { %783 = vmatmul.mubr.bf16.vlgmr.msra.gmra.mxu0 %v394_v7 }
  0x43   : > { %944 = vmatmul.mubr.bf16.vlgmr.msra.gmra.mxu1 %v396_v9  ;;  %790 = vmatprep.mubr.bf16.mxu0 %v399_v15 }
  0x44   : > { %951 = vmatprep.mubr.bf16.mxu1 %v401_v17 }
  0x4a   : > { %791 = vmatmul.mubr.bf16.gmra.mxu0 %v398_v10 }
  0x4b   : > { %952 = vmatmul.mubr.bf16.gmra.mxu1 %v400_v16  ;;  %798 = vmatprep.mubr.bf16.mxu0 %v403_v22 }
  0x4c   : > { %959 = vmatprep.mubr.bf16.mxu1 %v405_v24 }
  0x52   : > { %799 = vmatmul.mubr.bf16.gmra.mxu0 %v5831_v21 }
  0x53   : > { %960 = vmatmul.mubr.bf16.gmra.mxu1 %v5830_v23  ;;  %806 = vmatprep.mubr.bf16.mxu0 %v5829_v29 }
  0x54   : > { %967 = vmatprep.mubr.bf16.mxu1 %v5828_v31 }
  0x5a   : > { %807 = vmatmul.mubr.bf16.gmra.mxu0 %v5827_v28 }
  0x5b   : > { %968 = vmatmul.mubr.bf16.gmra.mxu1 %v5826_v30  ;;  %814 = vmatprep.mubr.bf16.mxu0 %v5825_v35 }
  0x5c   : > { %975 = vmatprep.mubr.bf16.mxu1 %v5824_v37 }
  0x62   : > { %815 = vmatmul.mubr.bf16.gmra.mxu0 %v5823_v34 }
  0x63   : > { %976 = vmatmul.mubr.bf16.gmra.mxu1 %v5822_v36  ;;  %822 = vmatprep.mubr.bf16.mxu0 %v5820_v42 }
  0x64   : > { %983 = vmatprep.mubr.bf16.mxu1 %v5814_v44  ;;  %v5839_v44 = vunpack.c.h.s8.bf16 %v4629_v26 }
  0x6a   : > { %823 = vmatmul.mubr.bf16.gmra.mxu0 %v5833_v43  ;;  %v5840_v43 = vunpack.c.h.s8.bf16 %v4639_v32 }
  0x6b   : > { %984 = vmatmul.mubr.bf16.gmra.mxu1 %v5834_v41  ;;  %830 = vmatprep.mubr.bf16.mxu0 %v5835_v8  ;;  %v5841_v41 = vunpack.c.h.s8.bf16 %v4626_v25  ;;  %v5842_v8 = vunpack.c.h.s8.bf16 %v4632_v27 }
  0x6c   : > { %991 = vmatprep.mubr.bf16.mxu1 %v5836_v14  ;;  %v5843_v14 = vunpack.c.l.s8.bf16 %v4649_v38 }
  0x72   : > { %831 = vmatmul.mubr.bf16.gmra.mxu0 %v5837_v53  ;;  %v5844_v53 = vunpack.c.l.s8.bf16 %v4655_v40 }
  0x73   : > { %992 = vmatmul.mubr.bf16.gmra.mxu1 %v5838_v48  ;;  %838 = vmatprep.mubr.bf16.mxu0 %v5839_v44  ;;  %v5845_v48 = vunpack.c.l.s8.bf16 %v4642_v33  ;;  %v5846_v44 = vunpack.c.l.s8.bf16 %v4652_v39 }
  0x74   : > { %999 = vmatprep.mubr.bf16.mxu1 %v5840_v43  ;;  %v5847_v43 = vunpack.c.h.s8.bf16 %v4649_v38 }
  0x7a   : > { %839 = vmatmul.mubr.bf16.gmra.mxu0 %v5841_v41  ;;  %v5848_v41 = vunpack.c.h.s8.bf16 %v4655_v40 }
  0x7b   : > { %1000 = vmatmul.mubr.bf16.gmra.mxu1 %v5842_v8  ;;  %846 = vmatprep.mubr.bf16.mxu0 %v5843_v14  ;;  %v5849_v8 = vunpack.c.h.s8.bf16 %v4642_v33  ;;  %v5850_v14 = vunpack.c.h.s8.bf16 %v4652_v39 }
  0x7c   : > { %1007 = vmatprep.mubr.bf16.mxu1 %v5844_v53  ;;  %v5851_v53 = vunpack.c.l.s8.bf16 %v4674_v50 }
  0x82   : > { %847 = vmatmul.mubr.bf16.gmra.mxu0 %v5845_v48  ;;  %v5852_v48 = vunpack.c.l.s8.bf16 %v4680_v52 }
  0x83   : > { %1008 = vmatmul.mubr.bf16.gmra.mxu1 %v5846_v44  ;;  %854 = vmatprep.mubr.bf16.mxu0 %v5847_v43  ;;  %v5853_v44 = vunpack.c.l.s8.bf16 %v4667_v45  ;;  %v5854_v43 = vunpack.c.l.s8.bf16 %v4677_v51 }
  0x84   : > { %1015 = vmatprep.mubr.bf16.mxu1 %v5848_v41  ;;  %v5855_v41 = vunpack.c.h.s8.bf16 %v4674_v50 }
  0x8a   : > { %855 = vmatmul.mubr.bf16.gmra.mxu0 %v5849_v8  ;;  %v5856_v8 = vunpack.c.h.s8.bf16 %v4680_v52 }
  0x8b   : > { %1016 = vmatmul.mubr.bf16.gmra.mxu1 %v5850_v14  ;;  %862 = vmatprep.mubr.bf16.mxu0 %v5851_v53  ;;  %v5857_v14 = vunpack.c.h.s8.bf16 %v4667_v45  ;;  %v5858_v53 = vunpack.c.h.s8.bf16 %v4677_v51 }
  0x8c   : > { %1023 = vmatprep.mubr.bf16.mxu1 %v5852_v48  ;;  %v5859_v48 = vunpack.c.l.s8.bf16 %v4694_v62 }
  0x92   : > { %863 = vmatmul.mubr.bf16.gmra.mxu0 %v5853_v44  ;;  %v5860_v44 = vunpack.c.l.s8.bf16 %v4700_v0 }
  0x93   : > { %1024 = vmatmul.mubr.bf16.gmra.mxu1 %v5854_v43  ;;  %870 = vmatprep.mubr.bf16.mxu0 %v5855_v41  ;;  %v5861_v43 = vunpack.c.l.s8.bf16 %v4687_v57  ;;  %v5862_v41 = vunpack.c.l.s8.bf16 %v4697_v63 }
  0x94   : > { %1031 = vmatprep.mubr.bf16.mxu1 %v5856_v8  ;;  %v5863_v8 = vunpack.c.h.s8.bf16 %v4694_v62 }
  0x9a   : > { %871 = vmatmul.mubr.bf16.gmra.mxu0 %v5857_v14  ;;  %v5864_v14 = vunpack.c.h.s8.bf16 %v4687_v57 }
  0x9b   : > { %1032 = vmatmul.mubr.bf16.gmra.mxu1 %v5858_v53  ;;  %878 = vmatprep.mubr.bf16.mxu0 %v5859_v48  ;;  %v5865_v53 = vunpack.c.l.s8.bf16 %v4707_v56  ;;  %v5866_v48 = vunpack.c.h.s8.bf16 %v4720_v55 }
  0x9c   : > { %1039 = vmatprep.mubr.bf16.mxu1 %v5860_v44  ;;  %v5867_v44 = vunpack.c.h.s8.bf16 %v4707_v56 }
  0xa2   : > { %879 = vmatmul.mubr.bf16.gmra.mxu0 %v5861_v43  ;;  %v5868_v43 = vunpack.c.h.s8.bf16 %v4717_v49 }
  0xa3   : > { %1040 = vmatmul.mubr.bf16.gmra.mxu1 %v5862_v41  ;;  %886 = vmatprep.mubr.bf16.mxu0 %v5863_v8 }
  0xa4   : > { %1047 = vmatprep.mubr.bf16.mxu1 %v5819_v59 }
  0xaa   : > { %887 = vmatmul.mubr.bf16.gmra.mxu0 %v5864_v14 }
  0xab   : > { %1048 = vmatmul.mubr.bf16.gmra.mxu1 %v5817_v58  ;;  %894 = vmatprep.mubr.bf16.mxu0 %v5816_v60 }
  0xac   : > { %1055 = vmatprep.mubr.bf16.mxu1 %v5815_v54 }
  0xb2   : > { %895 = vmatmul.mubr.bf16.gmra.mxu0 %v5865_v53 }
  0xb3   : > { %1056 = vmatmul.mubr.bf16.gmra.mxu1 %v5818_v61  ;;  %902 = vmatprep.mubr.bf16.mxu0 %v5821_v47  ;;  %v462_v61 = vld [vmem:[#allocation2 + $0xb0] sm:$0xff] }
  0xb4   : > { %1063 = vmatprep.mubr.bf16.mxu1 %v5866_v48 }
  0xba   : > { %903 = vmatmul.mubr.bf16.gmra.mxu0 %v5867_v44  ;;  %v463_v44 = vld [vmem:[#allocation2] sm:$0xff] }
  0xbb   : > { %1064 = vmatmul.mubr.bf16.gmra.mxu1 %v5868_v43 }
 0x102   : > { %v3598_v41 = vpop.f32.mrf.mxu0 }
 0x103   : > { %v3710_v8 = vpop.f32.mrf.mxu1 }
 0x104   : > { %v3599_v14 = vpop.f32.mrf.mxu0 }
 0x105   : > { %v3600_v54 = vadd.f32 %v3599_v14, %v3598_v41  ;;  %v3711_v53 = vpop.f32.mrf.mxu1 }
 0x106   : > { %v3712_v60 = vadd.f32 %v3711_v53, %v3710_v8  ;;  %v3601_v58 = vpop.f32.mrf.mxu0  ;;  %v464_v53 = vld [vmem:[#allocation2 + $0xd8] sm:$0xff] }
 0x107   : > { %v3713_v59 = vpop.f32.mrf.mxu1 }
 0x108   : > { %v946_v42 = vadd.f32 %v3712_v60, %v3600_v54  ;;  %v3602_v47 = vpop.f32.mrf.mxu0 }
 0x109   : > { %v3603_v36 = vadd.f32 %v3602_v47, %v3601_v58  ;;  %v3714_v34 = vpop.f32.mrf.mxu1 }
 0x10a   : > { %v1072_v48 = vadd.f32 %v946_v42, %v462_v61  ;;  %v3715_v37 = vadd.f32 %v3714_v34, %v3713_v59  ;;  %v3604_v35 = vpop.f32.mrf.mxu0  ;;  %v465_v61 = vld [vmem:[#allocation2 + $0x18] sm:$0xff] }
 0x10b   : > { %v3716_v30 = vpop.f32.mrf.mxu1 }
 0x10c   : > { %1104 = vst [vmem:[#allocation2 + $0xb0] sm:$0xff] %v1072_v48  ;;  %v949_v43 = vadd.f32 %v3715_v37, %v3603_v36  ;;  %v3605_v28 = vpop.f32.mrf.mxu0 }
 0x10d   : > { %v3606_v31 = vadd.f32 %v3605_v28, %v3604_v35  ;;  %v3717_v29 = vpop.f32.mrf.mxu1 }
 0x10e   : > { %v1073_v41 = vadd.f32 %v949_v43, %v463_v44  ;;  %v3718_v14 = vadd.f32 %v3717_v29, %v3716_v30  ;;  %v3607_v8 = vpop.f32.mrf.mxu0  ;;  %v466_v44 = vld [vmem:[#allocation2 + $0x50] sm:$0xff] }
 0x10f   : > { %v3719_v23 = vpop.f32.mrf.mxu1 }
 0x110   : > { %1105 = vst [vmem:[#allocation2] sm:$0xff] %v1073_v41  ;;  %v954_v54 = vadd.f32 %v3718_v14, %v3606_v31  ;;  %v3608_v60 = vpop.f32.mrf.mxu0 }
 0x111   : > { %v3609_v47 = vadd.f32 %v3608_v60, %v3607_v8  ;;  %v3720_v58 = vpop.f32.mrf.mxu1  ;;  %v467_v60 = vld [vmem:[#allocation2 + $0x68] sm:$0xff] }
 0x112   : > { %v1074_v42 = vadd.f32 %v954_v54, %v464_v53  ;;  %v3721_v34 = vadd.f32 %v3720_v58, %v3719_v23  ;;  %v3610_v59 = vpop.f32.mrf.mxu0 }
 0x113   : > { %v3722_v21 = vpop.f32.mrf.mxu1 }
 0x114   : > { %1106 = vst [vmem:[#allocation2 + $0xd8] sm:$0xff] %v1074_v42  ;;  %v957_v36 = vadd.f32 %v3721_v34, %v3609_v47  ;;  %v3611_v37 = vpop.f32.mrf.mxu0 }
 0x115   : > { %v3612_v28 = vadd.f32 %v3611_v37, %v3610_v59  ;;  %v3723_v35 = vpop.f32.mrf.mxu1  ;;  %v468_v37 = vld [vmem:[#allocation2 + $0x30] sm:$0xff] }
 0x116   : > { %v1075_v48 = vadd.f32 %v957_v36, %v465_v61  ;;  %v3724_v29 = vadd.f32 %v3723_v35, %v3722_v21  ;;  %v3613_v30 = vpop.f32.mrf.mxu0 }
 0x117   : > { %v3725_v43 = vpop.f32.mrf.mxu1 }
 0x118   : > { %1107 = vst [vmem:[#allocation2 + $0x18] sm:$0xff] %v1075_v48  ;;  %v962_v31 = vadd.f32 %v3724_v29, %v3612_v28  ;;  %v3614_v41 = vpop.f32.mrf.mxu0 }
 0x119   : > { %v3615_v14 = vadd.f32 %v3614_v41, %v3613_v30  ;;  %v3726_v8 = vpop.f32.mrf.mxu1  ;;  %v469_v41 = vld [vmem:[#allocation2 + $0x48] sm:$0xff] }
 0x11a   : > { %v1076_v53 = vadd.f32 %v962_v31, %v466_v44  ;;  %v3727_v23 = vadd.f32 %v3726_v8, %v3725_v43  ;;  %v3616_v54 = vpop.f32.mrf.mxu0 }
 0x11b   : > { %v3728_v58 = vpop.f32.mrf.mxu1 }
 0x11c   : > { %1108 = vst [vmem:[#allocation2 + $0x50] sm:$0xff] %v1076_v53  ;;  %v965_v47 = vadd.f32 %v3727_v23, %v3615_v14  ;;  %v3617_v42 = vpop.f32.mrf.mxu0 }
 0x11d   : > { %v3618_v34 = vadd.f32 %v3617_v42, %v3616_v54  ;;  %v3729_v59 = vpop.f32.mrf.mxu1  ;;  %v470_v42 = vld [vmem:[#allocation2 + $0x80] sm:$0xff] }
 0x11e   : > { %v1077_v61 = vadd.f32 %v965_v47, %v467_v60  ;;  %v3730_v21 = vadd.f32 %v3729_v59, %v3728_v58  ;;  %v3619_v36 = vpop.f32.mrf.mxu0 }
 0x11f   : > { %v3731_v35 = vpop.f32.mrf.mxu1 }
 0x120   : > { %1109 = vst [vmem:[#allocation2 + $0x68] sm:$0xff] %v1077_v61  ;;  %v970_v28 = vadd.f32 %v3730_v21, %v3618_v34  ;;  %v3620_v48 = vpop.f32.mrf.mxu0 }
 0x121   : > { %v3621_v29 = vadd.f32 %v3620_v48, %v3619_v36  ;;  %v3732_v30 = vpop.f32.mrf.mxu1  ;;  %v471_v48 = vld [vmem:[#allocation2 + $0x88] sm:$0xff] }
 0x122   : > { %v1078_v44 = vadd.f32 %v970_v28, %v468_v37  ;;  %v3733_v43 = vadd.f32 %v3732_v30, %v3731_v35  ;;  %v3622_v31 = vpop.f32.mrf.mxu0 }
 0x123   : > { %v3734_v8 = vpop.f32.mrf.mxu1 }
 0x124   : > { %1110 = vst [vmem:[#allocation2 + $0x30] sm:$0xff] %v1078_v44  ;;  %v973_v14 = vadd.f32 %v3733_v43, %v3621_v29  ;;  %v3623_v53 = vpop.f32.mrf.mxu0 }
 0x125   : > { %v3624_v23 = vadd.f32 %v3623_v53, %v3622_v31  ;;  %v3735_v54 = vpop.f32.mrf.mxu1  ;;  %v472_v53 = vld [vmem:[#allocation2 + $0xe8] sm:$0xff] }
 0x126   : > { %v1079_v60 = vadd.f32 %v973_v14, %v469_v41  ;;  %v3736_v58 = vadd.f32 %v3735_v54, %v3734_v8  ;;  %v3625_v47 = vpop.f32.mrf.mxu0 }
 0x127   : > { %v3737_v59 = vpop.f32.mrf.mxu1 }
 0x128   : > { %1111 = vst [vmem:[#allocation2 + $0x48] sm:$0xff] %v1079_v60  ;;  %v978_v34 = vadd.f32 %v3736_v58, %v3624_v23  ;;  %v3626_v61 = vpop.f32.mrf.mxu0 }
 0x129   : > { %v3627_v21 = vadd.f32 %v3626_v61, %v3625_v47  ;;  %v3738_v36 = vpop.f32.mrf.mxu1  ;;  %v473_v61 = vld [vmem:[#allocation2 + $0xb8] sm:$0xff] }
 0x12a   : > { %v1080_v37 = vadd.f32 %v978_v34, %v470_v42  ;;  %v3739_v35 = vadd.f32 %v3738_v36, %v3737_v59  ;;  %v3628_v28 = vpop.f32.mrf.mxu0 }
 0x12b   : > { %v3740_v30 = vpop.f32.mrf.mxu1 }
 0x12c   : > { %1112 = vst [vmem:[#allocation2 + $0x80] sm:$0xff] %v1080_v37  ;;  %v981_v29 = vadd.f32 %v3739_v35, %v3627_v21  ;;  %v3629_v44 = vpop.f32.mrf.mxu0 }
 0x12d   : > { %v3630_v43 = vadd.f32 %v3629_v44, %v3628_v28  ;;  %v3741_v31 = vpop.f32.mrf.mxu1  ;;  %v474_v44 = vld [vmem:[#allocation2 + $0x60] sm:$0xff] }
 0x12e   : > { %v1081_v41 = vadd.f32 %v981_v29, %v471_v48  ;;  %v3742_v8 = vadd.f32 %v3741_v31, %v3740_v30  ;;  %v3631_v14 = vpop.f32.mrf.mxu0 }
 0x12f   : > { %v3743_v54 = vpop.f32.mrf.mxu1 }
 0x130   : > { %1113 = vst [vmem:[#allocation2 + $0x88] sm:$0xff] %v1081_v41  ;;  %v986_v23 = vadd.f32 %v3742_v8, %v3630_v43  ;;  %v3632_v60 = vpop.f32.mrf.mxu0 }
 0x131   : > { %v3633_v58 = vadd.f32 %v3632_v60, %v3631_v14  ;;  %v3744_v47 = vpop.f32.mrf.mxu1  ;;  %v475_v60 = vld [vmem:[#allocation2 + $0xf0] sm:$0xff] }
 0x132   : > { %v1082_v42 = vadd.f32 %v986_v23, %v472_v53  ;;  %v3745_v59 = vadd.f32 %v3744_v47, %v3743_v54  ;;  %v3634_v34 = vpop.f32.mrf.mxu0 }
 0x133   : > { %v3746_v36 = vpop.f32.mrf.mxu1 }
 0x134   : > { %1114 = vst [vmem:[#allocation2 + $0xe8] sm:$0xff] %v1082_v42  ;;  %v989_v21 = vadd.f32 %v3745_v59, %v3633_v58  ;;  %v3635_v37 = vpop.f32.mrf.mxu0 }
 0x135   : > { %v3636_v35 = vadd.f32 %v3635_v37, %v3634_v34  ;;  %v3747_v28 = vpop.f32.mrf.mxu1  ;;  %v476_v37 = vld [vmem:[#allocation2 + $0x8] sm:$0xff] }
 0x136   : > { %v1083_v48 = vadd.f32 %v989_v21, %v473_v61  ;;  %v3748_v30 = vadd.f32 %v3747_v28, %v3746_v36  ;;  %v3637_v29 = vpop.f32.mrf.mxu0 }
 0x137   : > { %v3749_v31 = vpop.f32.mrf.mxu1 }
 0x138   : > { %1115 = vst [vmem:[#allocation2 + $0xb8] sm:$0xff] %v1083_v48  ;;  %v994_v43 = vadd.f32 %v3748_v30, %v3636_v35  ;;  %v3638_v41 = vpop.f32.mrf.mxu0 }
 0x139   : > { %v3639_v8 = vadd.f32 %v3638_v41, %v3637_v29  ;;  %v3750_v14 = vpop.f32.mrf.mxu1  ;;  %v477_v41 = vld [vmem:[#allocation2 + $0x78] sm:$0xff] }
 0x13a   : > { %v1084_v53 = vadd.f32 %v994_v43, %v474_v44  ;;  %v3751_v54 = vadd.f32 %v3750_v14, %v3749_v31  ;;  %v3640_v23 = vpop.f32.mrf.mxu0 }
 0x13b   : > { %v3752_v47 = vpop.f32.mrf.mxu1 }
 0x13c   : > { %1116 = vst [vmem:[#allocation2 + $0x60] sm:$0xff] %v1084_v53  ;;  %v997_v58 = vadd.f32 %v3751_v54, %v3639_v8  ;;  %v3641_v42 = vpop.f32.mrf.mxu0 }
 0x13d   : > { %v3642_v59 = vadd.f32 %v3641_v42, %v3640_v23  ;;  %v3753_v34 = vpop.f32.mrf.mxu1  ;;  %v478_v42 = vld [vmem:[#allocation2 + $0x38] sm:$0xff] }
 0x13e   : > { %v1085_v61 = vadd.f32 %v997_v58, %v475_v60  ;;  %v3754_v36 = vadd.f32 %v3753_v34, %v3752_v47  ;;  %v3643_v21 = vpop.f32.mrf.mxu0 }
 0x13f   : > { %v3755_v28 = vpop.f32.mrf.mxu1 }
 0x140   : > { %1117 = vst [vmem:[#allocation2 + $0xf0] sm:$0xff] %v1085_v61  ;;  %v1002_v35 = vadd.f32 %v3754_v36, %v3642_v59  ;;  %v3644_v48 = vpop.f32.mrf.mxu0 }
 0x141   : > { %v3645_v30 = vadd.f32 %v3644_v48, %v3643_v21  ;;  %v3756_v29 = vpop.f32.mrf.mxu1  ;;  %v479_v48 = vld [vmem:[#allocation2 + $0x58] sm:$0xff] }
 0x142   : > { %v1086_v44 = vadd.f32 %v1002_v35, %v476_v37  ;;  %v3757_v31 = vadd.f32 %v3756_v29, %v3755_v28  ;;  %v3646_v43 = vpop.f32.mrf.mxu0 }
 0x143   : > { %v3758_v14 = vpop.f32.mrf.mxu1 }
 0x144   : > { %1118 = vst [vmem:[#allocation2 + $0x8] sm:$0xff] %v1086_v44  ;;  %v1005_v8 = vadd.f32 %v3757_v31, %v3645_v30  ;;  %v3647_v53 = vpop.f32.mrf.mxu0 }
 0x145   : > { %v3648_v54 = vadd.f32 %v3647_v53, %v3646_v43  ;;  %v3759_v23 = vpop.f32.mrf.mxu1  ;;  %v480_v53 = vld [vmem:[#allocation2 + $0x40] sm:$0xff] }
 0x146   : > { %v1087_v60 = vadd.f32 %v1005_v8, %v477_v41  ;;  %v3760_v47 = vadd.f32 %v3759_v23, %v3758_v14  ;;  %v3649_v58 = vpop.f32.mrf.mxu0 }
 0x147   : > { %v3761_v34 = vpop.f32.mrf.mxu1 }
 0x148   : > { %1119 = vst [vmem:[#allocation2 + $0x78] sm:$0xff] %v1087_v60  ;;  %v1010_v59 = vadd.f32 %v3760_v47, %v3648_v54  ;;  %v3650_v61 = vpop.f32.mrf.mxu0 }
 0x149   : > { %v3651_v36 = vadd.f32 %v3650_v61, %v3649_v58  ;;  %v3762_v21 = vpop.f32.mrf.mxu1  ;;  %v481_v61 = vld [vmem:[#allocation2 + $0xc8] sm:$0xff] }
 0x14a   : > { %v1088_v37 = vadd.f32 %v1010_v59, %v478_v42  ;;  %v3763_v28 = vadd.f32 %v3762_v21, %v3761_v34  ;;  %v3652_v35 = vpop.f32.mrf.mxu0 }
 0x14b   : > { %v3764_v29 = vpop.f32.mrf.mxu1 }
 0x14c   : > { %1120 = vst [vmem:[#allocation2 + $0x38] sm:$0xff] %v1088_v37  ;;  %v1013_v30 = vadd.f32 %v3763_v28, %v3651_v36  ;;  %v3653_v44 = vpop.f32.mrf.mxu0 }
 0x14d   : > { %v3654_v31 = vadd.f32 %v3653_v44, %v3652_v35  ;;  %v3765_v43 = vpop.f32.mrf.mxu1  ;;  %v482_v44 = vld [vmem:[#allocation2 + $0xe0] sm:$0xff] }
 0x14e   : > { %v1089_v41 = vadd.f32 %v1013_v30, %v479_v48  ;;  %v3766_v14 = vadd.f32 %v3765_v43, %v3764_v29  ;;  %v3655_v8 = vpop.f32.mrf.mxu0 }
 0x14f   : > { %v3767_v23 = vpop.f32.mrf.mxu1 }
 0x150   : > { %1121 = vst [vmem:[#allocation2 + $0x58] sm:$0xff] %v1089_v41  ;;  %v1018_v54 = vadd.f32 %v3766_v14, %v3654_v31  ;;  %v3656_v60 = vpop.f32.mrf.mxu0 }
 0x151   : > { %v3657_v47 = vadd.f32 %v3656_v60, %v3655_v8  ;;  %v3768_v58 = vpop.f32.mrf.mxu1  ;;  %v483_v60 = vld [vmem:[#allocation2 + $0x90] sm:$0xff] }
 0x152   : > { %v1090_v42 = vadd.f32 %v1018_v54, %v480_v53  ;;  %v3769_v34 = vadd.f32 %v3768_v58, %v3767_v23  ;;  %v3658_v59 = vpop.f32.mrf.mxu0 }
 0x153   : > { %v3770_v21 = vpop.f32.mrf.mxu1 }
 0x154   : > { %1122 = vst [vmem:[#allocation2 + $0x40] sm:$0xff] %v1090_v42  ;;  %v1021_v36 = vadd.f32 %v3769_v34, %v3657_v47  ;;  %v3659_v37 = vpop.f32.mrf.mxu0 }
 0x155   : > { %v3660_v28 = vadd.f32 %v3659_v37, %v3658_v59  ;;  %v3771_v35 = vpop.f32.mrf.mxu1  ;;  %v484_v37 = vld [vmem:[#allocation2 + $0x70] sm:$0xff] }
 0x156   : > { %v1091_v48 = vadd.f32 %v1021_v36, %v481_v61  ;;  %v3772_v29 = vadd.f32 %v3771_v35, %v3770_v21  ;;  %v3661_v30 = vpop.f32.mrf.mxu0 }
 0x157   : > { %v3773_v43 = vpop.f32.mrf.mxu1 }
 0x158   : > { %1123 = vst [vmem:[#allocation2 + $0xc8] sm:$0xff] %v1091_v48  ;;  %v1026_v31 = vadd.f32 %v3772_v29, %v3660_v28  ;;  %v3662_v41 = vpop.f32.mrf.mxu0 }
 0x159   : > { %v3663_v14 = vadd.f32 %v3662_v41, %v3661_v30  ;;  %v3774_v8 = vpop.f32.mrf.mxu1  ;;  %v485_v41 = vld [vmem:[#allocation2 + $0xc0] sm:$0xff] }
 0x15a   : > { %v1092_v53 = vadd.f32 %v1026_v31, %v482_v44  ;;  %v3775_v23 = vadd.f32 %v3774_v8, %v3773_v43  ;;  %v3664_v54 = vpop.f32.mrf.mxu0 }
 0x15b   : > { %v3776_v58 = vpop.f32.mrf.mxu1 }
 0x15c   : > { %1124 = vst [vmem:[#allocation2 + $0xe0] sm:$0xff] %v1092_v53  ;;  %v1029_v47 = vadd.f32 %v3775_v23, %v3663_v14  ;;  %v3665_v42 = vpop.f32.mrf.mxu0 }
 0x15d   : > { %v3666_v34 = vadd.f32 %v3665_v42, %v3664_v54  ;;  %v3777_v59 = vpop.f32.mrf.mxu1  ;;  %v486_v42 = vld [vmem:[#allocation2 + $0xa8] sm:$0xff] }
 0x15e   : > { %v1093_v61 = vadd.f32 %v1029_v47, %v483_v60  ;;  %v3778_v21 = vadd.f32 %v3777_v59, %v3776_v58  ;;  %v3667_v36 = vpop.f32.mrf.mxu0 }
 0x15f   : > { %v3779_v35 = vpop.f32.mrf.mxu1 }
 0x160   : > { %1125 = vst [vmem:[#allocation2 + $0x90] sm:$0xff] %v1093_v61  ;;  %v1034_v28 = vadd.f32 %v3778_v21, %v3666_v34  ;;  %v3668_v48 = vpop.f32.mrf.mxu0 }
 0x161   : > { %v3669_v29 = vadd.f32 %v3668_v48, %v3667_v36  ;;  %v3780_v30 = vpop.f32.mrf.mxu1  ;;  %v487_v48 = vld [vmem:[#allocation2 + $0xd0] sm:$0xff] }
 0x162   : > { %v1094_v44 = vadd.f32 %v1034_v28, %v484_v37  ;;  %v3781_v43 = vadd.f32 %v3780_v30, %v3779_v35  ;;  %v3670_v31 = vpop.f32.mrf.mxu0 }
 0x163   : > { %v3782_v8 = vpop.f32.mrf.mxu1 }
 0x164   : > { %1126 = vst [vmem:[#allocation2 + $0x70] sm:$0xff] %v1094_v44  ;;  %v1037_v14 = vadd.f32 %v3781_v43, %v3669_v29  ;;  %v3671_v53 = vpop.f32.mrf.mxu0 }
 0x165   : > { %v3672_v23 = vadd.f32 %v3671_v53, %v3670_v31  ;;  %v3783_v54 = vpop.f32.mrf.mxu1  ;;  %v488_v53 = vld [vmem:[#allocation2 + $0x10] sm:$0xff] }
 0x166   : > { %v1095_v60 = vadd.f32 %v1037_v14, %v485_v41  ;;  %v3784_v58 = vadd.f32 %v3783_v54, %v3782_v8  ;;  %v3673_v47 = vpop.f32.mrf.mxu0 }
 0x167   : > { %v3785_v59 = vpop.f32.mrf.mxu1 }
 0x168   : > { %1127 = vst [vmem:[#allocation2 + $0xc0] sm:$0xff] %v1095_v60  ;;  %v1042_v34 = vadd.f32 %v3784_v58, %v3672_v23  ;;  %v3674_v61 = vpop.f32.mrf.mxu0 }
 0x169   : > { %v3675_v21 = vadd.f32 %v3674_v61, %v3673_v47  ;;  %v3786_v36 = vpop.f32.mrf.mxu1  ;;  %v489_v61 = vld [vmem:[#allocation2 + $0x28] sm:$0xff] }
 0x16a   : > { %v1096_v37 = vadd.f32 %v1042_v34, %v486_v42  ;;  %v3787_v35 = vadd.f32 %v3786_v36, %v3785_v59  ;;  %v3676_v28 = vpop.f32.mrf.mxu0 }
 0x16b   : > { %v3788_v30 = vpop.f32.mrf.mxu1 }
 0x16c   : > { %1128 = vst [vmem:[#allocation2 + $0xa8] sm:$0xff] %v1096_v37  ;;  %v1045_v29 = vadd.f32 %v3787_v35, %v3675_v21  ;;  %v3677_v44 = vpop.f32.mrf.mxu0 }
 0x16d   : > { %v3678_v43 = vadd.f32 %v3677_v44, %v3676_v28  ;;  %v3789_v31 = vpop.f32.mrf.mxu1  ;;  %v490_v44 = vld [vmem:[#allocation2 + $0xa0] sm:$0xff] }
 0x16e   : > { %v1097_v41 = vadd.f32 %v1045_v29, %v487_v48  ;;  %v3790_v8 = vadd.f32 %v3789_v31, %v3788_v30  ;;  %v3679_v14 = vpop.f32.mrf.mxu0 }
 0x16f   : > { %v3791_v54 = vpop.f32.mrf.mxu1 }
 0x170   : > { %1129 = vst [vmem:[#allocation2 + $0xd0] sm:$0xff] %v1097_v41  ;;  %v1050_v23 = vadd.f32 %v3790_v8, %v3678_v43  ;;  %v3680_v60 = vpop.f32.mrf.mxu0 }
 0x171   : > { %v3681_v58 = vadd.f32 %v3680_v60, %v3679_v14  ;;  %v3792_v47 = vpop.f32.mrf.mxu1  ;;  %v491_v60 = vld [vmem:[#allocation2 + $0xf8] sm:$0xff] }
 0x172   : > { %v1098_v42 = vadd.f32 %v1050_v23, %v488_v53  ;;  %v3793_v59 = vadd.f32 %v3792_v47, %v3791_v54  ;;  %v3682_v34 = vpop.f32.mrf.mxu0 }
 0x173   : > { %v3794_v36 = vpop.f32.mrf.mxu1 }
 0x174   : > { %1130 = vst [vmem:[#allocation2 + $0x10] sm:$0xff] %v1098_v42  ;;  %v1053_v21 = vadd.f32 %v3793_v59, %v3681_v58  ;;  %v3683_v37 = vpop.f32.mrf.mxu0 }
 0x175   : > { %v3684_v35 = vadd.f32 %v3683_v37, %v3682_v34  ;;  %v3795_v28 = vpop.f32.mrf.mxu1  ;;  %v492_v37 = vld [vmem:[#allocation2 + $0x20] sm:$0xff] }
 0x176   : > { %v1099_v48 = vadd.f32 %v1053_v21, %v489_v61  ;;  %v3796_v30 = vadd.f32 %v3795_v28, %v3794_v36  ;;  %v3685_v29 = vpop.f32.mrf.mxu0 }
 0x177   : > { %v3797_v31 = vpop.f32.mrf.mxu1 }
 0x178   : > { %1131 = vst [vmem:[#allocation2 + $0x28] sm:$0xff] %v1099_v48  ;;  %v1058_v43 = vadd.f32 %v3796_v30, %v3684_v35  ;;  %v3686_v41 = vpop.f32.mrf.mxu0 }
 0x179   : > { %v3687_v8 = vadd.f32 %v3686_v41, %v3685_v29  ;;  %v3798_v14 = vpop.f32.mrf.mxu1 }
 0x17a   : > { %v1100_v53 = vadd.f32 %v1058_v43, %v490_v44  ;;  %v3799_v54 = vadd.f32 %v3798_v14, %v3797_v31  ;;  %v3688_v23 = vpop.f32.mrf.mxu0  ;;  %v493_v43 = vld [vmem:[#allocation2 + $0x98] sm:$0xff] }
 0x17b   : > { %v3800_v47 = vpop.f32.mrf.mxu1 }
 0x17c   : > { %1132 = vst [vmem:[#allocation2 + $0xa0] sm:$0xff] %v1100_v53  ;;  %v1061_v58 = vadd.f32 %v3799_v54, %v3687_v8  ;;  %v3689_v42 = vpop.f32.mrf.mxu0 }
 0x17d   : > { %v3690_v59 = vadd.f32 %v3689_v42, %v3688_v23  ;;  %v3801_v34 = vpop.f32.mrf.mxu1 }
 0x17e   : > { %v1101_v61 = vadd.f32 %v1061_v58, %v491_v60  ;;  %v3802_v36 = vadd.f32 %v3801_v34, %v3800_v47  ;;  %v3691_v21 = vpop.f32.mrf.mxu0 }
 0x17f   : > { %v3803_v28 = vpop.f32.mrf.mxu1 }
 0x180   : > { %1133 = vst [vmem:[#allocation2 + $0xf8] sm:$0xff] %v1101_v61  ;;  %v1066_v35 = vadd.f32 %v3802_v36, %v3690_v59  ;;  %v3692_v48 = vpop.f32.mrf.mxu0 }
 0x181   : > { %v3693_v30 = vadd.f32 %v3692_v48, %v3691_v21  ;;  %v3804_v29 = vpop.f32.mrf.mxu1 }
 0x182   : > { %v1102_v44 = vadd.f32 %v1066_v35, %v492_v37  ;;  %v3805_v31 = vadd.f32 %v3804_v29, %v3803_v28 }
 0x184   : > { %1134 = vst [vmem:[#allocation2 + $0x20] sm:$0xff] %v1102_v44  ;;  %v1069_v41 = vadd.f32 %v3805_v31, %v3693_v30 }
 0x186   : > { %v1103_v14 = vadd.f32 %v1069_v41, %v493_v43 }
 0x188   : > { %1135 = vst [vmem:[#allocation2 + $0x98] sm:$0xff] %v1103_v14 }
 0x189 PF: > { %p1136_p9 = scmp.eq.s32.totalorder %s4455_s22, 1  ;;  %p3380_p10 = scmp.ne.s32.totalorder %s4455_s22, 1 }
 0x18b   : > { %1139 = sbr.rel (%p3380_p10) target bundleno = 761 (0x2f9), region = 56 }
 0x190   : > { %v4265_v8 = vld [vmem:[#allocation3 + $0x78] sm:$0xff]   ;;  %v5869_v53 = vunpack.c.l.s8.bf16 %v4571_v2  ;;  %v5870_v54 = vunpack.c.l.s8.bf16 %v4578_v4  ;;  %v4269_v58 = vld [vmem:[#allocation3 + $0x70] sm:$0xff]   ;;  %v4273_v61 = vld [vmem:[#allocation3 + $0x68] sm:$0xff]   ;;  %v5872_v2 = vunpack.c.l.s8.bf16 %v4592_v11  ;;  %v5873_v4 = vunpack.c.h.s8.bf16 %v4584_v6 }
 0x191   : > { %v4266_v23 = vld [vmem:[#allocation3 + $0xf8] sm:$0xff]   ;;  %3806 = vmatprep.subr.bf16.mxu0 %v4265_v8  ;;  %v4270_v42 = vld [vmem:[#allocation3 + $0xf0] sm:$0xff]   ;;  %v4274_v36 = vld [vmem:[#allocation3 + $0xe8] sm:$0xff]   ;;  %v5874_v1 = vunpack.c.h.s8.bf16 %v4595_v12  ;;  %v5875_v3 = vunpack.c.h.s8.bf16 %v4581_v5  ;;  %v5880_v6 = vunpack.c.l.s8.bf16 %v4613_v19  ;;  %v5881_v12 = vunpack.c.h.s8.bf16 %v4610_v18 }
 0x192   : > { %1464 = vmatprep.mubr.bf16.mxu0 %v5869_v53  ;;  %1625 = vmatprep.mubr.bf16.mxu1 %v5870_v54  ;;  %v4267_v60 = vld [vmem:[#allocation3 + $0x38] sm:$0xff]   ;;  %v4271_v59 = vld [vmem:[#allocation3 + $0x30] sm:$0xff]   ;;  %v4275_v21 = vld [vmem:[#allocation3 + $0x28] sm:$0xff]  }
 0x193   : > { %3918 = vmatprep.subr.bf16.mxu1 %v4266_v23  ;;  %v4268_v47 = vld [vmem:[#allocation3 + $0xb8] sm:$0xff]   ;;  %3807 = vmatpush3.bf16.msra.mxu0 %v4267_v60  ;;  %v4272_v34 = vld [vmem:[#allocation3 + $0xb0] sm:$0xff]   ;;  %v4276_v37 = vld [vmem:[#allocation3 + $0xa8] sm:$0xff]  }
 0x194   : > { %3919 = vmatpush3.bf16.msra.mxu1 %v4268_v47  ;;  %3808 = vmatprep.subr.bf16.mxu0 %v4269_v58  ;;  %v4277_v28 = vld [vmem:[#allocation3 + $0x60] sm:$0xff]   ;;  %v4281_v29 = vld [vmem:[#allocation3 + $0x58] sm:$0xff]   ;;  %v4285_v41 = vld [vmem:[#allocation3 + $0x50] sm:$0xff]  }
 0x195   : > { %3920 = vmatprep.subr.bf16.mxu1 %v4270_v42  ;;  %v4278_v35 = vld [vmem:[#allocation3 + $0xe0] sm:$0xff]   ;;  %v4282_v44 = vld [vmem:[#allocation3 + $0xd8] sm:$0xff]   ;;  %v4286_v14 = vld [vmem:[#allocation3 + $0xd0] sm:$0xff]  }
 0x196   : > { %v4279_v48 = vld [vmem:[#allocation3 + $0x20] sm:$0xff]   ;;  %v4283_v31 = vld [vmem:[#allocation3 + $0x18] sm:$0xff]   ;;  %v4287_v8 = vld [vmem:[#allocation3 + $0x10] sm:$0xff]  }
 0x197   : > { %3809 = vmatpush3.bf16.msra.mxu0 %v4271_v59  ;;  %v4280_v30 = vld [vmem:[#allocation3 + $0xa0] sm:$0xff]   ;;  %v4284_v43 = vld [vmem:[#allocation3 + $0x98] sm:$0xff]   ;;  %v4288_v53 = vld [vmem:[#allocation3 + $0x90] sm:$0xff]  }
 0x198   : > { %3921 = vmatpush3.bf16.msra.mxu1 %v4272_v34  ;;  %3810 = vmatprep.subr.bf16.mxu0 %v4273_v61  ;;  %v4289_v54 = vld [vmem:[#allocation3 + $0x48] sm:$0xff]   ;;  %v4293_v58 = vld [vmem:[#allocation3 + $0x40] sm:$0xff]   ;;  %v5887_v61 = vunpack.c.l.s8.bf16 %v4626_v25 }
 0x199   : > { %3922 = vmatprep.subr.bf16.mxu1 %v4274_v36  ;;  %v4290_v23 = vld [vmem:[#allocation3 + $0xc8] sm:$0xff]   ;;  %v4294_v42 = vld [vmem:[#allocation3 + $0xc0] sm:$0xff]   ;;  %v5892_v36 = vunpack.c.h.s8.bf16 %v4632_v27 }
 0x19a   : > { %v4291_v60 = vld [vmem:[#allocation3 + $0x8] sm:$0xff]   ;;  %v4295_v59 = vld [vmem:[#allocation3] sm:$0xff]  }
 0x19b   : > { %3811 = vmatpush3.bf16.msra.mxu0 %v4275_v21  ;;  %v4292_v47 = vld [vmem:[#allocation3 + $0x88] sm:$0xff]   ;;  %v4296_v34 = vld [vmem:[#allocation3 + $0x80] sm:$0xff]   ;;  %v5893_v21 = vunpack.c.l.s8.bf16 %v4649_v38 }
 0x19c   : > { %3923 = vmatpush3.bf16.msra.mxu1 %v4276_v37  ;;  %3812 = vmatprep.subr.bf16.mxu0 %v4277_v28  ;;  %v5894_v37 = vunpack.c.l.s8.bf16 %v4655_v40  ;;  %v5895_v28 = vunpack.c.l.s8.bf16 %v4642_v33 }
 0x19d   : > { %3924 = vmatprep.subr.bf16.mxu1 %v4278_v35  ;;  %v5900_v35 = vunpack.c.h.s8.bf16 %v4652_v39 }
 0x19f   : > { %3813 = vmatpush3.bf16.msra.mxu0 %v4279_v48  ;;  %v5901_v48 = vunpack.c.l.s8.bf16 %v4674_v50 }
 0x1a0   : > { %3925 = vmatpush3.bf16.msra.mxu1 %v4280_v30  ;;  %3814 = vmatprep.subr.bf16.mxu0 %v4281_v29  ;;  %v5902_v30 = vunpack.c.l.s8.bf16 %v4680_v52  ;;  %v5903_v29 = vunpack.c.l.s8.bf16 %v4667_v45 }
 0x1a1   : > { %3926 = vmatprep.subr.bf16.mxu1 %v4282_v44  ;;  %v5908_v44 = vunpack.c.h.s8.bf16 %v4677_v51 }
 0x1a3   : > { %3815 = vmatpush3.bf16.msra.mxu0 %v4283_v31  ;;  %v5909_v31 = vunpack.c.l.s8.bf16 %v4694_v62 }
 0x1a4   : > { %3927 = vmatpush3.bf16.msra.mxu1 %v4284_v43  ;;  %3816 = vmatprep.subr.bf16.mxu0 %v4285_v41  ;;  %v5910_v43 = vunpack.c.l.s8.bf16 %v4700_v0  ;;  %v5911_v41 = vunpack.c.l.s8.bf16 %v4687_v57 }
 0x1a5   : > { %3928 = vmatprep.subr.bf16.mxu1 %v4286_v14  ;;  %v5916_v14 = vunpack.c.h.s8.bf16 %v4697_v63 }
 0x1a7   : > { %3817 = vmatpush3.bf16.msra.mxu0 %v4287_v8  ;;  %v5917_v8 = vunpack.c.l.s8.bf16 %v4714_v46 }
 0x1a8   : > { %3929 = vmatpush3.bf16.msra.mxu1 %v4288_v53  ;;  %3818 = vmatprep.subr.bf16.mxu0 %v4289_v54  ;;  %v5918_v53 = vunpack.c.l.s8.bf16 %v4720_v55  ;;  %v5919_v54 = vunpack.c.l.s8.bf16 %v4707_v56 }
 0x1a9   : > { %3930 = vmatprep.subr.bf16.mxu1 %v4290_v23  ;;  %v5924_v23 = vunpack.c.h.s8.bf16 %v4717_v49 }
 0x1ab   : > { %3819 = vmatpush3.bf16.msra.mxu0 %v4291_v60 }
 0x1ac   : > { %3931 = vmatpush3.bf16.msra.mxu1 %v4292_v47  ;;  %3820 = vmatprep.subr.bf16.mxu0 %v4293_v58 }
 0x1ad   : > { %3932 = vmatprep.subr.bf16.mxu1 %v4294_v42 }
 0x1af   : > { %3821 = vmatpush3.bf16.msra.mxu0 %v4295_v59 }
 0x1b0   : > { %3933 = vmatpush3.bf16.msra.mxu1 %v4296_v34 }
 0x1b2   : > { %1465 = vmatmul.mubr.bf16.vlgmr.msra.gmra.mxu0 %v394_v7  ;;  %v5871_v7 = vunpack.c.l.s8.bf16 %v4581_v5  ;;  %v5882_v5 = vunpack.c.h.s8.bf16 %v4616_v20 }
 0x1b3   : > { %1626 = vmatmul.mubr.bf16.vlgmr.msra.gmra.mxu1 %v396_v9  ;;  %1472 = vmatprep.mubr.bf16.mxu0 %v399_v15  ;;  %v5876_v9 = vunpack.c.h.s8.bf16 %v4592_v11  ;;  %v5878_v15 = vunpack.c.l.s8.bf16 %v4616_v20  ;;  %v5883_v11 = vunpack.c.h.s8.bf16 %v4598_v13  ;;  %v5889_v20 = vunpack.c.h.s8.bf16 %v4629_v26 }
 0x1b4   : > { %1633 = vmatprep.mubr.bf16.mxu1 %v401_v17  ;;  %v5884_v17 = vunpack.c.h.s8.bf16 %v4613_v19  ;;  %v5891_v19 = vunpack.c.h.s8.bf16 %v4626_v25  ;;  %v5898_v25 = vunpack.c.h.s8.bf16 %v4655_v40  ;;  %v5905_v40 = vunpack.c.h.s8.bf16 %v4674_v50 }
 0x1b5   : > { %v5912_v50 = vunpack.c.l.s8.bf16 %v4697_v63  ;;  %v5923_v63 = vunpack.c.h.s8.bf16 %v4707_v56 }
 0x1ba   : > { %1473 = vmatmul.mubr.bf16.gmra.mxu0 %v398_v10  ;;  %v5877_v10 = vunpack.c.l.s8.bf16 %v4610_v18  ;;  %v5888_v18 = vunpack.c.l.s8.bf16 %v4632_v27  ;;  %v5899_v27 = vunpack.c.h.s8.bf16 %v4642_v33  ;;  %v5906_v33 = vunpack.c.h.s8.bf16 %v4680_v52 }
 0x1bb   : > { %1634 = vmatmul.mubr.bf16.gmra.mxu1 %v400_v16  ;;  %1480 = vmatprep.mubr.bf16.mxu0 %v403_v22  ;;  %v5879_v16 = vunpack.c.l.s8.bf16 %v4598_v13  ;;  %v5885_v22 = vunpack.c.l.s8.bf16 %v4629_v26  ;;  %v5890_v13 = vunpack.c.h.s8.bf16 %v4639_v32  ;;  %v5896_v26 = vunpack.c.l.s8.bf16 %v4652_v39 }
 0x1bc   : > { %1641 = vmatprep.mubr.bf16.mxu1 %v405_v24  ;;  %v5886_v24 = vunpack.c.l.s8.bf16 %v4639_v32  ;;  %v5897_v32 = vunpack.c.h.s8.bf16 %v4649_v38  ;;  %v5904_v38 = vunpack.c.l.s8.bf16 %v4677_v51  ;;  %v5907_v39 = vunpack.c.h.s8.bf16 %v4667_v45 }
 0x1bd   : > { %v5913_v52 = vunpack.c.h.s8.bf16 %v4694_v62  ;;  %v5914_v45 = vunpack.c.h.s8.bf16 %v4700_v0  ;;  %v5915_v51 = vunpack.c.h.s8.bf16 %v4687_v57  ;;  %v5920_v62 = vunpack.c.l.s8.bf16 %v4717_v49 }
 0x1be   : > { %v5921_v0 = vunpack.c.h.s8.bf16 %v4714_v46  ;;  %v5922_v57 = vunpack.c.h.s8.bf16 %v4720_v55 }
 0x1c2   : > { %1481 = vmatmul.mubr.bf16.gmra.mxu0 %v5871_v7 }
 0x1c3   : > { %1642 = vmatmul.mubr.bf16.gmra.mxu1 %v5872_v2  ;;  %1488 = vmatprep.mubr.bf16.mxu0 %v5873_v4  ;;  %v1140_v2 = vld [vmem:[#allocation2 + $0xb0] sm:$0xff] }
 0x1c4   : > { %1649 = vmatprep.mubr.bf16.mxu1 %v5874_v1 }
 0x1ca   : > { %1489 = vmatmul.mubr.bf16.gmra.mxu0 %v5875_v3 }
 0x1cb   : > { %1650 = vmatmul.mubr.bf16.gmra.mxu1 %v5876_v9  ;;  %1496 = vmatprep.mubr.bf16.mxu0 %v5877_v10 }
 0x1cc   : > { %1657 = vmatprep.mubr.bf16.mxu1 %v5878_v15  ;;  %v1141_v15 = vld [vmem:[#allocation2] sm:$0xff] }
 0x1d2   : > { %1497 = vmatmul.mubr.bf16.gmra.mxu0 %v5879_v16 }
 0x1d3   : > { %1658 = vmatmul.mubr.bf16.gmra.mxu1 %v5880_v6  ;;  %1504 = vmatprep.mubr.bf16.mxu0 %v5881_v12 }
 0x1d4   : > { %1665 = vmatprep.mubr.bf16.mxu1 %v5882_v5 }
 0x1da   : > { %1505 = vmatmul.mubr.bf16.gmra.mxu0 %v5883_v11 }
 0x1db   : > { %1666 = vmatmul.mubr.bf16.gmra.mxu1 %v5884_v17  ;;  %1512 = vmatprep.mubr.bf16.mxu0 %v5885_v22 }
 0x1dc   : > { %1673 = vmatprep.mubr.bf16.mxu1 %v5886_v24  ;;  %v1142_v24 = vld [vmem:[#allocation2 + $0xd8] sm:$0xff] }
 0x1e2   : > { %1513 = vmatmul.mubr.bf16.gmra.mxu0 %v5887_v61 }
 0x1e3   : > { %1674 = vmatmul.mubr.bf16.gmra.mxu1 %v5888_v18  ;;  %1520 = vmatprep.mubr.bf16.mxu0 %v5889_v20 }
 0x1e4   : > { %1681 = vmatprep.mubr.bf16.mxu1 %v5890_v13 }
 0x1ea   : > { %1521 = vmatmul.mubr.bf16.gmra.mxu0 %v5891_v19 }
 0x1eb   : > { %1682 = vmatmul.mubr.bf16.gmra.mxu1 %v5892_v36  ;;  %1528 = vmatprep.mubr.bf16.mxu0 %v5893_v21 }
 0x1ec   : > { %1689 = vmatprep.mubr.bf16.mxu1 %v5894_v37 }
 0x1f2   : > { %1529 = vmatmul.mubr.bf16.gmra.mxu0 %v5895_v28  ;;  %v1143_v28 = vld [vmem:[#allocation2 + $0x18] sm:$0xff] }
 0x1f3   : > { %1690 = vmatmul.mubr.bf16.gmra.mxu1 %v5896_v26  ;;  %1536 = vmatprep.mubr.bf16.mxu0 %v5897_v32 }
 0x1f4   : > { %1697 = vmatprep.mubr.bf16.mxu1 %v5898_v25 }
 0x1fa   : > { %1537 = vmatmul.mubr.bf16.gmra.mxu0 %v5899_v27 }
 0x1fb   : > { %1698 = vmatmul.mubr.bf16.gmra.mxu1 %v5900_v35  ;;  %1544 = vmatprep.mubr.bf16.mxu0 %v5901_v48 }
 0x1fc   : > { %1705 = vmatprep.mubr.bf16.mxu1 %v5902_v30 }
 0x202   : > { %1545 = vmatmul.mubr.bf16.gmra.mxu0 %v5903_v29 }
 0x203   : > { %1706 = vmatmul.mubr.bf16.gmra.mxu1 %v5904_v38  ;;  %1552 = vmatprep.mubr.bf16.mxu0 %v5905_v40  ;;  %v1144_v38 = vld [vmem:[#allocation2 + $0x50] sm:$0xff] }
 0x204   : > { %1713 = vmatprep.mubr.bf16.mxu1 %v5906_v33 }
 0x20a   : > { %1553 = vmatmul.mubr.bf16.gmra.mxu0 %v5907_v39 }
 0x20b   : > { %1714 = vmatmul.mubr.bf16.gmra.mxu1 %v5908_v44  ;;  %1560 = vmatprep.mubr.bf16.mxu0 %v5909_v31 }
 0x20c   : > { %1721 = vmatprep.mubr.bf16.mxu1 %v5910_v43 }
 0x212   : > { %1561 = vmatmul.mubr.bf16.gmra.mxu0 %v5911_v41 }
 0x213   : > { %1722 = vmatmul.mubr.bf16.gmra.mxu1 %v5912_v50  ;;  %1568 = vmatprep.mubr.bf16.mxu0 %v5913_v52  ;;  %v1145_v52 = vld [vmem:[#allocation2 + $0x68] sm:$0xff] }
 0x214   : > { %1729 = vmatprep.mubr.bf16.mxu1 %v5914_v45 }
 0x21a   : > { %1569 = vmatmul.mubr.bf16.gmra.mxu0 %v5915_v51 }
 0x21b   : > { %1730 = vmatmul.mubr.bf16.gmra.mxu1 %v5916_v14  ;;  %1576 = vmatprep.mubr.bf16.mxu0 %v5917_v8 }
 0x21c   : > { %1737 = vmatprep.mubr.bf16.mxu1 %v5918_v53 }
 0x222   : > { %1577 = vmatmul.mubr.bf16.gmra.mxu0 %v5919_v54 }
 0x223   : > { %1738 = vmatmul.mubr.bf16.gmra.mxu1 %v5920_v62  ;;  %1584 = vmatprep.mubr.bf16.mxu0 %v5921_v0 }
 0x224   : > { %1745 = vmatprep.mubr.bf16.mxu1 %v5922_v57  ;;  %v1146_v57 = vld [vmem:[#allocation2 + $0x30] sm:$0xff] }
 0x22a   : > { %1585 = vmatmul.mubr.bf16.gmra.mxu0 %v5923_v63 }
 0x22b   : > { %1746 = vmatmul.mubr.bf16.gmra.mxu1 %v5924_v23 }
 0x272   : > { %v3822_v60 = vpop.f32.mrf.mxu0 }
 0x273   : > { %v3934_v47 = vpop.f32.mrf.mxu1 }
 0x274   : > { %v3823_v58 = vpop.f32.mrf.mxu0 }
 0x275   : > { %v3824_v42 = vadd.f32 %v3823_v58, %v3822_v60  ;;  %v3935_v59 = vpop.f32.mrf.mxu1 }
 0x276   : > { %v3936_v34 = vadd.f32 %v3935_v59, %v3934_v47  ;;  %v3825_v7 = vpop.f32.mrf.mxu0 }
 0x277   : > { %v3937_v4 = vpop.f32.mrf.mxu1 }
 0x278   : > { %v1628_v46 = vadd.f32 %v3936_v34, %v3824_v42  ;;  %v3826_v1 = vpop.f32.mrf.mxu0 }
 0x279   : > { %v3827_v3 = vadd.f32 %v3826_v1, %v3825_v7  ;;  %v3938_v55 = vpop.f32.mrf.mxu1  ;;  %v1147_v7 = vld [vmem:[#allocation2 + $0x48] sm:$0xff] }
 0x27a   : > { %v1754_v9 = vadd.f32 %v1628_v46, %v1140_v2  ;;  %v3939_v10 = vadd.f32 %v3938_v55, %v3937_v4  ;;  %v3828_v56 = vpop.f32.mrf.mxu0 }
 0x27b   : > { %v3940_v16 = vpop.f32.mrf.mxu1 }
 0x27c   : > { %1786 = vst [vmem:[#allocation2 + $0xb0] sm:$0xff] %v1754_v9  ;;  %v1631_v49 = vadd.f32 %v3939_v10, %v3827_v3  ;;  %v3829_v6 = vpop.f32.mrf.mxu0 }
 0x27d   : > { %v3830_v12 = vadd.f32 %v3829_v6, %v3828_v56  ;;  %v3941_v5 = vpop.f32.mrf.mxu1  ;;  %v1148_v56 = vld [vmem:[#allocation2 + $0x80] sm:$0xff] }
 0x27e   : > { %v1755_v11 = vadd.f32 %v1631_v49, %v1141_v15  ;;  %v3942_v17 = vadd.f32 %v3941_v5, %v3940_v16  ;;  %v3831_v22 = vpop.f32.mrf.mxu0 }
 0x27f   : > { %v3943_v61 = vpop.f32.mrf.mxu1 }
 0x280   : > { %1787 = vst [vmem:[#allocation2] sm:$0xff] %v1755_v11  ;;  %v1636_v18 = vadd.f32 %v3942_v17, %v3830_v12  ;;  %v3832_v20 = vpop.f32.mrf.mxu0 }
 0x281   : > { %v3833_v13 = vadd.f32 %v3832_v20, %v3831_v22  ;;  %v3944_v19 = vpop.f32.mrf.mxu1  ;;  %v1149_v22 = vld [vmem:[#allocation2 + $0x88] sm:$0xff] }
 0x282   : > { %v1756_v36 = vadd.f32 %v1636_v18, %v1142_v24  ;;  %v3945_v21 = vadd.f32 %v3944_v19, %v3943_v61  ;;  %v3834_v37 = vpop.f32.mrf.mxu0 }
 0x283   : > { %v3946_v26 = vpop.f32.mrf.mxu1 }
 0x284   : > { %1788 = vst [vmem:[#allocation2 + $0xd8] sm:$0xff] %v1756_v36  ;;  %v1639_v32 = vadd.f32 %v3945_v21, %v3833_v13  ;;  %v3835_v25 = vpop.f32.mrf.mxu0 }
 0x285   : > { %v3836_v27 = vadd.f32 %v3835_v25, %v3834_v37  ;;  %v3947_v35 = vpop.f32.mrf.mxu1  ;;  %v1150_v37 = vld [vmem:[#allocation2 + $0xe8] sm:$0xff] }
 0x286   : > { %v1757_v48 = vadd.f32 %v1639_v32, %v1143_v28  ;;  %v3948_v30 = vadd.f32 %v3947_v35, %v3946_v26  ;;  %v3837_v29 = vpop.f32.mrf.mxu0 }
 0x287   : > { %v3949_v40 = vpop.f32.mrf.mxu1 }
 0x288   : > { %1789 = vst [vmem:[#allocation2 + $0x18] sm:$0xff] %v1757_v48  ;;  %v1644_v33 = vadd.f32 %v3948_v30, %v3836_v27  ;;  %v3838_v39 = vpop.f32.mrf.mxu0 }
 0x289   : > { %v3839_v44 = vadd.f32 %v3838_v39, %v3837_v29  ;;  %v3950_v31 = vpop.f32.mrf.mxu1  ;;  %v1151_v29 = vld [vmem:[#allocation2 + $0xb8] sm:$0xff] }
 0x28a   : > { %v1758_v43 = vadd.f32 %v1644_v33, %v1144_v38  ;;  %v3951_v41 = vadd.f32 %v3950_v31, %v3949_v40  ;;  %v3840_v50 = vpop.f32.mrf.mxu0 }
 0x28b   : > { %v3952_v45 = vpop.f32.mrf.mxu1 }
 0x28c   : > { %1790 = vst [vmem:[#allocation2 + $0x50] sm:$0xff] %v1758_v43  ;;  %v1647_v51 = vadd.f32 %v3951_v41, %v3839_v44  ;;  %v3841_v14 = vpop.f32.mrf.mxu0 }
 0x28d   : > { %v3842_v8 = vadd.f32 %v3841_v14, %v3840_v50  ;;  %v3953_v53 = vpop.f32.mrf.mxu1  ;;  %v1152_v50 = vld [vmem:[#allocation2 + $0x60] sm:$0xff] }
 0x28e   : > { %v1759_v54 = vadd.f32 %v1647_v51, %v1145_v52  ;;  %v3954_v62 = vadd.f32 %v3953_v53, %v3952_v45  ;;  %v3843_v0 = vpop.f32.mrf.mxu0 }
 0x28f   : > { %v3955_v63 = vpop.f32.mrf.mxu1 }
 0x290   : > { %1791 = vst [vmem:[#allocation2 + $0x68] sm:$0xff] %v1759_v54  ;;  %v1652_v23 = vadd.f32 %v3954_v62, %v3842_v8  ;;  %v3844_v60 = vpop.f32.mrf.mxu0 }
 0x291   : > { %v3845_v47 = vadd.f32 %v3844_v60, %v3843_v0  ;;  %v3956_v58 = vpop.f32.mrf.mxu1  ;;  %v1153_v0 = vld [vmem:[#allocation2 + $0xf0] sm:$0xff] }
 0x292   : > { %v1760_v42 = vadd.f32 %v1652_v23, %v1146_v57  ;;  %v3957_v59 = vadd.f32 %v3956_v58, %v3955_v63  ;;  %v3846_v34 = vpop.f32.mrf.mxu0 }
 0x293   : > { %v3958_v2 = vpop.f32.mrf.mxu1 }
 0x294   : > { %1792 = vst [vmem:[#allocation2 + $0x30] sm:$0xff] %v1760_v42  ;;  %v1655_v4 = vadd.f32 %v3957_v59, %v3845_v47  ;;  %v3847_v46 = vpop.f32.mrf.mxu0 }
 0x295   : > { %v3848_v1 = vadd.f32 %v3847_v46, %v3846_v34  ;;  %v3959_v3 = vpop.f32.mrf.mxu1  ;;  %v1154_v34 = vld [vmem:[#allocation2 + $0x8] sm:$0xff] }
 0x296   : > { %v1761_v55 = vadd.f32 %v1655_v4, %v1147_v7  ;;  %v3960_v9 = vadd.f32 %v3959_v3, %v3958_v2  ;;  %v3849_v10 = vpop.f32.mrf.mxu0 }
 0x297   : > { %v3961_v15 = vpop.f32.mrf.mxu1 }
 0x298   : > { %1793 = vst [vmem:[#allocation2 + $0x48] sm:$0xff] %v1761_v55  ;;  %v1660_v16 = vadd.f32 %v3960_v9, %v3848_v1  ;;  %v3850_v49 = vpop.f32.mrf.mxu0 }
 0x299   : > { %v3851_v6 = vadd.f32 %v3850_v49, %v3849_v10  ;;  %v3962_v12 = vpop.f32.mrf.mxu1  ;;  %v1155_v10 = vld [vmem:[#allocation2 + $0x78] sm:$0xff] }
 0x29a   : > { %v1762_v5 = vadd.f32 %v1660_v16, %v1148_v56  ;;  %v3963_v11 = vadd.f32 %v3962_v12, %v3961_v15  ;;  %v3852_v17 = vpop.f32.mrf.mxu0 }
 0x29b   : > { %v3964_v24 = vpop.f32.mrf.mxu1 }
 0x29c   : > { %1794 = vst [vmem:[#allocation2 + $0x80] sm:$0xff] %v1762_v5  ;;  %v1663_v61 = vadd.f32 %v3963_v11, %v3851_v6  ;;  %v3853_v18 = vpop.f32.mrf.mxu0 }
 0x29d   : > { %v3854_v20 = vadd.f32 %v3853_v18, %v3852_v17  ;;  %v3965_v13 = vpop.f32.mrf.mxu1  ;;  %v1156_v17 = vld [vmem:[#allocation2 + $0x38] sm:$0xff] }
 0x29e   : > { %v1763_v19 = vadd.f32 %v1663_v61, %v1149_v22  ;;  %v3966_v36 = vadd.f32 %v3965_v13, %v3964_v24  ;;  %v3855_v21 = vpop.f32.mrf.mxu0 }
 0x29f   : > { %v3967_v28 = vpop.f32.mrf.mxu1 }
 0x2a0   : > { %1795 = vst [vmem:[#allocation2 + $0x88] sm:$0xff] %v1763_v19  ;;  %v1668_v26 = vadd.f32 %v3966_v36, %v3854_v20  ;;  %v3856_v32 = vpop.f32.mrf.mxu0 }
 0x2a1   : > { %v3857_v25 = vadd.f32 %v3856_v32, %v3855_v21  ;;  %v3968_v27 = vpop.f32.mrf.mxu1  ;;  %v1157_v21 = vld [vmem:[#allocation2 + $0x58] sm:$0xff] }
 0x2a2   : > { %v1764_v35 = vadd.f32 %v1668_v26, %v1150_v37  ;;  %v3969_v48 = vadd.f32 %v3968_v27, %v3967_v28  ;;  %v3858_v30 = vpop.f32.mrf.mxu0 }
 0x2a3   : > { %v3970_v38 = vpop.f32.mrf.mxu1 }
 0x2a4   : > { %1796 = vst [vmem:[#allocation2 + $0xe8] sm:$0xff] %v1764_v35  ;;  %v1671_v40 = vadd.f32 %v3969_v48, %v3857_v25  ;;  %v3859_v33 = vpop.f32.mrf.mxu0 }
 0x2a5   : > { %v3860_v39 = vadd.f32 %v3859_v33, %v3858_v30  ;;  %v3971_v44 = vpop.f32.mrf.mxu1  ;;  %v1158_v30 = vld [vmem:[#allocation2 + $0x40] sm:$0xff] }
 0x2a6   : > { %v1765_v31 = vadd.f32 %v1671_v40, %v1151_v29  ;;  %v3972_v43 = vadd.f32 %v3971_v44, %v3970_v38  ;;  %v3861_v41 = vpop.f32.mrf.mxu0 }
 0x2a7   : > { %v3973_v52 = vpop.f32.mrf.mxu1 }
 0x2a8   : > { %1797 = vst [vmem:[#allocation2 + $0xb8] sm:$0xff] %v1765_v31  ;;  %v1676_v45 = vadd.f32 %v3972_v43, %v3860_v39  ;;  %v3862_v51 = vpop.f32.mrf.mxu0 }
 0x2a9   : > { %v3863_v14 = vadd.f32 %v3862_v51, %v3861_v41  ;;  %v3974_v8 = vpop.f32.mrf.mxu1  ;;  %v1159_v41 = vld [vmem:[#allocation2 + $0xc8] sm:$0xff] }
 0x2aa   : > { %v1766_v53 = vadd.f32 %v1676_v45, %v1152_v50  ;;  %v3975_v54 = vadd.f32 %v3974_v8, %v3973_v52  ;;  %v3864_v62 = vpop.f32.mrf.mxu0 }
 0x2ab   : > { %v3976_v57 = vpop.f32.mrf.mxu1 }
 0x2ac   : > { %1798 = vst [vmem:[#allocation2 + $0x60] sm:$0xff] %v1766_v53  ;;  %v1679_v63 = vadd.f32 %v3975_v54, %v3863_v14  ;;  %v3865_v23 = vpop.f32.mrf.mxu0 }
 0x2ad   : > { %v3866_v60 = vadd.f32 %v3865_v23, %v3864_v62  ;;  %v3977_v47 = vpop.f32.mrf.mxu1  ;;  %v1160_v62 = vld [vmem:[#allocation2 + $0xe0] sm:$0xff] }
 0x2ae   : > { %v1767_v58 = vadd.f32 %v1679_v63, %v1153_v0  ;;  %v3978_v42 = vadd.f32 %v3977_v47, %v3976_v57  ;;  %v3867_v59 = vpop.f32.mrf.mxu0 }
 0x2af   : > { %v3979_v7 = vpop.f32.mrf.mxu1 }
 0x2b0   : > { %1799 = vst [vmem:[#allocation2 + $0xf0] sm:$0xff] %v1767_v58  ;;  %v1684_v2 = vadd.f32 %v3978_v42, %v3866_v60  ;;  %v3868_v4 = vpop.f32.mrf.mxu0 }
 0x2b1   : > { %v3869_v46 = vadd.f32 %v3868_v4, %v3867_v59  ;;  %v3980_v1 = vpop.f32.mrf.mxu1  ;;  %v1161_v59 = vld [vmem:[#allocation2 + $0x90] sm:$0xff] }
 0x2b2   : > { %v1768_v3 = vadd.f32 %v1684_v2, %v1154_v34  ;;  %v3981_v55 = vadd.f32 %v3980_v1, %v3979_v7  ;;  %v3870_v9 = vpop.f32.mrf.mxu0 }
 0x2b3   : > { %v3982_v56 = vpop.f32.mrf.mxu1 }
 0x2b4   : > { %1800 = vst [vmem:[#allocation2 + $0x8] sm:$0xff] %v1768_v3  ;;  %v1687_v15 = vadd.f32 %v3981_v55, %v3869_v46  ;;  %v3871_v16 = vpop.f32.mrf.mxu0 }
 0x2b5   : > { %v3872_v49 = vadd.f32 %v3871_v16, %v3870_v9  ;;  %v3983_v6 = vpop.f32.mrf.mxu1  ;;  %v1162_v9 = vld [vmem:[#allocation2 + $0x70] sm:$0xff] }
 0x2b6   : > { %v1769_v12 = vadd.f32 %v1687_v15, %v1155_v10  ;;  %v3984_v5 = vadd.f32 %v3983_v6, %v3982_v56  ;;  %v3873_v11 = vpop.f32.mrf.mxu0 }
 0x2b7   : > { %v3985_v22 = vpop.f32.mrf.mxu1 }
 0x2b8   : > { %1801 = vst [vmem:[#allocation2 + $0x78] sm:$0xff] %v1769_v12  ;;  %v1692_v24 = vadd.f32 %v3984_v5, %v3872_v49  ;;  %v3874_v61 = vpop.f32.mrf.mxu0 }
 0x2b9   : > { %v3875_v18 = vadd.f32 %v3874_v61, %v3873_v11  ;;  %v3986_v20 = vpop.f32.mrf.mxu1  ;;  %v1163_v11 = vld [vmem:[#allocation2 + $0xc0] sm:$0xff] }
 0x2ba   : > { %v1770_v13 = vadd.f32 %v1692_v24, %v1156_v17  ;;  %v3987_v19 = vadd.f32 %v3986_v20, %v3985_v22  ;;  %v3876_v36 = vpop.f32.mrf.mxu0 }
 0x2bb   : > { %v3988_v37 = vpop.f32.mrf.mxu1 }
 0x2bc   : > { %1802 = vst [vmem:[#allocation2 + $0x38] sm:$0xff] %v1770_v13  ;;  %v1695_v28 = vadd.f32 %v3987_v19, %v3875_v18  ;;  %v3877_v26 = vpop.f32.mrf.mxu0 }
 0x2bd   : > { %v3878_v32 = vadd.f32 %v3877_v26, %v3876_v36  ;;  %v3989_v25 = vpop.f32.mrf.mxu1  ;;  %v1164_v36 = vld [vmem:[#allocation2 + $0xa8] sm:$0xff] }
 0x2be   : > { %v1771_v27 = vadd.f32 %v1695_v28, %v1157_v21  ;;  %v3990_v35 = vadd.f32 %v3989_v25, %v3988_v37  ;;  %v3879_v48 = vpop.f32.mrf.mxu0 }
 0x2bf   : > { %v3991_v29 = vpop.f32.mrf.mxu1 }
 0x2c0   : > { %1803 = vst [vmem:[#allocation2 + $0x58] sm:$0xff] %v1771_v27  ;;  %v1700_v38 = vadd.f32 %v3990_v35, %v3878_v32  ;;  %v3880_v40 = vpop.f32.mrf.mxu0 }
 0x2c1   : > { %v3881_v33 = vadd.f32 %v3880_v40, %v3879_v48  ;;  %v3992_v39 = vpop.f32.mrf.mxu1  ;;  %v1165_v48 = vld [vmem:[#allocation2 + $0xd0] sm:$0xff] }
 0x2c2   : > { %v1772_v44 = vadd.f32 %v1700_v38, %v1158_v30  ;;  %v3993_v31 = vadd.f32 %v3992_v39, %v3991_v29  ;;  %v3882_v43 = vpop.f32.mrf.mxu0 }
 0x2c3   : > { %v3994_v50 = vpop.f32.mrf.mxu1 }
 0x2c4   : > { %1804 = vst [vmem:[#allocation2 + $0x40] sm:$0xff] %v1772_v44  ;;  %v1703_v52 = vadd.f32 %v3993_v31, %v3881_v33  ;;  %v3883_v45 = vpop.f32.mrf.mxu0 }
 0x2c5   : > { %v3884_v51 = vadd.f32 %v3883_v45, %v3882_v43  ;;  %v3995_v14 = vpop.f32.mrf.mxu1  ;;  %v1166_v43 = vld [vmem:[#allocation2 + $0x10] sm:$0xff] }
 0x2c6   : > { %v1773_v8 = vadd.f32 %v1703_v52, %v1159_v41  ;;  %v3996_v53 = vadd.f32 %v3995_v14, %v3994_v50  ;;  %v3885_v54 = vpop.f32.mrf.mxu0 }
 0x2c7   : > { %v3997_v0 = vpop.f32.mrf.mxu1 }
 0x2c8   : > { %1805 = vst [vmem:[#allocation2 + $0xc8] sm:$0xff] %v1773_v8  ;;  %v1708_v57 = vadd.f32 %v3996_v53, %v3884_v51  ;;  %v3886_v63 = vpop.f32.mrf.mxu0 }
 0x2c9   : > { %v3887_v23 = vadd.f32 %v3886_v63, %v3885_v54  ;;  %v3998_v60 = vpop.f32.mrf.mxu1  ;;  %v1167_v54 = vld [vmem:[#allocation2 + $0x28] sm:$0xff] }
 0x2ca   : > { %v1774_v47 = vadd.f32 %v1708_v57, %v1160_v62  ;;  %v3999_v58 = vadd.f32 %v3998_v60, %v3997_v0  ;;  %v3888_v42 = vpop.f32.mrf.mxu0 }
 0x2cb   : > { %v4000_v34 = vpop.f32.mrf.mxu1 }
 0x2cc   : > { %1806 = vst [vmem:[#allocation2 + $0xe0] sm:$0xff] %v1774_v47  ;;  %v1711_v7 = vadd.f32 %v3999_v58, %v3887_v23  ;;  %v3889_v2 = vpop.f32.mrf.mxu0 }
 0x2cd   : > { %v3890_v4 = vadd.f32 %v3889_v2, %v3888_v42  ;;  %v4001_v46 = vpop.f32.mrf.mxu1  ;;  %v1168_v42 = vld [vmem:[#allocation2 + $0xa0] sm:$0xff] }
 0x2ce   : > { %v1775_v1 = vadd.f32 %v1711_v7, %v1161_v59  ;;  %v4002_v3 = vadd.f32 %v4001_v46, %v4000_v34  ;;  %v3891_v55 = vpop.f32.mrf.mxu0 }
 0x2cf   : > { %v4003_v10 = vpop.f32.mrf.mxu1 }
 0x2d0   : > { %1807 = vst [vmem:[#allocation2 + $0x90] sm:$0xff] %v1775_v1  ;;  %v1716_v56 = vadd.f32 %v4002_v3, %v3890_v4  ;;  %v3892_v15 = vpop.f32.mrf.mxu0 }
 0x2d1   : > { %v3893_v16 = vadd.f32 %v3892_v15, %v3891_v55  ;;  %v4004_v49 = vpop.f32.mrf.mxu1  ;;  %v1169_v55 = vld [vmem:[#allocation2 + $0xf8] sm:$0xff] }
 0x2d2   : > { %v1776_v6 = vadd.f32 %v1716_v56, %v1162_v9  ;;  %v4005_v12 = vadd.f32 %v4004_v49, %v4003_v10  ;;  %v3894_v5 = vpop.f32.mrf.mxu0 }
 0x2d3   : > { %v4006_v17 = vpop.f32.mrf.mxu1 }
 0x2d4   : > { %1808 = vst [vmem:[#allocation2 + $0x70] sm:$0xff] %v1776_v6  ;;  %v1719_v22 = vadd.f32 %v4005_v12, %v3893_v16  ;;  %v3895_v24 = vpop.f32.mrf.mxu0 }
 0x2d5   : > { %v3896_v61 = vadd.f32 %v3895_v24, %v3894_v5  ;;  %v4007_v18 = vpop.f32.mrf.mxu1  ;;  %v1170_v5 = vld [vmem:[#allocation2 + $0x20] sm:$0xff] }
 0x2d6   : > { %v1777_v20 = vadd.f32 %v1719_v22, %v1163_v11  ;;  %v4008_v13 = vadd.f32 %v4007_v18, %v4006_v17  ;;  %v3897_v19 = vpop.f32.mrf.mxu0 }
 0x2d7   : > { %v4009_v21 = vpop.f32.mrf.mxu1 }
 0x2d8   : > { %1809 = vst [vmem:[#allocation2 + $0xc0] sm:$0xff] %v1777_v20  ;;  %v1724_v37 = vadd.f32 %v4008_v13, %v3896_v61  ;;  %v3898_v28 = vpop.f32.mrf.mxu0  ;;  %v1171_v13 = vld [vmem:[#allocation2 + $0x98] sm:$0xff] }
 0x2d9   : > { %v3899_v26 = vadd.f32 %v3898_v28, %v3897_v19  ;;  %v4010_v32 = vpop.f32.mrf.mxu1 }
 0x2da   : > { %v1778_v25 = vadd.f32 %v1724_v37, %v1164_v36  ;;  %v4011_v27 = vadd.f32 %v4010_v32, %v4009_v21  ;;  %v3900_v35 = vpop.f32.mrf.mxu0 }
 0x2db   : > { %v4012_v30 = vpop.f32.mrf.mxu1 }
 0x2dc   : > { %1810 = vst [vmem:[#allocation2 + $0xa8] sm:$0xff] %v1778_v25  ;;  %v1727_v29 = vadd.f32 %v4011_v27, %v3899_v26  ;;  %v3901_v38 = vpop.f32.mrf.mxu0 }
 0x2dd   : > { %v3902_v40 = vadd.f32 %v3901_v38, %v3900_v35  ;;  %v4013_v33 = vpop.f32.mrf.mxu1 }
 0x2de   : > { %v1779_v39 = vadd.f32 %v1727_v29, %v1165_v48  ;;  %v4014_v44 = vadd.f32 %v4013_v33, %v4012_v30  ;;  %v3903_v31 = vpop.f32.mrf.mxu0 }
 0x2df   : > { %v4015_v41 = vpop.f32.mrf.mxu1 }
 0x2e0   : > { %1811 = vst [vmem:[#allocation2 + $0xd0] sm:$0xff] %v1779_v39  ;;  %v1732_v50 = vadd.f32 %v4014_v44, %v3902_v40  ;;  %v3904_v52 = vpop.f32.mrf.mxu0 }
 0x2e1   : > { %v3905_v45 = vadd.f32 %v3904_v52, %v3903_v31  ;;  %v4016_v51 = vpop.f32.mrf.mxu1 }
 0x2e2   : > { %v1780_v14 = vadd.f32 %v1732_v50, %v1166_v43  ;;  %v4017_v8 = vadd.f32 %v4016_v51, %v4015_v41  ;;  %v3906_v53 = vpop.f32.mrf.mxu0 }
 0x2e3   : > { %v4018_v62 = vpop.f32.mrf.mxu1 }
 0x2e4   : > { %1812 = vst [vmem:[#allocation2 + $0x10] sm:$0xff] %v1780_v14  ;;  %v1735_v0 = vadd.f32 %v4017_v8, %v3905_v45  ;;  %v3907_v57 = vpop.f32.mrf.mxu0 }
 0x2e5   : > { %v3908_v63 = vadd.f32 %v3907_v57, %v3906_v53  ;;  %v4019_v23 = vpop.f32.mrf.mxu1 }
 0x2e6   : > { %v1781_v60 = vadd.f32 %v1735_v0, %v1167_v54  ;;  %v4020_v47 = vadd.f32 %v4019_v23, %v4018_v62  ;;  %v3909_v58 = vpop.f32.mrf.mxu0 }
 0x2e7   : > { %v4021_v59 = vpop.f32.mrf.mxu1 }
 0x2e8   : > { %1813 = vst [vmem:[#allocation2 + $0x28] sm:$0xff] %v1781_v60  ;;  %v1740_v34 = vadd.f32 %v4020_v47, %v3908_v63  ;;  %v3910_v7 = vpop.f32.mrf.mxu0 }
 0x2e9   : > { %v3911_v2 = vadd.f32 %v3910_v7, %v3909_v58  ;;  %v4022_v4 = vpop.f32.mrf.mxu1 }
 0x2ea   : > { %v1782_v46 = vadd.f32 %v1740_v34, %v1168_v42  ;;  %v4023_v1 = vadd.f32 %v4022_v4, %v4021_v59  ;;  %v3912_v3 = vpop.f32.mrf.mxu0 }
 0x2eb   : > { %v4024_v9 = vpop.f32.mrf.mxu1 }
 0x2ec   : > { %1814 = vst [vmem:[#allocation2 + $0xa0] sm:$0xff] %v1782_v46  ;;  %v1743_v10 = vadd.f32 %v4023_v1, %v3911_v2  ;;  %v3913_v56 = vpop.f32.mrf.mxu0 }
 0x2ed   : > { %v3914_v15 = vadd.f32 %v3913_v56, %v3912_v3  ;;  %v4025_v16 = vpop.f32.mrf.mxu1 }
 0x2ee   : > { %v1783_v49 = vadd.f32 %v1743_v10, %v1169_v55  ;;  %v4026_v6 = vadd.f32 %v4025_v16, %v4024_v9  ;;  %v3915_v12 = vpop.f32.mrf.mxu0 }
 0x2ef   : > { %v4027_v11 = vpop.f32.mrf.mxu1 }
 0x2f0   : > { %1815 = vst [vmem:[#allocation2 + $0xf8] sm:$0xff] %v1783_v49  ;;  %v1748_v17 = vadd.f32 %v4026_v6, %v3914_v15  ;;  %v3916_v22 = vpop.f32.mrf.mxu0 }
 0x2f1   : > { %v3917_v24 = vadd.f32 %v3916_v22, %v3915_v12  ;;  %v4028_v61 = vpop.f32.mrf.mxu1 }
 0x2f2   : > { %v1784_v18 = vadd.f32 %v1748_v17, %v1170_v5  ;;  %v4029_v20 = vadd.f32 %v4028_v61, %v4027_v11 }
 0x2f4   : > { %1816 = vst [vmem:[#allocation2 + $0x20] sm:$0xff] %v1784_v18  ;;  %v1751_v19 = vadd.f32 %v4029_v20, %v3917_v24 }
 0x2f6   : > { %v1785_v36 = vadd.f32 %v1751_v19, %v1171_v13 }
 0x2f8   : > { %1817 = vst [vmem:[#allocation2 + $0x98] sm:$0xff] %v1785_v36 }
 0x2f9 PF: > { %1821 = sbr.rel (!%p458_p7) target bundleno = 1153 (0x481), region = 60  ;;  %v1823_v21 = vld [vmem:[%s4607_s15 + $0x8] sm:$0xff] (%p458_p7)  ;;  %v1822_v37 = vld [vmem:[%s4607_s15] sm:$0xff] (%p458_p7)  ;;  %v4470_v28 = vmov (%p458_p7), 0   ;;  %v1840_v25 = vld [vmem:[%s4607_s15 + $0x90] sm:$0xff] (%p458_p7)  ;;  %s2550_s20 = sshra.s32 (%p458_p7), %s3344_s7, 3 }
 0x2fa   : > { %4298 = vset.pattern.permute.xlu1 (%p458_p7), %v4470_v28  ;;  %4297 = vset.pattern.permute.xlu0 (%p458_p7), %v4470_v28  ;;  %v1839_v26 = vld [vmem:[%s4607_s15 + $0x88] sm:$0xff] (%p458_p7)  ;;  %v1838_v32 = vld [vmem:[%s4607_s15 + $0x80] sm:$0xff] (%p458_p7)  ;;  %v1824_v27 = vld [vmem:[%s4607_s15 + $0x10] sm:$0xff] (%p458_p7)  ;;  %s3447_s28 = sshll.u32 (%p458_p7), %s2550_s20, 2 }
 0x2fb   : > { %1893 = vperm.xlu1 (%p458_p7), %4298, %v1823_v21   ;;  %1888 = vperm.xlu0 (%p458_p7), %4297, %v1822_v37   ;;  %v2164_v35 = vld [vmem:[%s5807_s2 + $0x78] sm:$0xff] (%p458_p7)  ;;  %v2163_v29 = vld [vmem:[%s5807_s2 + $0x70] sm:$0xff] (%p458_p7)  ;;  %v2162_v38 = vld [vmem:[%s5807_s2 + $0x68] sm:$0xff] (%p458_p7)  ;;  %s5316_s29 = scalar_lea.vmem (%p458_p7), [#allocation3], %s3447_s28 }
 0x2fc   : > { %v1841_v48 = vld [vmem:[%s4607_s15 + $0x98] sm:$0xff] (%p458_p7)  ;;  %4078 = vmatprep.subr.mxu0 (%p458_p7), %v2164_v35  ;;  %4158 = vmatprep.subr.mxu1 (%p458_p7), %v2164_v35  ;;  %v1842_v40 = vld [vmem:[%s4607_s15 + $0xa0] sm:$0xff] (%p458_p7)  ;;  %v1843_v31 = vld [vmem:[%s4607_s15 + $0xa8] sm:$0xff] (%p458_p7) }
 0x2fd   : > { %v1825_v30 = vld [vmem:[%s4607_s15 + $0x18] sm:$0xff] (%p458_p7)  ;;  %4079 = vmatpush3.msra.mxu0 (%p458_p7), %v2164_v35  ;;  %4174 = vmatpush3.msra.mxu1 (%p458_p7), %v2164_v35  ;;  %v1826_v33 = vld [vmem:[%s4607_s15 + $0x20] sm:$0xff] (%p458_p7)  ;;  %v1827_v43 = vld [vmem:[%s4607_s15 + $0x28] sm:$0xff] (%p458_p7) }
 0x2fe   : > { %4080 = vmatprep.subr.mxu0 %v2163_v29  ;;  %4159 = vmatprep.subr.mxu1 %v2163_v29  ;;  %v2161_v39 = vld [vmem:[%s5807_s2 + $0x60] sm:$0xff]  ;;  %v2160_v44 = vld [vmem:[%s5807_s2 + $0x58] sm:$0xff]  ;;  %v2159_v41 = vld [vmem:[%s5807_s2 + $0x50] sm:$0xff] }
 0x2ff   : > { %1973 = vperm.xlu1 %4298, %v1839_v26   ;;  %1968 = vperm.xlu0 %4297, %v1838_v32   ;;  %v1844_v50 = vld [vmem:[%s4607_s15 + $0xb0] sm:$0xff]  ;;  %v2158_v45 = vld [vmem:[%s5807_s2 + $0x48] sm:$0xff]  ;;  %v2157_v51 = vld [vmem:[%s5807_s2 + $0x40] sm:$0xff] }
 0x300   : > { %4081 = vmatpush3.msra.mxu0 %v2163_v29  ;;  %4175 = vmatpush3.msra.mxu1 %v2163_v29  ;;  %v1828_v52 = vld [vmem:[%s4607_s15 + $0x30] sm:$0xff]  ;;  %v1845_v14 = vld [vmem:[%s4607_s15 + $0xb8] sm:$0xff]  ;;  %v1846_v54 = vld [vmem:[%s4607_s15 + $0xc0] sm:$0xff] }
 0x301   : > { %4082 = vmatprep.subr.mxu0 %v2162_v38  ;;  %4160 = vmatprep.subr.mxu1 %v2162_v38  ;;  %v1829_v8 = vld [vmem:[%s4607_s15 + $0x38] sm:$0xff]  ;;  %v1830_v62 = vld [vmem:[%s4607_s15 + $0x40] sm:$0xff]  ;;  %v2155_v0 = vld [vmem:[%s5807_s2 + $0x30] sm:$0xff] }
 0x302   : > { %4083 = vmatpush3.msra.mxu0 %v2162_v38  ;;  %4176 = vmatpush3.msra.mxu1 %v2162_v38  ;;  %v2156_v53 = vld [vmem:[%s5807_s2 + $0x38] sm:$0xff]  ;;  %v2154_v57 = vld [vmem:[%s5807_s2 + $0x28] sm:$0xff]  ;;  %v2153_v60 = vld [vmem:[%s5807_s2 + $0x20] sm:$0xff] }
 0x303   : > { %1978 = vperm.xlu1 %4298, %v1840_v25   ;;  %1898 = vperm.xlu0 %4297, %v1824_v27   ;;  %v1847_v63 = vld [vmem:[%s4607_s15 + $0xc8] sm:$0xff]  ;;  %v1848_v47 = vld [vmem:[%s4607_s15 + $0xd0] sm:$0xff]  ;;  %v2152_v42 = vld [vmem:[%s5807_s2 + $0x18] sm:$0xff] }
 0x304   : > { %4084 = vmatprep.subr.mxu0 %v2161_v39  ;;  %4161 = vmatprep.subr.mxu1 %v2161_v39  ;;  %v1831_v23 = vld [vmem:[%s4607_s15 + $0x48] sm:$0xff]  ;;  %v1832_v58 = vld [vmem:[%s4607_s15 + $0x50] sm:$0xff]  ;;  %v1849_v34 = vld [vmem:[%s4607_s15 + $0xd8] sm:$0xff] }
 0x305   : > { %4085 = vmatpush3.msra.mxu0 %v2161_v39  ;;  %4177 = vmatpush3.msra.mxu1 %v2161_v39  ;;  %v2151_v59 = vld [vmem:[%s5807_s2 + $0x10] sm:$0xff]  ;;  %v1833_v7 = vld [vmem:[%s4607_s15 + $0x58] sm:$0xff]  ;;  %v2150_v2 = vld [vmem:[%s5807_s2 + $0x8] sm:$0xff] }
 0x306   : > { %4086 = vmatprep.subr.mxu0 %v2160_v44  ;;  %4162 = vmatprep.subr.mxu1 %v2160_v44  ;;  %v1850_v4 = vld [vmem:[%s4607_s15 + $0xe0] sm:$0xff]  ;;  %v1851_v3 = vld [vmem:[%s4607_s15 + $0xe8] sm:$0xff]  ;;  %v1852_v9 = vld [vmem:[%s4607_s15 + $0xf0] sm:$0xff] }
 0x307   : > { %1983 = vperm.xlu1 %4298, %v1841_v48   ;;  %1903 = vperm.xlu0 %4297, %v1825_v30   ;;  %v1834_v46 = vld [vmem:[%s4607_s15 + $0x60] sm:$0xff]  ;;  %v1835_v55 = vld [vmem:[%s4607_s15 + $0x68] sm:$0xff]  ;;  %v1836_v10 = vld [vmem:[%s4607_s15 + $0x70] sm:$0xff] }
 0x308   : > { %4087 = vmatpush3.msra.mxu0 %v2160_v44  ;;  %4178 = vmatpush3.msra.mxu1 %v2160_v44  ;;  %v2149_v1 = vld [vmem:[%s5807_s2] sm:$0xff]  ;;  %v1853_v56 = vld [vmem:[%s4607_s15 + $0xf8] sm:$0xff]  ;;  %v1855_v16 = vld [vmem:[#allocation2] sm:$0xff] }
 0x309   : > { %4088 = vmatprep.subr.mxu0 %v2159_v41  ;;  %4163 = vmatprep.subr.mxu1 %v2159_v41  ;;  %v1837_v15 = vld [vmem:[%s4607_s15 + $0x78] sm:$0xff]  ;;  %v1854_v49 = vld [vmem:[#allocation2 + $0xb0] sm:$0xff]  ;;  %v1871_v22 = vld [vmem:[#allocation2 + $0x58] sm:$0xff] }
 0x30a   : > { %4089 = vmatpush3.msra.mxu0 %v2159_v41  ;;  %4179 = vmatpush3.msra.mxu1 %v2159_v41  ;;  %v5182_v6 = vld [vmem:[%s5808_s3] ss:$0 sm:$0xff]  ;;  %v1870_v24 = vld [vmem:[#allocation2 + $0x38] sm:$0xff]  ;;  %v1872_v28 = vld [vmem:[#allocation2 + $0x40] sm:$0xff] }
 0x30b   : > { %1988 = vperm.xlu1 %4298, %v1842_v40   ;;  %1908 = vperm.xlu0 %4297, %v1826_v33   ;;  %v1856_v26 = vld [vmem:[#allocation2 + $0xd8] sm:$0xff]  ;;  %v1873_v40 = vld [vmem:[#allocation2 + $0xc8] sm:$0xff] }
 0x30c   : > { %4090 = vmatprep.subr.mxu0 %v2158_v45  ;;  %4164 = vmatprep.subr.mxu1 %v2158_v45  ;;  %v1857_v33 = vld [vmem:[#allocation2 + $0x18] sm:$0xff] }
 0x30d   : > { %4091 = vmatpush3.msra.mxu0 %v2158_v45  ;;  %4180 = vmatpush3.msra.mxu1 %v2158_v45 }
 0x30e   : > { %4092 = vmatprep.subr.mxu0 %v2157_v51  ;;  %4165 = vmatprep.subr.mxu1 %v2157_v51 }
 0x30f   : > { %1993 = vperm.xlu1 %4298, %v1843_v31   ;;  %1913 = vperm.xlu0 %4297, %v1827_v43  }
 0x310   : > { %4093 = vmatpush3.msra.mxu0 %v2157_v51  ;;  %4181 = vmatpush3.msra.mxu1 %v2157_v51  ;;  %v1874_v51 = vld [vmem:[#allocation2 + $0xe0] sm:$0xff] }
 0x311   : > { %4094 = vmatprep.subr.mxu0 %v2156_v53  ;;  %4166 = vmatprep.subr.mxu1 %v2156_v53 }
 0x312   : > { %4095 = vmatpush3.msra.mxu0 %v2156_v53  ;;  %4182 = vmatpush3.msra.mxu1 %v2156_v53 }
 0x313   : > { %1998 = vperm.xlu1 %4298, %v1844_v50   ;;  %1918 = vperm.xlu0 %4297, %v1828_v52  }
 0x314   : > { %4096 = vmatprep.subr.mxu0 %v2155_v0  ;;  %4167 = vmatprep.subr.mxu1 %v2155_v0 }
 0x315   : > { %4097 = vmatpush3.msra.mxu0 %v2155_v0  ;;  %4183 = vmatpush3.msra.mxu1 %v2155_v0 }
 0x316   : > { %4098 = vmatprep.subr.mxu0 %v2154_v57  ;;  %4168 = vmatprep.subr.mxu1 %v2154_v57 }
 0x317   : > { %2003 = vperm.xlu1 %4298, %v1845_v14   ;;  %1923 = vperm.xlu0 %4297, %v1829_v8   ;;  %v1858_v14 = vld [vmem:[#allocation2 + $0x50] sm:$0xff] }
 0x318   : > { %4099 = vmatpush3.msra.mxu0 %v2154_v57  ;;  %4184 = vmatpush3.msra.mxu1 %v2154_v57 }
 0x319   : > { %4100 = vmatprep.subr.mxu0 %v2153_v60  ;;  %4169 = vmatprep.subr.mxu1 %v2153_v60 }
 0x31a   : > { %4101 = vmatpush3.msra.mxu0 %v2153_v60  ;;  %4185 = vmatpush3.msra.mxu1 %v2153_v60  ;;  %v1875_v60 = vld [vmem:[#allocation2 + $0x90] sm:$0xff] }
 0x31b   : > { %2008 = vperm.xlu1 %4298, %v1846_v54   ;;  %1928 = vperm.xlu0 %4297, %v1830_v62  }
 0x31c   : > { %4102 = vmatprep.subr.mxu0 %v2152_v42  ;;  %4170 = vmatprep.subr.mxu1 %v2152_v42 }
 0x31d   : > { %4103 = vmatpush3.msra.mxu0 %v2152_v42  ;;  %4186 = vmatpush3.msra.mxu1 %v2152_v42 }
 0x31e   : > { %4104 = vmatprep.subr.mxu0 %v2151_v59  ;;  %4171 = vmatprep.subr.mxu1 %v2151_v59 }
 0x31f   : > { %2013 = vperm.xlu1 %4298, %v1847_v63   ;;  %1933 = vperm.xlu0 %4297, %v1831_v23  }
 0x320   : > { %4105 = vmatpush3.msra.mxu0 %v2151_v59  ;;  %4187 = vmatpush3.msra.mxu1 %v2151_v59 }
 0x321   : > { %4106 = vmatprep.subr.mxu0 %v2150_v2  ;;  %4172 = vmatprep.subr.mxu1 %v2150_v2 }
 0x322   : > { %4107 = vmatpush3.msra.mxu0 %v2150_v2  ;;  %4188 = vmatpush3.msra.mxu1 %v2150_v2 }
 0x323   : > { %2018 = vperm.xlu1 %4298, %v1848_v47   ;;  %1938 = vperm.xlu0 %4297, %v1832_v58   ;;  %v1859_v47 = vld [vmem:[#allocation2 + $0x68] sm:$0xff] }
 0x324   : > { %4108 = vmatprep.subr.mxu0 %v2149_v1  ;;  %4173 = vmatprep.subr.mxu1 %v2149_v1 }
 0x325   : > { %4109 = vmatpush3.msra.mxu0 %v2149_v1  ;;  %4189 = vmatpush3.msra.mxu1 %v2149_v1  ;;  %v1876_v1 = vld [vmem:[#allocation2 + $0x70] sm:$0xff] }
 0x327   : > { %2023 = vperm.xlu1 %4298, %v1849_v34   ;;  %1943 = vperm.xlu0 %4297, %v1833_v7  }
 0x32b   : > { %2028 = vperm.xlu1 %4298, %v1850_v4   ;;  %1948 = vperm.xlu0 %4297, %v1834_v46  }
 0x32f   : > { %2033 = vperm.xlu1 %4298, %v1851_v3   ;;  %1953 = vperm.xlu0 %4297, %v1835_v55   ;;  %v1860_v3 = vld [vmem:[#allocation2 + $0x30] sm:$0xff] }
 0x333   : > { %2038 = vperm.xlu1 %4298, %v1852_v9   ;;  %1958 = vperm.xlu0 %4297, %v1836_v10  }
 0x337   : > { %2043 = vperm.xlu1 %4298, %v1853_v56   ;;  %1963 = vperm.xlu0 %4297, %v1837_v15  }
 0x376   : > { %v5184_v12 = vpop.permute.xlu1 %1893  ;;  %v5186_v5 = vpop.permute.xlu0 %1888 }
 0x377   : > { %v2047_v11 = vmul.f32 %v5184_v12, %v1855_v16  ;;  %v2046_v17 = vmul.f32 %v5186_v5, %v1854_v49 }
 0x379   : > { %v2086_v61 = vadd.f32 %v5182_v6, %v2047_v11  ;;  %v2085_v18 = vadd.f32 %v5182_v6, %v2046_v17  ;;  %v1877_v17 = vld [vmem:[#allocation2 + $0xc0] sm:$0xff] }
 0x37a   : > { %v5192_v20 = vpop.permute.xlu1 %1973  ;;  %v5194_v13 = vpop.permute.xlu0 %1968 }
 0x37b   : > { %v2063_v19 = vmul.f32 %v5192_v20, %v1871_v22  ;;  %v2062_v36 = vmul.f32 %v5194_v13, %v1870_v24  ;;  %v2117_v21 = vmax.f32 %v2085_v18, 0.0  ;;  %v2118_v37 = vmax.f32 %v2086_v61, 0.0  ;;  %v1861_v22 = vld [vmem:[#allocation2 + $0x48] sm:$0xff] }
 0x37d   : > { %v2102_v32 = vadd.f32 %v5182_v6, %v2063_v19  ;;  %4110 = vmatprep.mubr.f32.mxu0 %v2117_v21  ;;  %v2101_v25 = vadd.f32 %v5182_v6, %v2062_v36 }
 0x37e   : > { %v5200_v27 = vpop.permute.xlu1 %1978  ;;  %4111 = vmatmul.mubr.f32.vlgmr.msra.gmra.mxu0 %v2118_v37  ;;  %v5202_v35 = vpop.permute.xlu0 %1898 }
 0x37f   : > { %v2064_v48 = vmul.f32 %v5200_v27, %v1872_v28  ;;  %v2048_v30 = vmul.f32 %v5202_v35, %v1856_v26  ;;  %v2133_v29 = vmax.f32 %v2101_v25, 0.0  ;;  %v2134_v38 = vmax.f32 %v2102_v32, 0.0  ;;  %v1878_v26 = vld [vmem:[#allocation2 + $0xa8] sm:$0xff]  ;;  %v1862_v32 = vld [vmem:[#allocation2 + $0x80] sm:$0xff] }
 0x381   : > { %v2103_v39 = vadd.f32 %v5182_v6, %v2064_v48  ;;  %v2087_v44 = vadd.f32 %v5182_v6, %v2048_v30  ;;  %4134 = vmatprep.mubr.f32.mxu1 %v2133_v29 }
 0x382   : > { %v5208_v31 = vpop.permute.xlu1 %1983  ;;  %4135 = vmatmul.mubr.f32.vlgmr.msra.gmra.mxu1 %v2134_v38  ;;  %v5210_v43 = vpop.permute.xlu0 %1903 }
 0x383   : > { %v2065_v41 = vmul.f32 %v5208_v31, %v1873_v40  ;;  %v2049_v50 = vmul.f32 %v5210_v43, %v1857_v33  ;;  %v2119_v52 = vmax.f32 %v2087_v44, 0.0  ;;  %v2135_v45 = vmax.f32 %v2103_v39, 0.0  ;;  %v1879_v44 = vld [vmem:[#allocation2 + $0xd0] sm:$0xff] }
 0x385   : > { %v2104_v8 = vadd.f32 %v5182_v6, %v2065_v41  ;;  %v2088_v53 = vadd.f32 %v5182_v6, %v2049_v50  ;;  %4113 = vmatprep.mubr.f32.mxu0 %v2119_v52  ;;  %4137 = vmatprep.mubr.f32.mxu1 %v2135_v45  ;;  %v1863_v41 = vld [vmem:[#allocation2 + $0x88] sm:$0xff] }
 0x386   : > { %v5216_v54 = vpop.permute.xlu1 %1988  ;;  %v5218_v62 = vpop.permute.xlu0 %1908 }
 0x387   : > { %v2066_v0 = vmul.f32 %v5216_v54, %v1874_v51  ;;  %v2050_v57 = vmul.f32 %v5218_v62, %v1858_v14  ;;  %v2120_v63 = vmax.f32 %v2088_v53, 0.0  ;;  %v2136_v23 = vmax.f32 %v2104_v8, 0.0 }
 0x389   : > { %v2105_v58 = vadd.f32 %v5182_v6, %v2066_v0  ;;  %v2089_v42 = vadd.f32 %v5182_v6, %v2050_v57  ;;  %4114 = vmatmul.mubr.f32.gmra.mxu0 %v2120_v63  ;;  %4138 = vmatmul.mubr.f32.gmra.mxu1 %v2136_v23  ;;  %v1880_v57 = vld [vmem:[#allocation2 + $0x10] sm:$0xff]  ;;  %v1864_v63 = vld [vmem:[#allocation2 + $0xe8] sm:$0xff] }
 0x38a   : > { %v5224_v59 = vpop.permute.xlu1 %1993  ;;  %v5226_v34 = vpop.permute.xlu0 %1913 }
 0x38b   : > { %v2067_v7 = vmul.f32 %v5224_v59, %v1875_v60  ;;  %v2051_v2 = vmul.f32 %v5226_v34, %v1859_v47  ;;  %v2121_v4 = vmax.f32 %v2089_v42, 0.0  ;;  %v2137_v46 = vmax.f32 %v2105_v58, 0.0 }
 0x38d   : > { %v2106_v55 = vadd.f32 %v5182_v6, %v2067_v7  ;;  %v2090_v9 = vadd.f32 %v5182_v6, %v2051_v2  ;;  %4116 = vmatprep.mubr.f32.mxu0 %v2121_v4  ;;  %4140 = vmatprep.mubr.f32.mxu1 %v2137_v46  ;;  %v1881_v46 = vld [vmem:[#allocation2 + $0x28] sm:$0xff] }
 0x38e   : > { %v5232_v10 = vpop.permute.xlu1 %1998  ;;  %v5234_v56 = vpop.permute.xlu0 %1918 }
 0x38f   : > { %v2068_v15 = vmul.f32 %v5232_v10, %v1876_v1  ;;  %v2052_v16 = vmul.f32 %v5234_v56, %v1860_v3  ;;  %v2122_v49 = vmax.f32 %v2090_v9, 0.0  ;;  %v2138_v11 = vmax.f32 %v2106_v55, 0.0  ;;  %v1865_v1 = vld [vmem:[#allocation2 + $0xb8] sm:$0xff] }
 0x391   : > { %v2107_v24 = vadd.f32 %v5182_v6, %v2068_v15  ;;  %v2091_v61 = vadd.f32 %v5182_v6, %v2052_v16  ;;  %4117 = vmatmul.mubr.f32.gmra.mxu0 %v2122_v49  ;;  %4141 = vmatmul.mubr.f32.gmra.mxu1 %v2138_v11 }
 0x392   : > { %v5240_v18 = vpop.permute.xlu1 %2003  ;;  %v5242_v19 = vpop.permute.xlu0 %1923 }
 0x393   : > { %v2069_v36 = vmul.f32 %v5240_v18, %v1877_v17  ;;  %v2053_v21 = vmul.f32 %v5242_v19, %v1861_v22  ;;  %v2123_v37 = vmax.f32 %v2091_v61, 0.0  ;;  %v2139_v28 = vmax.f32 %v2107_v24, 0.0  ;;  %v1882_v22 = vld [vmem:[#allocation2 + $0xa0] sm:$0xff] }
 0x394   : > { %v1866_v24 = vld [vmem:[#allocation2 + $0x60] sm:$0xff] }
 0x395   : > { %v2108_v25 = vadd.f32 %v5182_v6, %v2069_v36  ;;  %v2092_v48 = vadd.f32 %v5182_v6, %v2053_v21  ;;  %4119 = vmatprep.mubr.f32.mxu0 %v2123_v37  ;;  %4143 = vmatprep.mubr.f32.mxu1 %v2139_v28 }
 0x396   : > { %v5248_v30 = vpop.permute.xlu1 %2008  ;;  %v5250_v29 = vpop.permute.xlu0 %1928 }
 0x397   : > { %v2070_v38 = vmul.f32 %v5248_v30, %v1878_v26  ;;  %v2054_v40 = vmul.f32 %v5250_v29, %v1862_v32  ;;  %v2124_v33 = vmax.f32 %v2092_v48, 0.0  ;;  %v2140_v39 = vmax.f32 %v2108_v25, 0.0  ;;  %v1883_v48 = vld [vmem:[#allocation2 + $0xf8] sm:$0xff] }
 0x399   : > { %v2109_v50 = vadd.f32 %v5182_v6, %v2070_v38  ;;  %v2093_v52 = vadd.f32 %v5182_v6, %v2054_v40  ;;  %4120 = vmatmul.mubr.f32.gmra.mxu0 %v2124_v33  ;;  %4144 = vmatmul.mubr.f32.gmra.mxu1 %v2140_v39  ;;  %v1867_v38 = vld [vmem:[#allocation2 + $0xf0] sm:$0xff] }
 0x39a   : > { %v5256_v45 = vpop.permute.xlu1 %2013  ;;  %v5258_v51 = vpop.permute.xlu0 %1933 }
 0x39b   : > { %v2071_v14 = vmul.f32 %v5256_v45, %v1879_v44  ;;  %v2055_v8 = vmul.f32 %v5258_v51, %v1863_v41  ;;  %v2125_v53 = vmax.f32 %v2093_v52, 0.0  ;;  %v2141_v0 = vmax.f32 %v2109_v50, 0.0 }
 0x39d   : > { %v2110_v23 = vadd.f32 %v5182_v6, %v2071_v14  ;;  %v2094_v60 = vadd.f32 %v5182_v6, %v2055_v8  ;;  %4122 = vmatprep.mubr.f32.mxu0 %v2125_v53  ;;  %4146 = vmatprep.mubr.f32.mxu1 %v2141_v0  ;;  %v1884_v8 = vld [vmem:[#allocation2 + $0x20] sm:$0xff]  ;;  %v1868_v53 = vld [vmem:[#allocation2 + $0x8] sm:$0xff] }
 0x39e   : > { %v5264_v47 = vpop.permute.xlu1 %2018  ;;  %v5266_v58 = vpop.permute.xlu0 %1938 }
 0x39f   : > { %v2072_v42 = vmul.f32 %v5264_v47, %v1880_v57  ;;  %v2056_v7 = vmul.f32 %v5266_v58, %v1864_v63  ;;  %v2126_v2 = vmax.f32 %v2094_v60, 0.0  ;;  %v2142_v4 = vmax.f32 %v2110_v23, 0.0 }
 0x3a1   : > { %v2111_v3 = vadd.f32 %v5182_v6, %v2072_v42  ;;  %v2095_v55 = vadd.f32 %v5182_v6, %v2056_v7  ;;  %4123 = vmatmul.mubr.f32.gmra.mxu0 %v2126_v2  ;;  %4147 = vmatmul.mubr.f32.gmra.mxu1 %v2142_v4  ;;  %v1885_v4 = vld [vmem:[#allocation2 + $0x98] sm:$0xff] }
 0x3a2   : > { %v5272_v9 = vpop.permute.xlu1 %2023  ;;  %v5274_v15 = vpop.permute.xlu0 %1943 }
 0x3a3   : > { %v2073_v16 = vmul.f32 %v5272_v9, %v1881_v46  ;;  %v2057_v49 = vmul.f32 %v5274_v15, %v1865_v1  ;;  %v2127_v11 = vmax.f32 %v2095_v55, 0.0  ;;  %v2143_v17 = vmax.f32 %v2111_v3, 0.0  ;;  %v1869_v46 = vld [vmem:[#allocation2 + $0x78] sm:$0xff] }
 0x3a5   : > { %v2112_v61 = vadd.f32 %v5182_v6, %v2073_v16  ;;  %v2096_v36 = vadd.f32 %v5182_v6, %v2057_v49  ;;  %4125 = vmatprep.mubr.f32.mxu0 %v2127_v11  ;;  %4149 = vmatprep.mubr.f32.mxu1 %v2143_v17 }
 0x3a6   : > { %v5280_v21 = vpop.permute.xlu1 %2028  ;;  %v5282_v37 = vpop.permute.xlu0 %1948 }
 0x3a7   : > { %v2074_v28 = vmul.f32 %v5280_v21, %v1882_v22  ;;  %v2058_v26 = vmul.f32 %v5282_v37, %v1866_v24  ;;  %v2128_v32 = vmax.f32 %v2096_v36, 0.0  ;;  %v2144_v25 = vmax.f32 %v2112_v61, 0.0 }
 0x3a9   : > { %v2113_v40 = vadd.f32 %v5182_v6, %v2074_v28  ;;  %v2097_v33 = vadd.f32 %v5182_v6, %v2058_v26  ;;  %4126 = vmatmul.mubr.f32.gmra.mxu0 %v2128_v32  ;;  %4150 = vmatmul.mubr.f32.gmra.mxu1 %v2144_v25 }
 0x3aa   : > { %v5288_v39 = vpop.permute.xlu1 %2033  ;;  %v5290_v44 = vpop.permute.xlu0 %1953 }
 0x3ab   : > { %v2075_v41 = vmul.f32 %v5288_v39, %v1883_v48  ;;  %v2059_v50 = vmul.f32 %v5290_v44, %v1867_v38  ;;  %v2129_v52 = vmax.f32 %v2097_v33, 0.0  ;;  %v2145_v14 = vmax.f32 %v2113_v40, 0.0 }
 0x3ad   : > { %v2114_v0 = vadd.f32 %v5182_v6, %v2075_v41  ;;  %v2098_v57 = vadd.f32 %v5182_v6, %v2059_v50  ;;  %4128 = vmatprep.mubr.f32.mxu0 %v2129_v52  ;;  %4152 = vmatprep.mubr.f32.mxu1 %v2145_v14 }
 0x3ae   : > { %v5296_v63 = vpop.permute.xlu1 %2038  ;;  %v5298_v23 = vpop.permute.xlu0 %1958 }
 0x3af   : > { %v2076_v60 = vmul.f32 %v5296_v63, %v1884_v8  ;;  %v2060_v42 = vmul.f32 %v5298_v23, %v1868_v53  ;;  %v2130_v7 = vmax.f32 %v2098_v57, 0.0  ;;  %v2146_v2 = vmax.f32 %v2114_v0, 0.0 }
 0x3b1   : > { %v2115_v1 = vadd.f32 %v5182_v6, %v2076_v60  ;;  %v2099_v3 = vadd.f32 %v5182_v6, %v2060_v42  ;;  %4129 = vmatmul.mubr.f32.gmra.mxu0 %v2130_v7  ;;  %4153 = vmatmul.mubr.f32.gmra.mxu1 %v2146_v2 }
 0x3b2   : > { %v5304_v55 = vpop.permute.xlu1 %2043  ;;  %v5306_v16 = vpop.permute.xlu0 %1963 }
 0x3b3   : > { %v2077_v49 = vmul.f32 %v5304_v55, %v1885_v4  ;;  %v2061_v11 = vmul.f32 %v5306_v16, %v1869_v46  ;;  %v2131_v17 = vmax.f32 %v2099_v3, 0.0  ;;  %v2147_v22 = vmax.f32 %v2115_v1, 0.0 }
 0x3b5   : > { %v2116_v24 = vadd.f32 %v5182_v6, %v2077_v49  ;;  %v2100_v61 = vadd.f32 %v5182_v6, %v2061_v11  ;;  %4131 = vmatprep.mubr.f32.mxu0 %v2131_v17  ;;  %4155 = vmatprep.mubr.f32.mxu1 %v2147_v22 }
 0x3b7   : > { %v2148_v36 = vmax.f32 %v2116_v24, 0.0  ;;  %v2132_v28 = vmax.f32 %v2100_v61, 0.0 }
 0x3b9   : > { %4132 = vmatmul.mubr.f32.gmra.mxu0 %v2132_v28  ;;  %4156 = vmatmul.mubr.f32.gmra.mxu1 %v2148_v36 }
 0x43e   : > { %v4112_v26 = vpop.f32.mrf.mxu0 }
 0x43f   : > { %v2391_v25 = vmul.f32 %v4112_v26, %v5184_v12 }
 0x440   : > { %v2231_v32 = vpop.f32.mrf.mxu0 }
 0x441   : > { %v2390_v48 = vmul.f32 %v2231_v32, %v5186_v5 }
 0x442   : > { %v4136_v38 = vpop.f32.mrf.mxu1 }
 0x443   : > { %v3490_v40 = vpack.c.bf16 %v2391_v25, %v2390_v48  ;;  %v2407_v6 = vmul.f32 %v4136_v38, %v5192_v20 }
 0x444   : > { %v2311_v33 = vpop.f32.mrf.mxu1 }
 0x445   : > { %3491 = vst [vmem:[%s5316_s29] sm:$0xff] %v3490_v40   ;;  %v2406_v41 = vmul.f32 %v2311_v33, %v5194_v13 }
 0x447   : > { %v3530_v50 = vpack.c.bf16 %v2407_v6, %v2406_v41 }
 0x449   : > { %3574 = vst [vmem:[%s5316_s29 + $0x40] sm:$0xff] %v3530_v50   ;;  %v4115_v52 = vpop.f32.mrf.mxu0  ;;  %v4139_v12 = vpop.f32.mrf.mxu1 }
 0x44a   : > { %v2393_v8 = vmul.f32 %v4115_v52, %v5210_v43  ;;  %v2409_v53 = vmul.f32 %v4139_v12, %v5208_v31 }
 0x44b   : > { %v2241_v14 = vpop.f32.mrf.mxu0  ;;  %v2321_v5 = vpop.f32.mrf.mxu1 }
 0x44c   : > { %v2392_v0 = vmul.f32 %v2241_v14, %v5202_v35  ;;  %v2408_v57 = vmul.f32 %v2321_v5, %v5200_v27 }
 0x44e   : > { %v3495_v60 = vpack.c.bf16 %v2393_v8, %v2392_v0  ;;  %v3535_v20 = vpack.c.bf16 %v2409_v53, %v2408_v57 }
 0x450   : > { %3567 = vst [vmem:[%s5316_s29 + $0x8] sm:$0xff] %v3495_v60   ;;  %3575 = vst [vmem:[%s5316_s29 + $0x48] sm:$0xff] %v3535_v20  }
 0x451   : > { %v4118_v13 = vpop.f32.mrf.mxu0  ;;  %v4142_v42 = vpop.f32.mrf.mxu1 }
 0x452   : > { %v2395_v4 = vmul.f32 %v4118_v13, %v5226_v34  ;;  %v2411_v43 = vmul.f32 %v4142_v42, %v5224_v59 }
 0x453   : > { %v2251_v7 = vpop.f32.mrf.mxu0  ;;  %v2331_v2 = vpop.f32.mrf.mxu1 }
 0x454   : > { %v2394_v31 = vmul.f32 %v2251_v7, %v5218_v62  ;;  %v2410_v35 = vmul.f32 %v2331_v2, %v5216_v54 }
 0x456   : > { %v3500_v27 = vpack.c.bf16 %v2395_v4, %v2394_v31  ;;  %v3540_v46 = vpack.c.bf16 %v2411_v43, %v2410_v35 }
 0x458   : > { %3568 = vst [vmem:[%s5316_s29 + $0x10] sm:$0xff] %v3500_v27   ;;  %3576 = vst [vmem:[%s5316_s29 + $0x50] sm:$0xff] %v3540_v46  }
 0x459   : > { %v4121_v1 = vpop.f32.mrf.mxu0  ;;  %v4145_v3 = vpop.f32.mrf.mxu1 }
 0x45a   : > { %v2397_v17 = vmul.f32 %v4121_v1, %v5242_v19  ;;  %v2413_v34 = vmul.f32 %v4145_v3, %v5240_v18 }
 0x45b   : > { %v2261_v49 = vpop.f32.mrf.mxu0  ;;  %v2341_v11 = vpop.f32.mrf.mxu1 }
 0x45c   : > { %v2396_v59 = vmul.f32 %v2261_v49, %v5234_v56  ;;  %v2412_v62 = vmul.f32 %v2341_v11, %v5232_v10 }
 0x45e   : > { %v3505_v54 = vpack.c.bf16 %v2397_v17, %v2396_v59  ;;  %v3545_v22 = vpack.c.bf16 %v2413_v34, %v2412_v62 }
 0x460   : > { %3569 = vst [vmem:[%s5316_s29 + $0x18] sm:$0xff] %v3505_v54   ;;  %3577 = vst [vmem:[%s5316_s29 + $0x58] sm:$0xff] %v3545_v22  }
 0x461   : > { %v4124_v24 = vpop.f32.mrf.mxu0  ;;  %v4148_v61 = vpop.f32.mrf.mxu1 }
 0x462   : > { %v2399_v26 = vmul.f32 %v4124_v24, %v5258_v51  ;;  %v2415_v19 = vmul.f32 %v4148_v61, %v5256_v45 }
 0x463   : > { %v2271_v36 = vpop.f32.mrf.mxu0  ;;  %v2351_v28 = vpop.f32.mrf.mxu1 }
 0x464   : > { %v2398_v18 = vmul.f32 %v2271_v36, %v5250_v29  ;;  %v2414_v56 = vmul.f32 %v2351_v28, %v5248_v30 }
 0x466   : > { %v3510_v10 = vpack.c.bf16 %v2399_v26, %v2398_v18  ;;  %v3550_v32 = vpack.c.bf16 %v2415_v19, %v2414_v56 }
 0x468   : > { %3570 = vst [vmem:[%s5316_s29 + $0x20] sm:$0xff] %v3510_v10   ;;  %3578 = vst [vmem:[%s5316_s29 + $0x60] sm:$0xff] %v3550_v32  }
 0x469   : > { %v4127_v25 = vpop.f32.mrf.mxu0  ;;  %v4151_v48 = vpop.f32.mrf.mxu1 }
 0x46a   : > { %v2401_v33 = vmul.f32 %v4127_v25, %v5274_v15  ;;  %v2417_v51 = vmul.f32 %v4151_v48, %v5272_v9 }
 0x46b   : > { %v2281_v38 = vpop.f32.mrf.mxu0  ;;  %v2361_v40 = vpop.f32.mrf.mxu1 }
 0x46c   : > { %v2400_v45 = vmul.f32 %v2281_v38, %v5266_v58  ;;  %v2416_v29 = vmul.f32 %v2361_v40, %v5264_v47 }
 0x46e   : > { %v3515_v30 = vpack.c.bf16 %v2401_v33, %v2400_v45  ;;  %v3555_v6 = vpack.c.bf16 %v2417_v51, %v2416_v29 }
 0x470   : > { %3571 = vst [vmem:[%s5316_s29 + $0x28] sm:$0xff] %v3515_v30   ;;  %3579 = vst [vmem:[%s5316_s29 + $0x68] sm:$0xff] %v3555_v6  }
 0x471   : > { %v4130_v41 = vpop.f32.mrf.mxu0  ;;  %v4154_v50 = vpop.f32.mrf.mxu1 }
 0x472   : > { %v2403_v14 = vmul.f32 %v4130_v41, %v5290_v44  ;;  %v2419_v15 = vmul.f32 %v4154_v50, %v5288_v39 }
 0x473   : > { %v2291_v52 = vpop.f32.mrf.mxu0  ;;  %v2371_v12 = vpop.f32.mrf.mxu1 }
 0x474   : > { %v2402_v9 = vmul.f32 %v2291_v52, %v5282_v37  ;;  %v2418_v58 = vmul.f32 %v2371_v12, %v5280_v21 }
 0x476   : > { %v3520_v47 = vpack.c.bf16 %v2403_v14, %v2402_v9  ;;  %v3560_v5 = vpack.c.bf16 %v2419_v15, %v2418_v58 }
 0x478   : > { %3572 = vst [vmem:[%s5316_s29 + $0x30] sm:$0xff] %v3520_v47   ;;  %3580 = vst [vmem:[%s5316_s29 + $0x70] sm:$0xff] %v3560_v5  }
 0x479   : > { %v4133_v8 = vpop.f32.mrf.mxu0  ;;  %v4157_v53 = vpop.f32.mrf.mxu1 }
 0x47a   : > { %v2405_v60 = vmul.f32 %v4133_v8, %v5306_v16  ;;  %v2421_v44 = vmul.f32 %v4157_v53, %v5304_v55 }
 0x47b   : > { %v2301_v0 = vpop.f32.mrf.mxu0  ;;  %v2381_v57 = vpop.f32.mrf.mxu1 }
 0x47c   : > { %v2404_v39 = vmul.f32 %v2301_v0, %v5298_v23  ;;  %v2420_v37 = vmul.f32 %v2381_v57, %v5296_v63 }
 0x47e   : > { %v3525_v20 = vpack.c.bf16 %v2405_v60, %v2404_v39  ;;  %v3565_v13 = vpack.c.bf16 %v2421_v44, %v2420_v37 }
 0x480   : > { %3573 = vst [vmem:[%s5316_s29 + $0x38] sm:$0xff] %v3525_v20   ;;  %3581 = vst [vmem:[%s5316_s29 + $0x78] sm:$0xff] %v3565_v13  }
 0x481 PF: > { %2589 = sbr.rel (!%p1136_p9) target bundleno = 1660 (0x67c), region = 64  ;;  %v2592_v21 = vld [vmem:[%s4607_s15 + $0x10] sm:$0xff] (%p1136_p9)  ;;  %v2590_v23 = vld [vmem:[%s4607_s15] sm:$0xff] (%p1136_p9)  ;;  %v4471_v55 = vmov (%p1136_p9), 0   ;;  %v2593_v63 = vld [vmem:[%s4607_s15 + $0x18] sm:$0xff] (%p1136_p9)  ;;  %v2885_v32 = vlaneseq (%p1136_p9) }
 0x482   : > { %4300 = vset.pattern.permute.xlu1 (%p1136_p9), %v4471_v55  ;;  %4299 = vset.pattern.permute.xlu0 (%p1136_p9), %v4471_v55  ;;  %v2591_v16 = vld [vmem:[%s4607_s15 + $0x8] sm:$0xff] (%p1136_p9)  ;;  %v2594_v7 = vld [vmem:[%s4607_s15 + $0x20] sm:$0xff] (%p1136_p9)  ;;  %v2597_v2 = vld [vmem:[%s4607_s15 + $0x38] sm:$0xff] (%p1136_p9) }
 0x483   : > { %2666 = vperm.xlu1 (%p1136_p9), %4300, %v2592_v21   ;;  %2656 = vperm.xlu0 (%p1136_p9), %4299, %v2590_v23   ;;  %v2595_v42 = vld [vmem:[%s4607_s15 + $0x28] sm:$0xff] (%p1136_p9)  ;;  %v2596_v4 = vld [vmem:[%s4607_s15 + $0x30] sm:$0xff] (%p1136_p9)  ;;  %v2598_v31 = vld [vmem:[%s4607_s15 + $0x40] sm:$0xff] (%p1136_p9)  ;;  %v5398_v38 = vand.u32 (%p1136_p9), 127, %v2885_v32 }
 0x484   : > { %v2599_v43 = vld [vmem:[%s4607_s15 + $0x48] sm:$0xff] (%p1136_p9)  ;;  %v2601_v35 = vld [vmem:[%s4607_s15 + $0x58] sm:$0xff] (%p1136_p9)  ;;  %v2600_v27 = vld [vmem:[%s4607_s15 + $0x50] sm:$0xff] (%p1136_p9) }
 0x485   : > { %v2603_v46 = vld [vmem:[%s4607_s15 + $0x68] sm:$0xff] (%p1136_p9)  ;;  %v2602_v1 = vld [vmem:[%s4607_s15 + $0x60] sm:$0xff] (%p1136_p9)  ;;  %v2605_v3 = vld [vmem:[%s4607_s15 + $0x78] sm:$0xff] (%p1136_p9)  ;;  %vm2887_vm0 = vcmp.lt.s32.totalorder (%p1136_p9), %v5398_v38, 7 }
 0x486   : > { %v2604_v49 = vld [vmem:[%s4607_s15 + $0x70] sm:$0xff]  ;;  %v2607_v11 = vld [vmem:[%s4607_s15 + $0x88] sm:$0xff]  ;;  %v2606_v17 = vld [vmem:[%s4607_s15 + $0x80] sm:$0xff] }
 0x487   : > { %2671 = vperm.xlu1 %4300, %v2593_v63   ;;  %2661 = vperm.xlu0 %4299, %v2591_v16   ;;  %v2609_v34 = vld [vmem:[%s4607_s15 + $0x98] sm:$0xff]  ;;  %v2608_v59 = vld [vmem:[%s4607_s15 + $0x90] sm:$0xff]  ;;  %v2611_v62 = vld [vmem:[%s4607_s15 + $0xa8] sm:$0xff] }
 0x488   : > { %v2610_v54 = vld [vmem:[%s4607_s15 + $0xa0] sm:$0xff]  ;;  %v2613_v22 = vld [vmem:[%s4607_s15 + $0xb8] sm:$0xff]  ;;  %v2612_v24 = vld [vmem:[%s4607_s15 + $0xb0] sm:$0xff] }
 0x489   : > { %v2615_v61 = vld [vmem:[%s4607_s15 + $0xc8] sm:$0xff]  ;;  %v2614_v36 = vld [vmem:[%s4607_s15 + $0xc0] sm:$0xff]  ;;  %v2617_v28 = vld [vmem:[%s4607_s15 + $0xd8] sm:$0xff] }
 0x48a   : > { %v2616_v26 = vld [vmem:[%s4607_s15 + $0xd0] sm:$0xff]  ;;  %v2619_v19 = vld [vmem:[%s4607_s15 + $0xe8] sm:$0xff]  ;;  %v2618_v18 = vld [vmem:[%s4607_s15 + $0xe0] sm:$0xff] }
 0x48b   : > { %2681 = vperm.xlu1 %4300, %v2595_v42   ;;  %2676 = vperm.xlu0 %4299, %v2594_v7   ;;  %v2621_v56 = vld [vmem:[%s4607_s15 + $0xf8] sm:$0xff]  ;;  %v2620_v10 = vld [vmem:[%s4607_s15 + $0xf0] sm:$0xff]  ;;  %v2624_v25 = vld [vmem:[#allocation2 + $0xd8] sm:$0xff] }
 0x48c   : > { %v2622_v48 = vld [vmem:[#allocation2 + $0xb0] sm:$0xff]  ;;  %v2625_v30 = vld [vmem:[#allocation2 + $0x18] sm:$0xff]  ;;  %v2623_v6 = vld [vmem:[#allocation2] sm:$0xff] }
 0x48d   : > { %v5403_v51 = vld [vmem:[%s5809_s4] ss:$0 sm:$0xff]  ;;  %v2627_v58 = vld [vmem:[#allocation2 + $0x68] sm:$0xff] }
 0x48e   : > { %v2626_v47 = vld [vmem:[#allocation2 + $0x50] sm:$0xff]  ;;  %v2629_v37 = vld [vmem:[#allocation2 + $0x48] sm:$0xff] }
 0x48f   : > { %2691 = vperm.xlu1 %4300, %v2597_v2   ;;  %2686 = vperm.xlu0 %4299, %v2596_v4   ;;  %v2628_v20 = vld [vmem:[#allocation2 + $0x30] sm:$0xff]  ;;  %v2631_v2 = vld [vmem:[#allocation2 + $0x88] sm:$0xff]  ;;  %v2630_v4 = vld [vmem:[#allocation2 + $0x80] sm:$0xff] }
 0x493   : > { %2701 = vperm.xlu1 %4300, %v2599_v43   ;;  %2696 = vperm.xlu0 %4299, %v2598_v31  }
 0x497   : > { %2711 = vperm.xlu1 %4300, %v2601_v35   ;;  %2706 = vperm.xlu0 %4299, %v2600_v27  }
 0x49b   : > { %2721 = vperm.xlu1 %4300, %v2603_v46   ;;  %2716 = vperm.xlu0 %4299, %v2602_v1  }
 0x49f   : > { %2731 = vperm.xlu1 %4300, %v2605_v3   ;;  %2726 = vperm.xlu0 %4299, %v2604_v49  }
 0x4a3   : > { %2741 = vperm.xlu1 %4300, %v2607_v11   ;;  %2736 = vperm.xlu0 %4299, %v2606_v17   ;;  %v2633_v11 = vld [vmem:[#allocation2 + $0xb8] sm:$0xff]  ;;  %v2632_v17 = vld [vmem:[#allocation2 + $0xe8] sm:$0xff] }
 0x4a7   : > { %2751 = vperm.xlu1 %4300, %v2609_v34   ;;  %2746 = vperm.xlu0 %4299, %v2608_v59  }
 0x4ab   : > { %2761 = vperm.xlu1 %4300, %v2611_v62   ;;  %2756 = vperm.xlu0 %4299, %v2610_v54  }
 0x4af   : > { %2771 = vperm.xlu1 %4300, %v2613_v22   ;;  %2766 = vperm.xlu0 %4299, %v2612_v24  }
 0x4b3   : > { %2781 = vperm.xlu1 %4300, %v2615_v61   ;;  %2776 = vperm.xlu0 %4299, %v2614_v36  }
 0x4b7   : > { %2791 = vperm.xlu1 %4300, %v2617_v28   ;;  %2786 = vperm.xlu0 %4299, %v2616_v26   ;;  %v2635_v28 = vld [vmem:[#allocation2 + $0xf0] sm:$0xff]  ;;  %v2634_v26 = vld [vmem:[#allocation2 + $0x60] sm:$0xff] }
 0x4bb   : > { %2801 = vperm.xlu1 %4300, %v2619_v19   ;;  %2796 = vperm.xlu0 %4299, %v2618_v18  }
 0x4bf   : > { %2811 = vperm.xlu1 %4300, %v2621_v56   ;;  %2806 = vperm.xlu0 %4299, %v2620_v10  }
 0x4fe   : > { %v2667_v40 = vpop.permute.xlu1 %2666  ;;  %v2657_v33 = vpop.permute.xlu0 %2656 }
 0x4ff   : > { %v2816_v45 = vmul.f32 %v2667_v40, %v2624_v25  ;;  %v2814_v29 = vmul.f32 %v2657_v33, %v2622_v48  ;;  %v2637_v33 = vld [vmem:[#allocation2 + $0x78] sm:$0xff] }
 0x501   : > { %v2853_v41 = vadd.f32 %v5403_v51, %v2814_v29  ;;  %v2855_v50 = vadd.f32 %v5403_v51, %v2816_v45  ;;  %v2636_v45 = vld [vmem:[#allocation2 + $0x8] sm:$0xff] }
 0x502   : > { %v2672_v52 = vpop.permute.xlu1 %2671  ;;  %v2662_v12 = vpop.permute.xlu0 %2661 }
 0x503   : > { %v2817_v14 = vmul.f32 %v2672_v52, %v2625_v30  ;;  %v2815_v15 = vmul.f32 %v2662_v12, %v2623_v6  ;;  %v5410_v9 = vsel %vm2887_vm0, %v2853_v41, -1e+30  ;;  %v5415_v5 = vsel %vm2887_vm0, %v2855_v50, -1e+30 }
 0x504   : > { %2920 = vmax.xlane.f32.xlu0 %v5410_v9 }
 0x505   : > { %v2854_v8 = vadd.f32 %v5403_v51, %v2815_v15  ;;  %v2856_v57 = vadd.f32 %v5403_v51, %v2817_v14  ;;  %v2639_v15 = vld [vmem:[#allocation2 + $0x58] sm:$0xff] }
 0x506   : > { %v2682_v53 = vpop.permute.xlu1 %2681  ;;  %v2677_v0 = vpop.permute.xlu0 %2676 }
 0x507   : > { %v2819_v60 = vmul.f32 %v2682_v53, %v2627_v58  ;;  %v2818_v44 = vmul.f32 %v2677_v0, %v2626_v47  ;;  %v5421_v39 = vsel %vm2887_vm0, %v2854_v8, -1e+30  ;;  %v5428_v55 = vsel %vm2887_vm0, %v2856_v57, -1e+30  ;;  %v2638_v58 = vld [vmem:[#allocation2 + $0x38] sm:$0xff] }
 0x508   : > { %2924 = vmax.xlane.f32.xlu0 %v5415_v5  ;;  %2922 = vmax.xlane.f32.xlu1 %v5421_v39 }
 0x509   : > { %v2857_v13 = vadd.f32 %v5403_v51, %v2818_v44  ;;  %v2858_v7 = vadd.f32 %v5403_v51, %v2819_v60 }
 0x50a   : > { %v2692_v21 = vpop.permute.xlu1 %2691  ;;  %v2687_v23 = vpop.permute.xlu0 %2686 }
 0x50b   : > { %v2821_v63 = vmul.f32 %v2692_v21, %v2629_v37  ;;  %v2820_v16 = vmul.f32 %v2687_v23, %v2628_v20  ;;  %v5432_v42 = vsel %vm2887_vm0, %v2857_v13, -1e+30  ;;  %v5441_v3 = vsel %vm2887_vm0, %v2858_v7, -1e+30  ;;  %v2641_v20 = vld [vmem:[#allocation2 + $0xc8] sm:$0xff]  ;;  %v2640_v13 = vld [vmem:[#allocation2 + $0x40] sm:$0xff] }
 0x50c   : > { %2926 = vmax.xlane.f32.xlu0 %v5428_v55  ;;  %2928 = vmax.xlane.f32.xlu1 %v5432_v42 }
 0x50d   : > { %v2859_v43 = vadd.f32 %v5403_v51, %v2820_v16  ;;  %v2860_v27 = vadd.f32 %v5403_v51, %v2821_v63 }
 0x50e   : > { %v2702_v31 = vpop.permute.xlu1 %2701  ;;  %v2697_v35 = vpop.permute.xlu0 %2696 }
 0x50f   : > { %v2823_v46 = vmul.f32 %v2702_v31, %v2631_v2  ;;  %v2822_v1 = vmul.f32 %v2697_v35, %v2630_v4  ;;  %v5445_v49 = vsel %vm2887_vm0, %v2859_v43, -1e+30  ;;  %v5452_v54 = vsel %vm2887_vm0, %v2860_v27, -1e+30  ;;  %v2643_v31 = vld [vmem:[#allocation2 + $0x90] sm:$0xff]  ;;  %v2642_v35 = vld [vmem:[#allocation2 + $0xe0] sm:$0xff] }
 0x510   : > { %2930 = vmax.xlane.f32.xlu0 %v5441_v3  ;;  %2932 = vmax.xlane.f32.xlu1 %v5445_v49 }
 0x511   : > { %v2861_v34 = vadd.f32 %v5403_v51, %v2822_v1  ;;  %v2862_v36 = vadd.f32 %v5403_v51, %v2823_v46 }
 0x512   : > { %v2712_v59 = vpop.permute.xlu1 %2711  ;;  %v2707_v62 = vpop.permute.xlu0 %2706 }
 0x513   : > { %v2825_v22 = vmul.f32 %v2712_v59, %v2633_v11  ;;  %v2824_v24 = vmul.f32 %v2707_v62, %v2632_v17  ;;  %v5456_v61 = vsel %vm2887_vm0, %v2861_v34, -1e+30  ;;  %v5465_v48 = vsel %vm2887_vm0, %v2862_v36, -1e+30 }
 0x514   : > { %2934 = vmax.xlane.f32.xlu0 %v5452_v54  ;;  %2936 = vmax.xlane.f32.xlu1 %v5456_v61 }
 0x515   : > { %v2863_v19 = vadd.f32 %v5403_v51, %v2824_v24  ;;  %v2864_v10 = vadd.f32 %v5403_v51, %v2825_v22  ;;  %v2645_v22 = vld [vmem:[#allocation2 + $0xc0] sm:$0xff]  ;;  %v2644_v24 = vld [vmem:[#allocation2 + $0x70] sm:$0xff] }
 0x516   : > { %v2722_v18 = vpop.permute.xlu1 %2721  ;;  %v2717_v56 = vpop.permute.xlu0 %2716 }
 0x517   : > { %v2827_v32 = vmul.f32 %v2722_v18, %v2635_v28  ;;  %v2826_v25 = vmul.f32 %v2717_v56, %v2634_v26  ;;  %v5469_v40 = vsel %vm2887_vm0, %v2863_v19, -1e+30  ;;  %v5476_v41 = vsel %vm2887_vm0, %v2864_v10, -1e+30 }
 0x518   : > { %2938 = vmax.xlane.f32.xlu0 %v5465_v48  ;;  %2940 = vmax.xlane.f32.xlu1 %v5469_v40 }
 0x519   : > { %v2865_v29 = vadd.f32 %v5403_v51, %v2826_v25  ;;  %v2866_v14 = vadd.f32 %v5403_v51, %v2827_v32  ;;  %v2647_v25 = vld [vmem:[#allocation2 + $0xd0] sm:$0xff] }
 0x51a   : > { %v2732_v30 = vpop.permute.xlu1 %2731  ;;  %v2727_v6 = vpop.permute.xlu0 %2726 }
 0x51b   : > { %v2829_v50 = vmul.f32 %v2732_v30, %v2637_v33  ;;  %v2828_v52 = vmul.f32 %v2727_v6, %v2636_v45  ;;  %v5480_v12 = vsel %vm2887_vm0, %v2865_v29, -1e+30  ;;  %v5489_v44 = vsel %vm2887_vm0, %v2866_v14, -1e+30  ;;  %v2646_v33 = vld [vmem:[#allocation2 + $0xa8] sm:$0xff] }
 0x51c   : > { %2942 = vmax.xlane.f32.xlu0 %v5476_v41  ;;  %2944 = vmax.xlane.f32.xlu1 %v5480_v12 }
 0x51d   : > { %v2867_v47 = vadd.f32 %v5403_v51, %v2828_v52  ;;  %v2868_v0 = vadd.f32 %v5403_v51, %v2829_v50 }
 0x51e   : > { %v2742_v8 = vpop.permute.xlu1 %2741  ;;  %v2737_v53 = vpop.permute.xlu0 %2736 }
 0x51f   : > { %v2831_v57 = vmul.f32 %v2742_v8, %v2639_v15  ;;  %v2830_v60 = vmul.f32 %v2737_v53, %v2638_v58  ;;  %v5493_v37 = vsel %vm2887_vm0, %v2867_v47, -1e+30  ;;  %v5500_v16 = vsel %vm2887_vm0, %v2868_v0, -1e+30  ;;  %v2649_v58 = vld [vmem:[#allocation2 + $0x28] sm:$0xff]  ;;  %v2648_v47 = vld [vmem:[#allocation2 + $0x10] sm:$0xff] }
 0x520   : > { %2946 = vmax.xlane.f32.xlu0 %v5489_v44  ;;  %2948 = vmax.xlane.f32.xlu1 %v5493_v37 }
 0x521   : > { %v2869_v21 = vadd.f32 %v5403_v51, %v2830_v60  ;;  %v2870_v43 = vadd.f32 %v5403_v51, %v2831_v57 }
 0x522   : > { %v2752_v23 = vpop.permute.xlu1 %2751  ;;  %v2747_v63 = vpop.permute.xlu0 %2746 }
 0x523   : > { %v2833_v7 = vmul.f32 %v2752_v23, %v2641_v20  ;;  %v2832_v2 = vmul.f32 %v2747_v63, %v2640_v13  ;;  %v5504_v4 = vsel %vm2887_vm0, %v2869_v21, -1e+30  ;;  %v5513_v59 = vsel %vm2887_vm0, %v2870_v43, -1e+30  ;;  %v2651_v23 = vld [vmem:[#allocation2 + $0xf8] sm:$0xff]  ;;  %v2650_v63 = vld [vmem:[#allocation2 + $0xa0] sm:$0xff] }
 0x524   : > { %2950 = vmax.xlane.f32.xlu0 %v5500_v16  ;;  %2952 = vmax.xlane.f32.xlu1 %v5504_v4 }
 0x525   : > { %v2871_v27 = vadd.f32 %v5403_v51, %v2832_v2  ;;  %v2872_v11 = vadd.f32 %v5403_v51, %v2833_v7 }
 0x526   : > { %v2762_v46 = vpop.permute.xlu1 %2761  ;;  %v2757_v1 = vpop.permute.xlu0 %2756 }
 0x527   : > { %v2835_v17 = vmul.f32 %v2762_v46, %v2643_v31  ;;  %v2834_v34 = vmul.f32 %v2757_v1, %v2642_v35  ;;  %v5517_v62 = vsel %vm2887_vm0, %v2871_v27, -1e+30  ;;  %v5524_v19 = vsel %vm2887_vm0, %v2872_v11, -1e+30  ;;  %v2653_v11 = vld [vmem:[#allocation2 + $0x98] sm:$0xff] }
 0x528   : > { %2954 = vmax.xlane.f32.xlu0 %v5513_v59  ;;  %2956 = vmax.xlane.f32.xlu1 %v5517_v62 }
 0x529   : > { %v2873_v36 = vadd.f32 %v5403_v51, %v2834_v34  ;;  %v2874_v32 = vadd.f32 %v5403_v51, %v2835_v17  ;;  %v2652_v17 = vld [vmem:[#allocation2 + $0x20] sm:$0xff] }
 0x52a   : > { %v2772_v28 = vpop.permute.xlu1 %2771  ;;  %v2767_v26 = vpop.permute.xlu0 %2766 }
 0x52b   : > { %v2837_v18 = vmul.f32 %v2772_v28, %v2645_v22  ;;  %v2836_v56 = vmul.f32 %v2767_v26, %v2644_v24  ;;  %v5528_v10 = vsel %vm2887_vm0, %v2873_v36, -1e+30  ;;  %v5537_v14 = vsel %vm2887_vm0, %v2874_v32, -1e+30 }
 0x52c   : > { %2958 = vmax.xlane.f32.xlu0 %v5524_v19  ;;  %2960 = vmax.xlane.f32.xlu1 %v5528_v10 }
 0x52d   : > { %v2875_v45 = vadd.f32 %v5403_v51, %v2836_v56  ;;  %v2876_v6 = vadd.f32 %v5403_v51, %v2837_v18 }
 0x52e   : > { %v2782_v29 = vpop.permute.xlu1 %2781  ;;  %v2777_v30 = vpop.permute.xlu0 %2776 }
 0x52f   : > { %v2839_v50 = vmul.f32 %v2782_v29, %v2647_v25  ;;  %v2838_v52 = vmul.f32 %v2777_v30, %v2646_v33  ;;  %v5541_v15 = vsel %vm2887_vm0, %v2875_v45, -1e+30  ;;  %v5548_v57 = vsel %vm2887_vm0, %v2876_v6, -1e+30 }
 0x530   : > { %2962 = vmax.xlane.f32.xlu0 %v5537_v14  ;;  %2964 = vmax.xlane.f32.xlu1 %v5541_v15 }
 0x531   : > { %v2877_v8 = vadd.f32 %v5403_v51, %v2838_v52  ;;  %v2878_v21 = vadd.f32 %v5403_v51, %v2839_v50 }
 0x532   : > { %v2792_v53 = vpop.permute.xlu1 %2791  ;;  %v2787_v0 = vpop.permute.xlu0 %2786 }
 0x533   : > { %v2841_v60 = vmul.f32 %v2792_v53, %v2649_v58  ;;  %v2840_v20 = vmul.f32 %v2787_v0, %v2648_v47  ;;  %v5552_v13 = vsel %vm2887_vm0, %v2877_v8, -1e+30  ;;  %v5561_v46 = vsel %vm2887_vm0, %v2878_v21, -1e+30 }
 0x534   : > { %2966 = vmax.xlane.f32.xlu0 %v5548_v57  ;;  %2968 = vmax.xlane.f32.xlu1 %v5552_v13 }
 0x535   : > { %v2879_v7 = vadd.f32 %v5403_v51, %v2840_v20  ;;  %v2880_v31 = vadd.f32 %v5403_v51, %v2841_v60 }
 0x536   : > { %v2802_v2 = vpop.permute.xlu1 %2801  ;;  %v2797_v43 = vpop.permute.xlu0 %2796 }
 0x537   : > { %v2843_v35 = vmul.f32 %v2802_v2, %v2651_v23  ;;  %v2842_v27 = vmul.f32 %v2797_v43, %v2650_v63  ;;  %v5565_v1 = vsel %vm2887_vm0, %v2879_v7, -1e+30  ;;  %v5572_v36 = vsel %vm2887_vm0, %v2880_v31, -1e+30 }
 0x538   : > { %2970 = vmax.xlane.f32.xlu0 %v5561_v46  ;;  %2972 = vmax.xlane.f32.xlu1 %v5565_v1 }
 0x539   : > { %v2881_v34 = vadd.f32 %v5403_v51, %v2842_v27  ;;  %v2882_v56 = vadd.f32 %v5403_v51, %v2843_v35 }
 0x53a   : > { %v2812_v22 = vpop.permute.xlu1 %2811  ;;  %v2807_v24 = vpop.permute.xlu0 %2806 }
 0x53b   : > { %v2845_v28 = vmul.f32 %v2812_v22, %v2653_v11  ;;  %v2844_v26 = vmul.f32 %v2807_v24, %v2652_v17  ;;  %v5576_v18 = vsel %vm2887_vm0, %v2881_v34, -1e+30  ;;  %v5585_v33 = vsel %vm2887_vm0, %v2882_v56, -1e+30 }
 0x53c   : > { %2974 = vmax.xlane.f32.xlu0 %v5572_v36  ;;  %2976 = vmax.xlane.f32.xlu1 %v5576_v18 }
 0x53d   : > { %v2883_v32 = vadd.f32 %v5403_v51, %v2844_v26  ;;  %v2884_v25 = vadd.f32 %v5403_v51, %v2845_v28 }
 0x53f   : > { %v5589_v45 = vsel %vm2887_vm0, %v2883_v32, -1e+30  ;;  %v5593_v29 = vsel %vm2887_vm0, %v2884_v25, -1e+30 }
 0x540   : > { %2978 = vmax.xlane.f32.xlu0 %v5585_v33  ;;  %2980 = vmax.xlane.f32.xlu1 %v5589_v45 }
 0x544   : > { %2982 = vmax.xlane.f32.xlu0 %v5593_v29 }
 0x58d   : > { %v2921_v30 = vpop.xlane.xlu0 %2920 }
 0x58e   : > { %v2984_v51 = vsub.f32 %v5410_v9, %v2921_v30 }
 0x590   : > { %v3016_v6 = vmul.f32 1.442695, %v2984_v51 }
 0x591   : > { %v2923_v50 = vpop.xlane.xlu1 %2922  ;;  %v2925_v52 = vpop.xlane.xlu0 %2924 }
 0x592   : > { %4301 = vpow2.f32 %v3016_v6  ;;  %v2985_v58 = vsub.f32 %v5421_v39, %v2923_v50  ;;  %v2986_v47 = vsub.f32 %v5415_v5, %v2925_v52 }
 0x594   : > { %v3018_v38 = vmul.f32 1.442695, %v2985_v58  ;;  %v3020_v8 = vmul.f32 1.442695, %v2986_v47 }
 0x595   : > { %v2929_v53 = vpop.xlane.xlu1 %2928  ;;  %v2927_v0 = vpop.xlane.xlu0 %2926 }
 0x596   : > { %4303 = vpow2.f32 %v3018_v38  ;;  %v2988_v60 = vsub.f32 %v5432_v42, %v2929_v53  ;;  %v2987_v20 = vsub.f32 %v5428_v55, %v2927_v0 }
 0x597   : > { %4305 = vpow2.f32 %v3020_v8 }
 0x598   : > { %v3024_v21 = vmul.f32 1.442695, %v2988_v60  ;;  %v3022_v9 = vmul.f32 1.442695, %v2987_v20 }
 0x599   : > { %v2933_v23 = vpop.xlane.xlu1 %2932  ;;  %v2931_v63 = vpop.xlane.xlu0 %2930 }
 0x59a   : > { %4307 = vpow2.f32 %v3024_v21  ;;  %v2990_v7 = vsub.f32 %v5445_v49, %v2933_v23  ;;  %v2989_v39 = vsub.f32 %v5441_v3, %v2931_v63 }
 0x59b   : > { %4309 = vpow2.f32 %v3022_v9 }
 0x59c   : > { %v3028_v5 = vmul.f32 1.442695, %v2990_v7  ;;  %v3026_v2 = vmul.f32 1.442695, %v2989_v39 }
 0x59d   : > { %v2937_v43 = vpop.xlane.xlu1 %2936  ;;  %v2935_v31 = vpop.xlane.xlu0 %2934 }
 0x59e   : > { %4311 = vpow2.f32 %v3028_v5  ;;  %v2992_v42 = vsub.f32 %v5456_v61, %v2937_v43  ;;  %v2991_v55 = vsub.f32 %v5452_v54, %v2935_v31 }
 0x59f   : > { %v5607_v35 = vpop.eup %4301  ;;  %4313 = vpow2.f32 %v3026_v2 }
 0x5a0   : > { %v3032_v27 = vmul.f32 1.442695, %v2992_v42  ;;  %v3030_v11 = vmul.f32 1.442695, %v2991_v55  ;;  %3080 = vadd.xlane.f32.xlu1 %v5607_v35 }
 0x5a1   : > { %v2941_v49 = vpop.xlane.xlu1 %2940  ;;  %v2939_v17 = vpop.xlane.xlu0 %2938 }
 0x5a2   : > { %4315 = vpow2.f32 %v3032_v27  ;;  %v2994_v3 = vsub.f32 %v5469_v40, %v2941_v49  ;;  %v2993_v34 = vsub.f32 %v5465_v48, %v2939_v17 }
 0x5a3   : > { %v5612_v22 = vpop.eup %4303  ;;  %4317 = vpow2.f32 %v3030_v11 }
 0x5a4   : > { %v5614_v61 = vpop.eup %4305  ;;  %v3036_v54 = vmul.f32 1.442695, %v2994_v3  ;;  %v3034_v24 = vmul.f32 1.442695, %v2993_v34  ;;  %3082 = vadd.xlane.f32.xlu0 %v5612_v22 }
 0x5a5   : > { %3084 = vadd.xlane.f32.xlu1 %v5614_v61  ;;  %v2945_v28 = vpop.xlane.xlu1 %2944  ;;  %v2943_v26 = vpop.xlane.xlu0 %2942 }
 0x5a6   : > { %4319 = vpow2.f32 %v3036_v54  ;;  %v2996_v56 = vsub.f32 %v5480_v12, %v2945_v28  ;;  %v2995_v40 = vsub.f32 %v5476_v41, %v2943_v26 }
 0x5a7   : > { %v5620_v32 = vpop.eup %4307  ;;  %4321 = vpow2.f32 %v3034_v24 }
 0x5a8   : > { %v5622_v48 = vpop.eup %4309  ;;  %v3040_v25 = vmul.f32 1.442695, %v2996_v56  ;;  %v3038_v30 = vmul.f32 1.442695, %v2995_v40 }
 0x5a9   : > { %3088 = vadd.xlane.f32.xlu1 %v5620_v32  ;;  %3086 = vadd.xlane.f32.xlu0 %v5622_v48  ;;  %v2949_v51 = vpop.xlane.xlu1 %2948  ;;  %v2947_v6 = vpop.xlane.xlu0 %2946 }
 0x5aa   : > { %4323 = vpow2.f32 %v3040_v25  ;;  %v2998_v50 = vsub.f32 %v5493_v37, %v2949_v51  ;;  %v2997_v12 = vsub.f32 %v5489_v44, %v2947_v6 }
 0x5ab   : > { %v5628_v52 = vpop.eup %4311  ;;  %4325 = vpow2.f32 %v3038_v30 }
 0x5ac   : > { %v5630_v41 = vpop.eup %4313  ;;  %v3044_v58 = vmul.f32 1.442695, %v2998_v50  ;;  %v3042_v47 = vmul.f32 1.442695, %v2997_v12 }
 0x5ad   : > { %3092 = vadd.xlane.f32.xlu1 %v5628_v52  ;;  %3090 = vadd.xlane.f32.xlu0 %v5630_v41  ;;  %v2953_v38 = vpop.xlane.xlu1 %2952  ;;  %v2951_v8 = vpop.xlane.xlu0 %2950 }
 0x5ae   : > { %4327 = vpow2.f32 %v3044_v58  ;;  %v3000_v53 = vsub.f32 %v5504_v4, %v2953_v38  ;;  %v2999_v37 = vsub.f32 %v5500_v16, %v2951_v8 }
 0x5af   : > { %v5636_v0 = vpop.eup %4315  ;;  %4329 = vpow2.f32 %v3042_v47 }
 0x5b0   : > { %v5638_v44 = vpop.eup %4317  ;;  %v3048_v60 = vmul.f32 1.442695, %v3000_v53  ;;  %v3046_v20 = vmul.f32 1.442695, %v2999_v37 }
 0x5b1   : > { %3096 = vadd.xlane.f32.xlu1 %v5636_v0  ;;  %3094 = vadd.xlane.f32.xlu0 %v5638_v44  ;;  %v2957_v21 = vpop.xlane.xlu1 %2956  ;;  %v2955_v9 = vpop.xlane.xlu0 %2954 }
 0x5b2   : > { %4331 = vpow2.f32 %v3048_v60  ;;  %v3002_v23 = vsub.f32 %v5517_v62, %v2957_v21  ;;  %v3001_v4 = vsub.f32 %v5513_v59, %v2955_v9 }
 0x5b3   : > { %v5644_v63 = vpop.eup %4319  ;;  %4333 = vpow2.f32 %v3046_v20 }
 0x5b4   : > { %v5646_v16 = vpop.eup %4321  ;;  %v3052_v7 = vmul.f32 1.442695, %v3002_v23  ;;  %v3050_v39 = vmul.f32 1.442695, %v3001_v4 }
 0x5b5   : > { %3100 = vadd.xlane.f32.xlu1 %v5644_v63  ;;  %3098 = vadd.xlane.f32.xlu0 %v5646_v16  ;;  %v2961_v5 = vpop.xlane.xlu1 %2960  ;;  %v2959_v2 = vpop.xlane.xlu0 %2958 }
 0x5b6   : > { %4335 = vpow2.f32 %v3052_v7  ;;  %v3004_v43 = vsub.f32 %v5528_v10, %v2961_v5  ;;  %v3003_v62 = vsub.f32 %v5524_v19, %v2959_v2 }
 0x5b7   : > { %v5652_v31 = vpop.eup %4323  ;;  %4337 = vpow2.f32 %v3050_v39 }
 0x5b8   : > { %v5654_v59 = vpop.eup %4325  ;;  %v3056_v42 = vmul.f32 1.442695, %v3004_v43  ;;  %v3054_v55 = vmul.f32 1.442695, %v3003_v62 }
 0x5b9   : > { %3104 = vadd.xlane.f32.xlu1 %v5652_v31  ;;  %3102 = vadd.xlane.f32.xlu0 %v5654_v59  ;;  %v2965_v27 = vpop.xlane.xlu1 %2964  ;;  %v2963_v11 = vpop.xlane.xlu0 %2962 }
 0x5ba   : > { %4339 = vpow2.f32 %v3056_v42  ;;  %v3006_v49 = vsub.f32 %v5541_v15, %v2965_v27  ;;  %v3005_v10 = vsub.f32 %v5537_v14, %v2963_v11 }
 0x5bb   : > { %v5660_v17 = vpop.eup %4327  ;;  %4341 = vpow2.f32 %v3054_v55 }
 0x5bc   : > { %v5662_v19 = vpop.eup %4329  ;;  %v3060_v3 = vmul.f32 1.442695, %v3006_v49  ;;  %v3058_v34 = vmul.f32 1.442695, %v3005_v10 }
 0x5bd   : > { %3108 = vadd.xlane.f32.xlu1 %v5660_v17  ;;  %3106 = vadd.xlane.f32.xlu0 %v5662_v19  ;;  %v2969_v54 = vpop.xlane.xlu1 %2968  ;;  %v2967_v24 = vpop.xlane.xlu0 %2966 }
 0x5be   : > { %4343 = vpow2.f32 %v3060_v3  ;;  %v3008_v28 = vsub.f32 %v5552_v13, %v2969_v54  ;;  %v3007_v15 = vsub.f32 %v5548_v57, %v2967_v24 }
 0x5bf   : > { %v5668_v26 = vpop.eup %4331  ;;  %4345 = vpow2.f32 %v3058_v34 }
 0x5c0   : > { %v5670_v14 = vpop.eup %4333  ;;  %v3064_v56 = vmul.f32 1.442695, %v3008_v28  ;;  %v3062_v40 = vmul.f32 1.442695, %v3007_v15 }
 0x5c1   : > { %3112 = vadd.xlane.f32.xlu1 %v5668_v26  ;;  %3110 = vadd.xlane.f32.xlu0 %v5670_v14  ;;  %v2973_v25 = vpop.xlane.xlu1 %2972  ;;  %v2971_v30 = vpop.xlane.xlu0 %2970 }
 0x5c2   : > { %4347 = vpow2.f32 %v3064_v56  ;;  %v3010_v51 = vsub.f32 %v5565_v1, %v2973_v25  ;;  %v3009_v13 = vsub.f32 %v5561_v46, %v2971_v30 }
 0x5c3   : > { %v5676_v6 = vpop.eup %4335  ;;  %4349 = vpow2.f32 %v3062_v40 }
 0x5c4   : > { %v5678_v57 = vpop.eup %4337  ;;  %v3068_v50 = vmul.f32 1.442695, %v3010_v51  ;;  %v3066_v12 = vmul.f32 1.442695, %v3009_v13 }
 0x5c5   : > { %3116 = vadd.xlane.f32.xlu1 %v5676_v6  ;;  %3114 = vadd.xlane.f32.xlu0 %v5678_v57  ;;  %v2977_v58 = vpop.xlane.xlu1 %2976  ;;  %v2975_v47 = vpop.xlane.xlu0 %2974 }
 0x5c6   : > { %4351 = vpow2.f32 %v3068_v50  ;;  %v3012_v38 = vsub.f32 %v5576_v18, %v2977_v58  ;;  %v3011_v1 = vsub.f32 %v5572_v36, %v2975_v47 }
 0x5c7   : > { %v5684_v8 = vpop.eup %4339  ;;  %4353 = vpow2.f32 %v3066_v12 }
 0x5c8   : > { %v5686_v46 = vpop.eup %4341  ;;  %v3072_v53 = vmul.f32 1.442695, %v3012_v38  ;;  %v3070_v37 = vmul.f32 1.442695, %v3011_v1 }
 0x5c9   : > { %3120 = vadd.xlane.f32.xlu1 %v5684_v8  ;;  %3118 = vadd.xlane.f32.xlu0 %v5686_v46  ;;  %v2981_v60 = vpop.xlane.xlu1 %2980  ;;  %v2979_v20 = vpop.xlane.xlu0 %2978 }
 0x5ca   : > { %4355 = vpow2.f32 %v3072_v53  ;;  %v3014_v21 = vsub.f32 %v5589_v45, %v2981_v60  ;;  %v3013_v18 = vsub.f32 %v5585_v33, %v2979_v20 }
 0x5cb   : > { %v5692_v9 = vpop.eup %4343  ;;  %4357 = vpow2.f32 %v3070_v37 }
 0x5cc   : > { %v5694_v36 = vpop.eup %4345  ;;  %v3076_v23 = vmul.f32 1.442695, %v3014_v21  ;;  %v3074_v4 = vmul.f32 1.442695, %v3013_v18 }
 0x5cd   : > { %3124 = vadd.xlane.f32.xlu1 %v5692_v9  ;;  %3122 = vadd.xlane.f32.xlu0 %v5694_v36  ;;  %v2983_v7 = vpop.xlane.xlu0 %2982 }
 0x5ce   : > { %4359 = vpow2.f32 %v3076_v23  ;;  %v3015_v39 = vsub.f32 %v5593_v29, %v2983_v7 }
 0x5cf   : > { %v5699_v5 = vpop.eup %4347  ;;  %4361 = vpow2.f32 %v3074_v4 }
 0x5d0   : > { %v5701_v45 = vpop.eup %4349  ;;  %v3078_v33 = vmul.f32 1.442695, %v3015_v39 }
 0x5d1   : > { %3128 = vadd.xlane.f32.xlu1 %v5699_v5  ;;  %3126 = vadd.xlane.f32.xlu0 %v5701_v45 }
 0x5d2   : > { %4363 = vpow2.f32 %v3078_v33 }
 0x5d3   : > { %v5705_v2 = vpop.eup %4351 }
 0x5d4   : > { %v5707_v43 = vpop.eup %4353 }
 0x5d5   : > { %3132 = vadd.xlane.f32.xlu1 %v5705_v2  ;;  %3130 = vadd.xlane.f32.xlu0 %v5707_v43 }
 0x5d7   : > { %v5711_v29 = vpop.eup %4355 }
 0x5d8   : > { %v5713_v62 = vpop.eup %4357 }
 0x5d9   : > { %3136 = vadd.xlane.f32.xlu1 %v5711_v29  ;;  %3134 = vadd.xlane.f32.xlu0 %v5713_v62 }
 0x5db   : > { %v5717_v42 = vpop.eup %4359 }
 0x5dc   : > { %v5719_v55 = vpop.eup %4361 }
 0x5dd   : > { %3140 = vadd.xlane.f32.xlu1 %v5717_v42  ;;  %3138 = vadd.xlane.f32.xlu0 %v5719_v55 }
 0x5df   : > { %v5723_v27 = vpop.eup %4363 }
 0x5e1   : > { %3142 = vadd.xlane.f32.xlu0 %v5723_v27 }
 0x629   : > { %v3081_v11 = vpop.xlane.xlu1 %3080 }
 0x62a   : > { %4365 = vrcp.f32 %v3081_v11 }
 0x62d   : > { %v3083_v49 = vpop.xlane.xlu0 %3082 }
 0x62e   : > { %v3085_v10 = vpop.xlane.xlu1 %3084  ;;  %4367 = vrcp.f32 %v3083_v49 }
 0x62f   : > { %4369 = vrcp.f32 %v3085_v10 }
 0x632   : > { %v3089_v3 = vpop.xlane.xlu1 %3088  ;;  %v3087_v34 = vpop.xlane.xlu0 %3086 }
 0x633   : > { %4371 = vrcp.f32 %v3089_v3 }
 0x634   : > { %4373 = vrcp.f32 %v3087_v34 }
 0x636   : > { %v3093_v54 = vpop.xlane.xlu1 %3092  ;;  %v3091_v24 = vpop.xlane.xlu0 %3090 }
 0x637   : > { %v4366_v28 = vpop.eup %4365  ;;  %4375 = vrcp.f32 %v3093_v54 }
 0x638   : > { %v3176_v15 = vmul.f32 %v4366_v28, %v5607_v35  ;;  %4377 = vrcp.f32 %v3091_v24 }
 0x63a   : > { %3208 = vst [vmem:[%s4664_s19] sm:$0xff] %v3176_v15  ;;  %v3097_v56 = vpop.xlane.xlu1 %3096  ;;  %v3095_v40 = vpop.xlane.xlu0 %3094 }
 0x63b   : > { %v4368_v25 = vpop.eup %4367  ;;  %4379 = vrcp.f32 %v3097_v56 }
 0x63c   : > { %v4370_v30 = vpop.eup %4369  ;;  %v3177_v51 = vmul.f32 %v4368_v25, %v5612_v22  ;;  %4381 = vrcp.f32 %v3095_v40 }
 0x63d   : > { %v3178_v13 = vmul.f32 %v4370_v30, %v5614_v61 }
 0x63e   : > { %3209 = vst [vmem:[%s4664_s19 + $0x8] sm:$0xff] %v3177_v51  ;;  %v3101_v50 = vpop.xlane.xlu1 %3100  ;;  %v3099_v12 = vpop.xlane.xlu0 %3098 }
 0x63f   : > { %3210 = vst [vmem:[%s4664_s19 + $0x10] sm:$0xff] %v3178_v13  ;;  %4383 = vrcp.f32 %v3101_v50 }
 0x640   : > { %v4372_v35 = vpop.eup %4371  ;;  %4385 = vrcp.f32 %v3099_v12 }
 0x641   : > { %v4374_v58 = vpop.eup %4373  ;;  %v3180_v47 = vmul.f32 %v4372_v35, %v5620_v32 }
 0x642   : > { %v3179_v38 = vmul.f32 %v4374_v58, %v5622_v48  ;;  %v3105_v1 = vpop.xlane.xlu1 %3104  ;;  %v3103_v22 = vpop.xlane.xlu0 %3102 }
 0x643   : > { %3212 = vst [vmem:[%s4664_s19 + $0x20] sm:$0xff] %v3180_v47  ;;  %4387 = vrcp.f32 %v3105_v1 }
 0x644   : > { %v4376_v61 = vpop.eup %4375  ;;  %3211 = vst [vmem:[%s4664_s19 + $0x18] sm:$0xff] %v3179_v38  ;;  %4389 = vrcp.f32 %v3103_v22 }
 0x645   : > { %v4378_v53 = vpop.eup %4377  ;;  %v3182_v37 = vmul.f32 %v4376_v61, %v5628_v52 }
 0x646   : > { %v3181_v60 = vmul.f32 %v4378_v53, %v5630_v41  ;;  %v3109_v20 = vpop.xlane.xlu1 %3108  ;;  %v3107_v21 = vpop.xlane.xlu0 %3106 }
 0x647   : > { %3214 = vst [vmem:[%s4664_s19 + $0x30] sm:$0xff] %v3182_v37  ;;  %4391 = vrcp.f32 %v3109_v20 }
 0x648   : > { %v4380_v32 = vpop.eup %4379  ;;  %3213 = vst [vmem:[%s4664_s19 + $0x28] sm:$0xff] %v3181_v60  ;;  %4393 = vrcp.f32 %v3107_v21 }
 0x649   : > { %v4382_v48 = vpop.eup %4381  ;;  %v3184_v18 = vmul.f32 %v4380_v32, %v5636_v0 }
 0x64a   : > { %v3183_v23 = vmul.f32 %v4382_v48, %v5638_v44  ;;  %v3113_v4 = vpop.xlane.xlu1 %3112  ;;  %v3111_v7 = vpop.xlane.xlu0 %3110 }
 0x64b   : > { %3216 = vst [vmem:[%s4664_s19 + $0x40] sm:$0xff] %v3184_v18  ;;  %4395 = vrcp.f32 %v3113_v4 }
 0x64c   : > { %v4384_v52 = vpop.eup %4383  ;;  %3215 = vst [vmem:[%s4664_s19 + $0x38] sm:$0xff] %v3183_v23  ;;  %4397 = vrcp.f32 %v3111_v7 }
 0x64d   : > { %v4386_v41 = vpop.eup %4385  ;;  %v3186_v39 = vmul.f32 %v4384_v52, %v5644_v63 }
 0x64e   : > { %v3185_v33 = vmul.f32 %v4386_v41, %v5646_v16  ;;  %v3117_v11 = vpop.xlane.xlu1 %3116  ;;  %v3115_v49 = vpop.xlane.xlu0 %3114 }
 0x64f   : > { %3218 = vst [vmem:[%s4664_s19 + $0x50] sm:$0xff] %v3186_v39  ;;  %4399 = vrcp.f32 %v3117_v11 }
 0x650   : > { %v4388_v0 = vpop.eup %4387  ;;  %3217 = vst [vmem:[%s4664_s19 + $0x48] sm:$0xff] %v3185_v33  ;;  %4401 = vrcp.f32 %v3115_v49 }
 0x651   : > { %v4390_v44 = vpop.eup %4389  ;;  %v3188_v10 = vmul.f32 %v4388_v0, %v5652_v31 }
 0x652   : > { %v3187_v3 = vmul.f32 %v4390_v44, %v5654_v59  ;;  %v3121_v34 = vpop.xlane.xlu1 %3120  ;;  %v3119_v54 = vpop.xlane.xlu0 %3118 }
 0x653   : > { %3220 = vst [vmem:[%s4664_s19 + $0x60] sm:$0xff] %v3188_v10  ;;  %4403 = vrcp.f32 %v3121_v34 }
 0x654   : > { %v4392_v63 = vpop.eup %4391  ;;  %3219 = vst [vmem:[%s4664_s19 + $0x58] sm:$0xff] %v3187_v3  ;;  %4405 = vrcp.f32 %v3119_v54 }
 0x655   : > { %v4394_v16 = vpop.eup %4393  ;;  %v3190_v24 = vmul.f32 %v4392_v63, %v5660_v17 }
 0x656   : > { %v3189_v28 = vmul.f32 %v4394_v16, %v5662_v19  ;;  %v3125_v15 = vpop.xlane.xlu1 %3124  ;;  %v3123_v56 = vpop.xlane.xlu0 %3122 }
 0x657   : > { %3222 = vst [vmem:[%s4664_s19 + $0x70] sm:$0xff] %v3190_v24  ;;  %4407 = vrcp.f32 %v3125_v15 }
 0x658   : > { %v4396_v31 = vpop.eup %4395  ;;  %3221 = vst [vmem:[%s4664_s19 + $0x68] sm:$0xff] %v3189_v28  ;;  %4409 = vrcp.f32 %v3123_v56 }
 0x659   : > { %v4398_v59 = vpop.eup %4397  ;;  %v3192_v40 = vmul.f32 %v4396_v31, %v5668_v26 }
 0x65a   : > { %v3191_v25 = vmul.f32 %v4398_v59, %v5670_v14  ;;  %v3129_v30 = vpop.xlane.xlu1 %3128  ;;  %v3127_v51 = vpop.xlane.xlu0 %3126 }
 0x65b   : > { %3224 = vst [vmem:[%s4664_s19 + $0x80] sm:$0xff] %v3192_v40  ;;  %4411 = vrcp.f32 %v3129_v30 }
 0x65c   : > { %v4400_v17 = vpop.eup %4399  ;;  %3223 = vst [vmem:[%s4664_s19 + $0x78] sm:$0xff] %v3191_v25  ;;  %4413 = vrcp.f32 %v3127_v51 }
 0x65d   : > { %v4402_v19 = vpop.eup %4401  ;;  %v3194_v13 = vmul.f32 %v4400_v17, %v5676_v6 }
 0x65e   : > { %v3193_v50 = vmul.f32 %v4402_v19, %v5678_v57  ;;  %v3133_v12 = vpop.xlane.xlu1 %3132  ;;  %v3131_v35 = vpop.xlane.xlu0 %3130 }
 0x65f   : > { %3226 = vst [vmem:[%s4664_s19 + $0x90] sm:$0xff] %v3194_v13  ;;  %4415 = vrcp.f32 %v3133_v12 }
 0x660   : > { %v4404_v26 = vpop.eup %4403  ;;  %3225 = vst [vmem:[%s4664_s19 + $0x88] sm:$0xff] %v3193_v50  ;;  %4417 = vrcp.f32 %v3131_v35 }
 0x661   : > { %v4406_v14 = vpop.eup %4405  ;;  %v3196_v58 = vmul.f32 %v4404_v26, %v5684_v8 }
 0x662   : > { %v3195_v47 = vmul.f32 %v4406_v14, %v5686_v46  ;;  %v3137_v38 = vpop.xlane.xlu1 %3136  ;;  %v3135_v1 = vpop.xlane.xlu0 %3134 }
 0x663   : > { %3228 = vst [vmem:[%s4664_s19 + $0xa0] sm:$0xff] %v3196_v58  ;;  %4419 = vrcp.f32 %v3137_v38 }
 0x664   : > { %v4408_v6 = vpop.eup %4407  ;;  %3227 = vst [vmem:[%s4664_s19 + $0x98] sm:$0xff] %v3195_v47  ;;  %4421 = vrcp.f32 %v3135_v1 }
 0x665   : > { %v4410_v57 = vpop.eup %4409  ;;  %v3198_v22 = vmul.f32 %v4408_v6, %v5692_v9 }
 0x666   : > { %v3197_v61 = vmul.f32 %v4410_v57, %v5694_v36  ;;  %v3141_v53 = vpop.xlane.xlu1 %3140  ;;  %v3139_v37 = vpop.xlane.xlu0 %3138 }
 0x667   : > { %3230 = vst [vmem:[%s4664_s19 + $0xb0] sm:$0xff] %v3198_v22  ;;  %4423 = vrcp.f32 %v3141_v53 }
 0x668   : > { %v4412_v8 = vpop.eup %4411  ;;  %3229 = vst [vmem:[%s4664_s19 + $0xa8] sm:$0xff] %v3197_v61  ;;  %4425 = vrcp.f32 %v3139_v37 }
 0x669   : > { %v4414_v46 = vpop.eup %4413  ;;  %v3200_v60 = vmul.f32 %v4412_v8, %v5699_v5 }
 0x66a   : > { %v3199_v20 = vmul.f32 %v4414_v46, %v5701_v45  ;;  %v3143_v21 = vpop.xlane.xlu0 %3142 }
 0x66b   : > { %3232 = vst [vmem:[%s4664_s19 + $0xc0] sm:$0xff] %v3200_v60  ;;  %4427 = vrcp.f32 %v3143_v21 }
 0x66c   : > { %v4416_v9 = vpop.eup %4415  ;;  %3231 = vst [vmem:[%s4664_s19 + $0xb8] sm:$0xff] %v3199_v20 }
 0x66d   : > { %v4418_v36 = vpop.eup %4417  ;;  %v3202_v32 = vmul.f32 %v4416_v9, %v5705_v2 }
 0x66e   : > { %v3201_v48 = vmul.f32 %v4418_v36, %v5707_v43 }
 0x66f   : > { %3234 = vst [vmem:[%s4664_s19 + $0xd0] sm:$0xff] %v3202_v32 }
 0x670   : > { %v4420_v18 = vpop.eup %4419  ;;  %3233 = vst [vmem:[%s4664_s19 + $0xc8] sm:$0xff] %v3201_v48 }
 0x671   : > { %v4422_v5 = vpop.eup %4421  ;;  %v3204_v45 = vmul.f32 %v4420_v18, %v5711_v29 }
 0x672   : > { %v3203_v23 = vmul.f32 %v4422_v5, %v5713_v62 }
 0x673   : > { %3236 = vst [vmem:[%s4664_s19 + $0xe0] sm:$0xff] %v3204_v45 }
 0x674   : > { %v4424_v4 = vpop.eup %4423  ;;  %3235 = vst [vmem:[%s4664_s19 + $0xd8] sm:$0xff] %v3203_v23 }
 0x675   : > { %v4426_v7 = vpop.eup %4425  ;;  %v3206_v52 = vmul.f32 %v4424_v4, %v5717_v42 }
 0x676   : > { %v3205_v2 = vmul.f32 %v4426_v7, %v5719_v55 }
 0x677   : > { %3238 = vst [vmem:[%s4664_s19 + $0xf0] sm:$0xff] %v3206_v52 }
 0x678   : > { %v4428_v41 = vpop.eup %4427  ;;  %3237 = vst [vmem:[%s4664_s19 + $0xe8] sm:$0xff] %v3205_v2 }
 0x679   : > { %v3207_v43 = vmul.f32 %v4428_v41, %v5723_v27 }
 0x67b   : > { %3239 = vst [vmem:[%s4664_s19 + $0xf8] sm:$0xff] %v3207_v43 }
 0x67c PF: > { %s16_s25 = sadd.s32 1, %s4467_s25   ;;  %s5925_s21 = smov %s4459_s23 }
 0x67d   : > { %p13_p11 = scmp.ge.s32.totalorder %s16_s25, 6   ;;  %s5926_s22 = smov %s4463_s24 }
 0x67e   : > { %s5927_s23 = smov %s5930_s26  ;;  %s5928_s24 = smov %s5934_s27 }
 0x67f   :  { %15 = sbr.rel (!%p13_p11) target bundleno = 3 (0x3), region = 100 }

</bundles_post_ra>
